<compile_context>
chip_gen: v6e
topology: v6e:2x2x1
jax: 0.10.0
libtpu: 0.0.40
codegen_flags: <defaults>
</compile_context>

<pallas_src>
import functools
import numpy as np
import jax
import jax.numpy as jnp
from jax import lax
from jax.experimental import pallas as pl
from jax.experimental.pallas import tpu as pltpu


# -----------------------------------------------------------------------------
# helpers
# -----------------------------------------------------------------------------
def _full_spec(shape):
    """BlockSpec covering the full array as a single block (grid=(1,) or 1-D grid)."""
    nd = len(shape)

    def idx(*_):
        return (0,) * nd

    return pl.BlockSpec(tuple(shape), idx)


def _elu(a):
    # torch.nn.functional.elu, alpha=1.0.  TODO(synk): jnp.expm1 is not reliably
    # lowered by Mosaic; exp(x)-1 in f32 differs from expm1 by ~1e-7 abs here.
    return jnp.where(a > 0.0, a, jnp.exp(jnp.minimum(a, 0.0)) - 1.0)


# -----------------------------------------------------------------------------
# Kernel 1: encoder linear  (K-tiled, f32 accumulator, ReLU at the end)
# -----------------------------------------------------------------------------
def _encoder_kernel(x_ref, w_ref, b_ref, o_ref, acc_ref):
    k = pl.program_id(0)

    @pl.when(k == 0)
    def _init():
        acc_ref[...] = jnp.zeros_like(acc_ref)

    acc_ref[...] += jnp.dot(x_ref[...].astype(jnp.bfloat16), w_ref[...],
                            preferred_element_type=jnp.float32)

    @pl.when(k == pl.num_programs(0) - 1)
    def _finalize():
        o_ref[...] = jnp.maximum(acc_ref[...] + b_ref[...], 0.0)


def encoder_linear(x_flat, w_bf16, b_f32, *, tk=512):
    """relu(x @ w + b).  x:(B,K) f32, w:(K,N) bf16, b:(1,N) f32 -> (B,N) f32."""
    B, K = x_flat.shape
    K2, N = w_bf16.shape
    assert K == K2 and K % tk == 0, (K, K2, tk)
    return pl.pallas_call(
        _encoder_kernel,
        out_shape=jax.ShapeDtypeStruct((B, N), jnp.float32),
        grid=(K // tk,),
        in_specs=[
            pl.BlockSpec((B, tk), lambda k: (0, k)),
            pl.BlockSpec((tk, N), lambda k: (k, 0)),
            pl.BlockSpec((1, N), lambda k: (0, 0)),
        ],
        out_specs=pl.BlockSpec((B, N), lambda k: (0, 0)),
        scratch_shapes=[pltpu.VMEM((B, N), jnp.float32)],
        compiler_params=pltpu.CompilerParams(
            dimension_semantics=("arbitrary",),
            vmem_limit_bytes=32 * 1024 * 1024),
    )(x_flat, w_bf16, b_f32)


# -----------------------------------------------------------------------------
# Kernel 2: fused head  (MLP hidden stack + EF output + dec_lin), one call
# -----------------------------------------------------------------------------
def _head_kernel(*refs, n_hidden):
    feat_ref = refs[0]
    wb = refs[1:1 + 2 * n_hidden]
    w_ef, b_ef, w_dec, b_dec = refs[1 + 2 * n_hidden: 5 + 2 * n_hidden]
    ef_ref, guide_ref, xk_ref = refs[5 + 2 * n_hidden:]

    feats = feat_ref[...]                                     # (B, F) f32
    h = feats
    for i in range(n_hidden):
        w = wb[2 * i][...]
        b = wb[2 * i + 1][...]
        h = jnp.maximum(
            jnp.dot(h.astype(jnp.bfloat16), w, preferred_element_type=jnp.float32)
            + b, 0.0)
    guide_ref[...] = h
    ef_ref[...] = (jnp.dot(h.astype(jnp.bfloat16), w_ef[...],
                           preferred_element_type=jnp.float32) + b_ef[...])
    xk_ref[...] = (jnp.dot(feats.astype(jnp.bfloat16), w_dec[...],
                           preferred_element_type=jnp.float32) + b_dec[...])


def head_forward(feats, mlp_hidden, mlp_out, dec_lin, num_nodes, c0):
    B, _ = feats.shape
    n_hidden = len(mlp_hidden)
    inputs, in_specs = [feats], [_full_spec(feats.shape)]
    for w, b in mlp_hidden:
        inputs += [w, b]
        in_specs += [_full_spec(w.shape), _full_spec(b.shape)]
    w_ef, b_ef = mlp_out
    w_dec, b_dec = dec_lin
    inputs += [w_ef, b_ef, w_dec, b_dec]
    in_specs += [_full_spec(w_ef.shape), _full_spec(b_ef.shape),
                 _full_spec(w_dec.shape), _full_spec(b_dec.shape)]
    hid_last = mlp_hidden[-1][0].shape[1]
    out_shape = (jax.ShapeDtypeStruct((B, 1), jnp.float32),
                 jax.ShapeDtypeStruct((B, hid_last), jnp.float32),
                 jax.ShapeDtypeStruct((B, num_nodes * c0), jnp.float32))
    out_specs = (_full_spec((B, 1)), _full_spec((B, hid_last)),
                 _full_spec((B, num_nodes * c0)))
    return pl.pallas_call(
        functools.partial(_head_kernel, n_hidden=n_hidden),
        out_shape=out_shape,
        grid=(1,),
        in_specs=in_specs,
        out_specs=out_specs,
        compiler_params=pltpu.CompilerParams(
            dimension_semantics=("arbitrary",),
            vmem_limit_bytes=32 * 1024 * 1024),
    )(*inputs)


# -----------------------------------------------------------------------------
# Kernel 3: fused SpiralConv decoder (all spiral layers, gather in-kernel)
# Grid is (1,): every output row of a layer depends on all rows of the previous
# layer (the spiral gather mixes nodes across the whole graph), so the fused
# stack cannot be tiled over M; at these sizes fusion wins over core-splitting.
# -----------------------------------------------------------------------------
def _decoder_kernel(*refs, n_layers, seq, bn):
    x_ref, g_ref = refs[0], refs[1]
    wb = refs[2:2 + 2 * n_layers]
    o_ref = refs[-1]

    x = x_ref[...]                                            # (bn, C0) f32
    for li in range(n_layers):
        w_ref = wb[2 * li]                                    # (seq, Cin, Cout) bf16
        b_ref = wb[2 * li + 1]                                # (1, Cout) f32
        cout = w_ref.shape[2]
        xb = x.astype(jnp.bfloat16)                           # hoisted out of s-loop
        acc0 = jnp.broadcast_to(b_ref[...], (bn, cout))

        def body(s, acc, _xb=xb, _w=w_ref):
            g = g_ref[s]                                      # (bn, bn) one-hot bf16
            w = _w[s]                                         # (Cin, Cout) bf16
            # gather via one-hot matmul: t[n] = x[spiral_idx[n, s]]
            t = jnp.dot(g, _xb, preferred_element_type=jnp.float32)
            return acc + jnp.dot(t.astype(jnp.bfloat16), w,
                                 preferred_element_type=jnp.float32)

        acc = lax.fori_loop(0, seq, body, acc0)
        x = _elu(acc) if li != n_layers - 1 else acc
    o_ref[...] = x                                            # (bn, 128) lane-dense


def decoder_forward(xk0, g_onehot, spirals):
    bn, _ = xk0.shape
    seq = g_onehot.shape[0]
    n_layers = len(spirals)
    inputs, in_specs = [xk0, g_onehot], [_full_spec(xk0.shape),
                                         _full_spec(g_onehot.shape)]
    for w3, b in spirals:
        inputs += [w3, b]
        in_specs += [_full_spec(w3.shape), _full_spec(b.shape)]
    out_n = spirals[-1][0].shape[2]                           # padded kpt channels
    return pl.pallas_call(
        functools.partial(_decoder_kernel, n_layers=n_layers, seq=seq, bn=bn),
        out_shape=jax.ShapeDtypeStruct((bn, out_n), jnp.float32),
        grid=(1,),
        in_specs=in_specs,
        out_specs=_full_spec((bn, out_n)),
        compiler_params=pltpu.CompilerParams(
            dimension_semantics=("arbitrary",),
            vmem_limit_bytes=32 * 1024 * 1024),
    )(*inputs)


# -----------------------------------------------------------------------------
# spiral index construction (identical to kpts_decoder_temporal.__init__)
# -----------------------------------------------------------------------------
def build_spiral_indices(num_nodes, tsteps):
    num_nodes_single = num_nodes // tsteps
    adjacency = []
    for ii in range(num_nodes_single):
        xx = list(range(num_nodes_single))
        xx.insert(0, xx.pop(ii))
        adjacency.append(xx)
    adjacency = np.array(adjacency)
    if tsteps != 1:
        indices = np.concatenate((adjacency, adjacency + num_nodes_single), 0)
        time_edges = np.roll(indices[:, 0], num_nodes_single)
        adjacency = np.concatenate((indices, time_edges[:, np.newaxis]), 1)
    return adjacency  # (num_nodes, seq_length)


def build_gather_onehot(spiral_indices, batch, num_nodes):
    """Per-spiral-step one-hot selection matrices, block-diagonal over the batch."""
    seq = spiral_indices.shape[1]
    bn = batch * num_nodes
    g = np.zeros((seq, bn, bn), np.float32)
    rows = np.arange(num_nodes)
    for s in range(seq):
        src = spiral_indices[:, s]
        for b in range(batch):
            g[s, b * num_nodes + rows, b * num_nodes + src] = 1.0
    return jnp.asarray(g, jnp.bfloat16)


# -----------------------------------------------------------------------------
# deterministic parameter construction (synthetic weights, no checkpoint load)
# -----------------------------------------------------------------------------
def init_params(key, enc_in, features_size, mlp_channels, gcn_channels,
                num_nodes, kpt_channels, seq_length, kpt_pad=128):
    ks = list(jax.random.split(key, 64))

    def pop():
        return ks.pop()

    def torch_default_linear(out_c, in_c):
        bound = 1.0 / float(np.sqrt(in_c))
        w = jax.random.uniform(pop(), (in_c, out_c), jnp.float32, -bound, bound)
        b = jax.random.uniform(pop(), (1, out_c), jnp.float32, -bound, bound)
        return w.astype(jnp.bfloat16), b

    def xavier_spiral(out_c, in_c, seq, pad_out=None):
        fan_in = in_c * seq
        bound = float(np.sqrt(6.0 / (fan_in + out_c)))
        w = jax.random.uniform(pop(), (fan_in, out_c), jnp.float32, -bound, bound)
        w3 = w.reshape(seq, in_c, out_c)                      # rows ordered (s, c)
        b = jnp.zeros((1, out_c), jnp.float32)                # constant_(bias, 0)
        if pad_out is not None and pad_out > out_c:
            w3 = jnp.pad(w3, ((0, 0), (0, 0), (0, pad_out - out_c)))
            b = jnp.pad(b, ((0, 0), (0, pad_out - out_c)))
        return w3.astype(jnp.bfloat16), b

    params = {}
    params["enc"] = torch_default_linear(features_size, enc_in)

    hidden = []
    prev = features_size
    for c in mlp_channels:
        hidden.append(torch_default_linear(c, prev))
        prev = c
    params["mlp_hidden"] = hidden
    params["mlp_out"] = torch_default_linear(1, prev)
    params["dec_lin"] = torch_default_linear(num_nodes * gcn_channels[-1],
                                             features_size)

    # SpiralConv (in, out) channels exactly as in kpts_decoder_temporal
    spiral_io = []
    for idx in range(len(gcn_channels)):
        if idx == 0:
            spiral_io.append((gcn_channels[-1], gcn_channels[-1]))
        else:
            spiral_io.append((gcn_channels[-idx], gcn_channels[-idx - 1]))
    spiral_io.append((gcn_channels[0], kpt_channels))

    spirals = []
    for li, (cin, cout) in enumerate(spiral_io):
        pad = kpt_pad if li == len(spiral_io) - 1 else None
        spirals.append(xavier_spiral(cout, cin, seq_length, pad_out=pad))
    params["spirals"] = spirals
    return params


# -----------------------------------------------------------------------------
# EFGCNTmp forward
# -----------------------------------------------------------------------------
def efgcn_tmp_forward(x, params, g_onehot, *, gcn_channels, num_nodes,
                      kpt_channels):
    B = x.shape[0]

    # ---- encoder ----
    # TODO(synk): the r3d_18 `video_encoder` backbone is not part of the provided
    # module source; stand-in is a K-tiled linear projection of the flattened
    # video to the feature vector (+ReLU).
    enc_w, enc_b = params["enc"]
    feats = encoder_linear(x.reshape(B, -1), enc_w, enc_b)

    # ---- EF regressor + dec_lin (fused head) ----
    # TODO(synk): the `MLP` class definition is not provided; implemented as a
    # Linear+ReLU stack over MLP_channels_ef with a final Linear(., 1), and
    # guiding_layer_ef = last hidden activation.
    c0 = gcn_channels[-1]
    ef, guiding_layer_ef, xk0 = head_forward(
        feats, params["mlp_hidden"], params["mlp_out"], params["dec_lin"],
        num_nodes, c0)

    # ---- kpts regressor (fused SpiralConv stack), activations kept flat ----
    xk0 = xk0.reshape(B * num_nodes, c0)
    kpts_pad = decoder_forward(xk0, g_onehot, params["spirals"])
    kpts = kpts_pad[:, :kpt_channels].reshape(B, num_nodes, kpt_channels)

    return ef, kpts, guiding_layer_ef


# -----------------------------------------------------------------------------
# pure-JAX reference (mirrors the bf16 matmul operands of the kernels)
# -----------------------------------------------------------------------------
def reference_forward(x, params, spiral_indices, gcn_channels, num_nodes,
                      kpt_channels):
    B = x.shape[0]
    bf16, f32 = jnp.bfloat16, jnp.float32

    def lin(a, w, b):
        return jnp.dot(a.astype(bf16), w, preferred_element_type=f32) + b

    feats = jnp.maximum(lin(x.reshape(B, -1), *params["enc"]), 0.0)
    h = feats
    for w, b in params["mlp_hidden"]:
        h = jnp.maximum(lin(h, w, b), 0.0)
    guiding = h
    ef = lin(h, *params["mlp_out"])
    xk = lin(feats, *params["dec_lin"]).reshape(B, num_nodes, gcn_channels[-1])
    idx_flat = jnp.asarray(spiral_indices.reshape(-1))
    n_sp = len(params["spirals"])
    for i, (w3, b) in enumerate(params["spirals"]):
        seq, cin, coutp = w3.shape
        g = jnp.take(xk, idx_flat, axis=1).reshape(B, num_nodes, seq * cin)
        out = jnp.dot(g.astype(bf16), w3.reshape(seq * cin, coutp),
                      preferred_element_type=f32) + b
        xk = _elu(out) if i != n_sp - 1 else out
    return ef, xk[:, :, :kpt_channels], guiding


if __name__ == "__main__":
    # small but structurally faithful shapes
    B, C, T, H, W = 2, 3, 4, 16, 16
    features_size = 128                     # lane-aligned stand-in for encoder.img_feature_size
    MLP_channels_ef = [16, 32, 32, 48]
    GCN_channels_kpts = [16, 32, 32, 48]
    tsteps = 2
    num_kpts = 40 * 2                       # as in EFGCNTmp.__init__
    kpt_channels = 2
    KPT_PAD = 128                           # lane-dense final store, sliced in wrapper

    spiral_indices = build_spiral_indices(num_kpts, tsteps)   # (80, 41)
    seq_length = spiral_indices.shape[1]
    g_onehot = build_gather_onehot(spiral_indices, B, num_kpts)

    key = jax.random.PRNGKey(0)
    k_in, k_par = jax.random.split(key)
    x = jax.random.normal(k_in, (B, C, T, H, W), jnp.float32)

    params = init_params(k_par, C * T * H * W, features_size, MLP_channels_ef,
                         GCN_channels_kpts, num_kpts, kpt_channels, seq_length,
                         kpt_pad=KPT_PAD)

    fwd = jax.jit(functools.partial(
        efgcn_tmp_forward, gcn_channels=tuple(GCN_channels_kpts),
        num_nodes=num_kpts, kpt_channels=kpt_channels))
    ef, kpts, guiding = fwd(x, params, g_onehot)
    jax.block_until_ready((ef, kpts, guiding))

    ef_r, kpts_r, guiding_r = reference_forward(
        x, params, spiral_indices, GCN_channels_kpts, num_kpts, kpt_channels)

    assert ef.shape == (B, 1), ef.shape
    assert kpts.shape == (B, num_kpts, kpt_channels), kpts.shape
    assert guiding.shape == (B, MLP_channels_ef[-1]), guiding.shape
    assert bool(jnp.all(jnp.isfinite(ef))) and bool(jnp.all(jnp.isfinite(kpts)))
    assert bool(jnp.allclose(ef, ef_r, rtol=1e-2, atol=1e-2))
    assert bool(jnp.allclose(guiding, guiding_r, rtol=1e-2, atol=1e-2))
    assert bool(jnp.allclose(kpts, kpts_r, rtol=1e-2, atol=1e-2))
    print("KERNEL_OK")
</pallas_src>

<mosaic_0001>
module attributes {stable_mosaic.version = 11 : i64} {
  func.func @_encoder_kernel(%arg0: i32, %arg1: memref<2x512xf32, #tpu.memory_space<vmem>>, %arg2: memref<512x128xbf16, #tpu.memory_space<vmem>>, %arg3: memref<1x128xf32, #tpu.memory_space<vmem>>, %arg4: memref<2x128xf32, #tpu.memory_space<vmem>>, %arg5: memref<2x128xf32, #tpu.memory_space<vmem>>) attributes {dimension_semantics = [#tpu.dimension_semantics<arbitrary>], iteration_bounds = array<i64: 6>, scalar_prefetch = 0 : i64, scratch_operands = 1 : i64, tpu.core_type = #tpu.core_type<tc>, window_params = [{transform_indices = @transform_0, window_bounds = array<i64: 2, 512>}, {transform_indices = @transform_1, window_bounds = array<i64: 512, 128>}, {pipeline_mode = #tpu.pipeline_mode<synchronous>, transform_indices = @transform_2, window_bounds = array<i64: 1, 128>}, {pipeline_mode = #tpu.pipeline_mode<synchronous>, transform_indices = @transform_3, window_bounds = array<i64: 2, 128>}]} {
    %c0_i32 = arith.constant 0 : i32
    %0 = arith.cmpi eq, %arg0, %c0_i32 : i32
    %1 = arith.extui %0 : i1 to i32
    %c0_i32_0 = arith.constant 0 : i32
    %2 = arith.cmpi ne, %1, %c0_i32_0 : i32
    scf.if %2 {
      %cst_9 = arith.constant 0.000000e+00 : f32
      %13 = vector.broadcast %cst_9 : f32 to vector<2x128xf32>
      %c0_10 = arith.constant 0 : index
      %c0_11 = arith.constant 0 : index
      %14 = vector.load %arg5[%c0_10, %c0_11] : memref<2x128xf32, #tpu.memory_space<vmem>>, vector<2x128xf32>
      tpu.vector_store %arg5[%c0_10, %c0_11], %13 {strides = array<i32>} : memref<2x128xf32, #tpu.memory_space<vmem>>, vector<2x128xf32>,
    } else {
    }
    %c0 = arith.constant 0 : index
    %c0_1 = arith.constant 0 : index
    %3 = vector.load %arg5[%c0, %c0_1] : memref<2x128xf32, #tpu.memory_space<vmem>>, vector<2x128xf32>
    %c0_2 = arith.constant 0 : index
    %c0_3 = arith.constant 0 : index
    %4 = vector.load %arg1[%c0_2, %c0_3] : memref<2x512xf32, #tpu.memory_space<vmem>>, vector<2x512xf32>
    %5 = arith.truncf %4 : vector<2x512xf32> to vector<2x512xbf16>
    %c0_4 = arith.constant 0 : index
    %c0_5 = arith.constant 0 : index
    %6 = vector.load %arg2[%c0_4, %c0_5] : memref<512x128xbf16, #tpu.memory_space<vmem>>, vector<512x128xbf16>
    %cst = arith.constant dense<0.000000e+00> : vector<2x128xf32>
    %7 = tpu.matmul %5, %6, %cst {dimension_numbers = #tpu.dot_dimension_numbers<[1], [0], [0], [1], [0, 0, 1, 1], [], []>} : vector<2x512xbf16>, vector<512x128xbf16>, vector<2x128xf32> -> vector<2x128xf32>
    %8 = arith.addf %3, %7 : vector<2x128xf32>
    %c0_6 = arith.constant 0 : index
    %c0_7 = arith.constant 0 : index
    %9 = vector.load %arg5[%c0_6, %c0_7] : memref<2x128xf32, #tpu.memory_space<vmem>>, vector<2x128xf32>
    tpu.vector_store %arg5[%c0_6, %c0_7], %8 {strides = array<i32>} : memref<2x128xf32, #tpu.memory_space<vmem>>, vector<2x128xf32>,
    %c5_i32 = arith.constant 5 : i32
    %10 = arith.cmpi eq, %arg0, %c5_i32 : i32
    %11 = arith.extui %10 : i1 to i32
    %c0_i32_8 = arith.constant 0 : i32
    %12 = arith.cmpi ne, %11, %c0_i32_8 : i32
    scf.if %12 {
      %c0_9 = arith.constant 0 : index
      %c0_10 = arith.constant 0 : index
      %13 = vector.load %arg5[%c0_9, %c0_10] : memref<2x128xf32, #tpu.memory_space<vmem>>, vector<2x128xf32>
      %c0_11 = arith.constant 0 : index
      %c0_12 = arith.constant 0 : index
      %14 = vector.load %arg3[%c0_11, %c0_12] : memref<1x128xf32, #tpu.memory_space<vmem>>, vector<1x128xf32>
      %15 = vector.broadcast %14 : vector<1x128xf32> to vector<2x128xf32>
      %16 = arith.addf %13, %15 : vector<2x128xf32>
      %cst_13 = arith.constant 0.000000e+00 : f32
      %17 = vector.broadcast %cst_13 : f32 to vector<2x128xf32>
      %18 = arith.maximumf %16, %17 : vector<2x128xf32>
      %c0_14 = arith.constant 0 : index
      %c0_15 = arith.constant 0 : index
      %19 = vector.load %arg4[%c0_14, %c0_15] : memref<2x128xf32, #tpu.memory_space<vmem>>, vector<2x128xf32>
      tpu.vector_store %arg4[%c0_14, %c0_15], %18 {strides = array<i32>} : memref<2x128xf32, #tpu.memory_space<vmem>>, vector<2x128xf32>,
    } else {
    }
    return
  }
  func.func @transform_0(%arg0: i32) -> (i32, i32) {
    %c0_i32 = arith.constant 0 : i32
    %c0_i32_0 = arith.constant 0 : i32
    return %c0_i32, %arg0 : i32, i32
  }
  func.func @transform_1(%arg0: i32) -> (i32, i32) {
    %c0_i32 = arith.constant 0 : i32
    %c0_i32_0 = arith.constant 0 : i32
    return %arg0, %c0_i32 : i32, i32
  }
  func.func @transform_2(%arg0: i32) -> (i32, i32) {
    %c0_i32 = arith.constant 0 : i32
    %c0_i32_0 = arith.constant 0 : i32
    %c0_i32_1 = arith.constant 0 : i32
    return %c0_i32, %c0_i32_0 : i32, i32
  }
  func.func @transform_3(%arg0: i32) -> (i32, i32) {
    %c0_i32 = arith.constant 0 : i32
    %c0_i32_0 = arith.constant 0 : i32
    %c0_i32_1 = arith.constant 0 : i32
    return %c0_i32, %c0_i32_0 : i32, i32
  }
}

module attributes {stable_mosaic.version = 11 : i64} {
  func.func @_head_kernel(%arg0: i32, %arg1: memref<2x128xf32, #tpu.memory_space<vmem>>, %arg2: memref<128x16xbf16, #tpu.memory_space<vmem>>, %arg3: memref<1x16xf32, #tpu.memory_space<vmem>>, %arg4: memref<16x32xbf16, #tpu.memory_space<vmem>>, %arg5: memref<1x32xf32, #tpu.memory_space<vmem>>, %arg6: memref<32x32xbf16, #tpu.memory_space<vmem>>, %arg7: memref<1x32xf32, #tpu.memory_space<vmem>>, %arg8: memref<32x48xbf16, #tpu.memory_space<vmem>>, %arg9: memref<1x48xf32, #tpu.memory_space<vmem>>, %arg10: memref<48x1xbf16, #tpu.memory_space<vmem>>, %arg11: memref<1x1xf32, #tpu.memory_space<vmem>>, %arg12: memref<128x3840xbf16, #tpu.memory_space<vmem>>, %arg13: memref<1x3840xf32, #tpu.memory_space<vmem>>, %arg14: memref<2x1xf32, #tpu.memory_space<vmem>>, %arg15: memref<2x48xf32, #tpu.memory_space<vmem>>, %arg16: memref<2x3840xf32, #tpu.memory_space<vmem>>) attributes {dimension_semantics = [#tpu.dimension_semantics<arbitrary>], iteration_bounds = array<i64: 1>, scalar_prefetch = 0 : i64, scratch_operands = 0 : i64, tpu.core_type = #tpu.core_type<tc>, window_params = [{pipeline_mode = #tpu.pipeline_mode<synchronous>, transform_indices = @transform_0, window_bounds = array<i64: 2, 128>}, {pipeline_mode = #tpu.pipeline_mode<synchronous>, transform_indices = @transform_1, window_bounds = array<i64: 128, 16>}, {pipeline_mode = #tpu.pipeline_mode<synchronous>, transform_indices = @transform_2, window_bounds = array<i64: 1, 16>}, {pipeline_mode = #tpu.pipeline_mode<synchronous>, transform_indices = @transform_3, window_bounds = array<i64: 16, 32>}, {pipeline_mode = #tpu.pipeline_mode<synchronous>, transform_indices = @transform_4, window_bounds = array<i64: 1, 32>}, {pipeline_mode = #tpu.pipeline_mode<synchronous>, transform_indices = @transform_5, window_bounds = array<i64: 32, 32>}, {pipeline_mode = #tpu.pipeline_mode<synchronous>, transform_indices = @transform_6, window_bounds = array<i64: 1, 32>}, {pipeline_mode = #tpu.pipeline_mode<synchronous>, transform_indices = @transform_7, window_bounds = array<i64: 32, 48>}, {pipeline_mode = #tpu.pipeline_mode<synchronous>, transform_indices = @transform_8, window_bounds = array<i64: 1, 48>}, {pipeline_mode = #tpu.pipeline_mode<synchronous>, transform_indices = @transform_9, window_bounds = array<i64: 48, 1>}, {pipeline_mode = #tpu.pipeline_mode<synchronous>, transform_indices = @transform_10, window_bounds = array<i64: 1, 1>}, {pipeline_mode = #tpu.pipeline_mode<synchronous>, transform_indices = @transform_11, window_bounds = array<i64: 128, 3840>}, {pipeline_mode = #tpu.pipeline_mode<synchronous>, transform_indices = @transform_12, window_bounds = array<i64: 1, 3840>}, {pipeline_mode = #tpu.pipeline_mode<synchronous>, transform_indices = @transform_13, window_bounds = array<i64: 2, 1>}, {pipeline_mode = #tpu.pipeline_mode<synchronous>, transform_indices = @transform_14, window_bounds = array<i64: 2, 48>}, {pipeline_mode = #tpu.pipeline_mode<synchronous>, transform_indices = @transform_15, window_bounds = array<i64: 2, 3840>}]} {
    %c0 = arith.constant 0 : index
    %c0_0 = arith.constant 0 : index
    %0 = vector.load %arg1[%c0, %c0_0] : memref<2x128xf32, #tpu.memory_space<vmem>>, vector<2x128xf32>
    %c0_1 = arith.constant 0 : index
    %c0_2 = arith.constant 0 : index
    %1 = vector.load %arg2[%c0_1, %c0_2] : memref<128x16xbf16, #tpu.memory_space<vmem>>, vector<128x16xbf16>
    %c0_3 = arith.constant 0 : index
    %c0_4 = arith.constant 0 : index
    %2 = vector.load %arg3[%c0_3, %c0_4] : memref<1x16xf32, #tpu.memory_space<vmem>>, vector<1x16xf32>
    %3 = arith.truncf %0 : vector<2x128xf32> to vector<2x128xbf16>
    %cst = arith.constant dense<0.000000e+00> : vector<2x16xf32>
    %4 = tpu.matmul %3, %1, %cst {dimension_numbers = #tpu.dot_dimension_numbers<[1], [0], [0], [1], [0, 0, 1, 1], [], []>} : vector<2x128xbf16>, vector<128x16xbf16>, vector<2x16xf32> -> vector<2x16xf32>
    %5 = vector.broadcast %2 : vector<1x16xf32> to vector<2x16xf32>
    %6 = arith.addf %4, %5 : vector<2x16xf32>
    %cst_5 = arith.constant 0.000000e+00 : f32
    %7 = vector.broadcast %cst_5 : f32 to vector<2x16xf32>
    %8 = arith.maximumf %6, %7 : vector<2x16xf32>
    %c0_6 = arith.constant 0 : index
    %c0_7 = arith.constant 0 : index
    %9 = vector.load %arg4[%c0_6, %c0_7] : memref<16x32xbf16, #tpu.memory_space<vmem>>, vector<16x32xbf16>
    %c0_8 = arith.constant 0 : index
    %c0_9 = arith.constant 0 : index
    %10 = vector.load %arg5[%c0_8, %c0_9] : memref<1x32xf32, #tpu.memory_space<vmem>>, vector<1x32xf32>
    %11 = arith.truncf %8 : vector<2x16xf32> to vector<2x16xbf16>
    %cst_10 = arith.constant dense<0.000000e+00> : vector<2x32xf32>
    %12 = tpu.matmul %11, %9, %cst_10 {dimension_numbers = #tpu.dot_dimension_numbers<[1], [0], [0], [1], [0, 0, 1, 1], [], []>} : vector<2x16xbf16>, vector<16x32xbf16>, vector<2x32xf32> -> vector<2x32xf32>
    %13 = vector.broadcast %10 : vector<1x32xf32> to vector<2x32xf32>
    %14 = arith.addf %12, %13 : vector<2x32xf32>
    %cst_11 = arith.constant 0.000000e+00 : f32
    %15 = vector.broadcast %cst_11 : f32 to vector<2x32xf32>
    %16 = arith.maximumf %14, %15 : vector<2x32xf32>
    %c0_12 = arith.constant 0 : index
    %c0_13 = arith.constant 0 : index
    %17 = vector.load %arg6[%c0_12, %c0_13] : memref<32x32xbf16, #tpu.memory_space<vmem>>, vector<32x32xbf16>
    %c0_14 = arith.constant 0 : index
    %c0_15 = arith.constant 0 : index
    %18 = vector.load %arg7[%c0_14, %c0_15] : memref<1x32xf32, #tpu.memory_space<vmem>>, vector<1x32xf32>
    %19 = arith.truncf %16 : vector<2x32xf32> to vector<2x32xbf16>
    %cst_16 = arith.constant dense<0.000000e+00> : vector<2x32xf32>
    %20 = tpu.matmul %19, %17, %cst_16 {dimension_numbers = #tpu.dot_dimension_numbers<[1], [0], [0], [1], [0, 0, 1, 1], [], []>} : vector<2x32xbf16>, vector<32x32xbf16>, vector<2x32xf32> -> vector<2x32xf32>
    %21 = vector.broadcast %18 : vector<1x32xf32> to vector<2x32xf32>
    %22 = arith.addf %20, %21 : vector<2x32xf32>
    %cst_17 = arith.constant 0.000000e+00 : f32
    %23 = vector.broadcast %cst_17 : f32 to vector<2x32xf32>
    %24 = arith.maximumf %22, %23 : vector<2x32xf32>
    %c0_18 = arith.constant 0 : index
    %c0_19 = arith.constant 0 : index
    %25 = vector.load %arg8[%c0_18, %c0_19] : memref<32x48xbf16, #tpu.memory_space<vmem>>, vector<32x48xbf16>
    %c0_20 = arith.constant 0 : index
    %c0_21 = arith.constant 0 : index
    %26 = vector.load %arg9[%c0_20, %c0_21] : memref<1x48xf32, #tpu.memory_space<vmem>>, vector<1x48xf32>
    %27 = arith.truncf %24 : vector<2x32xf32> to vector<2x32xbf16>
    %cst_22 = arith.constant dense<0.000000e+00> : vector<2x48xf32>
    %28 = tpu.matmul %27, %25, %cst_22 {dimension_numbers = #tpu.dot_dimension_numbers<[1], [0], [0], [1], [0, 0, 1, 1], [], []>} : vector<2x32xbf16>, vector<32x48xbf16>, vector<2x48xf32> -> vector<2x48xf32>
    %29 = vector.broadcast %26 : vector<1x48xf32> to vector<2x48xf32>
    %30 = arith.addf %28, %29 : vector<2x48xf32>
    %cst_23 = arith.constant 0.000000e+00 : f32
    %31 = vector.broadcast %cst_23 : f32 to vector<2x48xf32>
    %32 = arith.maximumf %30, %31 : vector<2x48xf32>
    %c0_24 = arith.constant 0 : index
    %c0_25 = arith.constant 0 : index
    %33 = vector.load %arg15[%c0_24, %c0_25] : memref<2x48xf32, #tpu.memory_space<vmem>>, vector<2x48xf32>
    tpu.vector_store %arg15[%c0_24, %c0_25], %32 {strides = array<i32>} : memref<2x48xf32, #tpu.memory_space<vmem>>, vector<2x48xf32>,
    %34 = arith.truncf %32 : vector<2x48xf32> to vector<2x48xbf16>
    %c0_26 = arith.constant 0 : index
    %c0_27 = arith.constant 0 : index
    %35 = vector.load %arg10[%c0_26, %c0_27] : memref<48x1xbf16, #tpu.memory_space<vmem>>, vector<48x1xbf16>
    %cst_28 = arith.constant dense<0.000000e+00> : vector<2x1xf32>
    %36 = tpu.matmul %34, %35, %cst_28 {dimension_numbers = #tpu.dot_dimension_numbers<[1], [0], [0], [1], [0, 0, 1, 1], [], []>} : vector<2x48xbf16>, vector<48x1xbf16>, vector<2x1xf32> -> vector<2x1xf32>
    %c0_29 = arith.constant 0 : index
    %c0_30 = arith.constant 0 : index
    %37 = vector.load %arg11[%c0_29, %c0_30] : memref<1x1xf32, #tpu.memory_space<vmem>>, vector<1x1xf32>
    %38 = vector.broadcast %37 : vector<1x1xf32> to vector<2x1xf32>
    %39 = arith.addf %36, %38 : vector<2x1xf32>
    %c0_31 = arith.constant 0 : index
    %c0_32 = arith.constant 0 : index
    %40 = vector.load %arg14[%c0_31, %c0_32] : memref<2x1xf32, #tpu.memory_space<vmem>>, vector<2x1xf32>
    tpu.vector_store %arg14[%c0_31, %c0_32], %39 {strides = array<i32>} : memref<2x1xf32, #tpu.memory_space<vmem>>, vector<2x1xf32>,
    %41 = arith.truncf %0 : vector<2x128xf32> to vector<2x128xbf16>
    %c0_33 = arith.constant 0 : index
    %c0_34 = arith.constant 0 : index
    %42 = vector.load %arg12[%c0_33, %c0_34] : memref<128x3840xbf16, #tpu.memory_space<vmem>>, vector<128x3840xbf16>
    %cst_35 = arith.constant dense<0.000000e+00> : vector<2x3840xf32>
    %43 = tpu.matmul %41, %42, %cst_35 {dimension_numbers = #tpu.dot_dimension_numbers<[1], [0], [0], [1], [0, 0, 1, 1], [], []>} : vector<2x128xbf16>, vector<128x3840xbf16>, vector<2x3840xf32> -> vector<2x3840xf32>
    %c0_36 = arith.constant 0 : index
    %c0_37 = arith.constant 0 : index
    %44 = vector.load %arg13[%c0_36, %c0_37] : memref<1x3840xf32, #tpu.memory_space<vmem>>, vector<1x3840xf32>
    %45 = vector.broadcast %44 : vector<1x3840xf32> to vector<2x3840xf32>
    %46 = arith.addf %43, %45 : vector<2x3840xf32>
    %c0_38 = arith.constant 0 : index
    %c0_39 = arith.constant 0 : index
    %47 = vector.load %arg16[%c0_38, %c0_39] : memref<2x3840xf32, #tpu.memory_space<vmem>>, vector<2x3840xf32>
    tpu.vector_store %arg16[%c0_38, %c0_39], %46 {strides = array<i32>} : memref<2x3840xf32, #tpu.memory_space<vmem>>, vector<2x3840xf32>,
    return
  }
  func.func @transform_0(%arg0: i32) -> (i32, i32) {
    %c0_i32 = arith.constant 0 : i32
    %c0_i32_0 = arith.constant 0 : i32
    %c0_i32_1 = arith.constant 0 : i32
    return %c0_i32, %c0_i32_0 : i32, i32
  }
  func.func @transform_1(%arg0: i32) -> (i32, i32) {
    %c0_i32 = arith.constant 0 : i32
    %c0_i32_0 = arith.constant 0 : i32
    %c0_i32_1 = arith.constant 0 : i32
    return %c0_i32, %c0_i32_0 : i32, i32
  }
  func.func @transform_2(%arg0: i32) -> (i32, i32) {
    %c0_i32 = arith.constant 0 : i32
    %c0_i32_0 = arith.constant 0 : i32
    %c0_i32_1 = arith.constant 0 : i32
    return %c0_i32, %c0_i32_0 : i32, i32
  }
  func.func @transform_3(%arg0: i32) -> (i32, i32) {
    %c0_i32 = arith.constant 0 : i32
    %c0_i32_0 = arith.constant 0 : i32
    %c0_i32_1 = arith.constant 0 : i32
    return %c0_i32, %c0_i32_0 : i32, i32
  }
  func.func @transform_4(%arg0: i32) -> (i32, i32) {
    %c0_i32 = arith.constant 0 : i32
    %c0_i32_0 = arith.constant 0 : i32
    %c0_i32_1 = arith.constant 0 : i32
    return %c0_i32, %c0_i32_0 : i32, i32
  }
  func.func @transform_5(%arg0: i32) -> (i32, i32) {
    %c0_i32 = arith.constant 0 : i32
    %c0_i32_0 = arith.constant 0 : i32
    %c0_i32_1 = arith.constant 0 : i32
    return %c0_i32, %c0_i32_0 : i32, i32
  }
  func.func @transform_6(%arg0: i32) -> (i32, i32) {
    %c0_i32 = arith.constant 0 : i32
    %c0_i32_0 = arith.constant 0 : i32
    %c0_i32_1 = arith.constant 0 : i32
    return %c0_i32, %c0_i32_0 : i32, i32
  }
  func.func @transform_7(%arg0: i32) -> (i32, i32) {
    %c0_i32 = arith.constant 0 : i32
    %c0_i32_0 = arith.constant 0 : i32
    %c0_i32_1 = arith.constant 0 : i32
    return %c0_i32, %c0_i32_0 : i32, i32
  }
  func.func @transform_8(%arg0: i32) -> (i32, i32) {
    %c0_i32 = arith.constant 0 : i32
    %c0_i32_0 = arith.constant 0 : i32
    %c0_i32_1 = arith.constant 0 : i32
    return %c0_i32, %c0_i32_0 : i32, i32
  }
  func.func @transform_9(%arg0: i32) -> (i32, i32) {
    %c0_i32 = arith.constant 0 : i32
    %c0_i32_0 = arith.constant 0 : i32
    %c0_i32_1 = arith.constant 0 : i32
    return %c0_i32, %c0_i32_0 : i32, i32
  }
  func.func @transform_10(%arg0: i32) -> (i32, i32) {
    %c0_i32 = arith.constant 0 : i32
    %c0_i32_0 = arith.constant 0 : i32
    %c0_i32_1 = arith.constant 0 : i32
    return %c0_i32, %c0_i32_0 : i32, i32
  }
  func.func @transform_11(%arg0: i32) -> (i32, i32) {
    %c0_i32 = arith.constant 0 : i32
    %c0_i32_0 = arith.constant 0 : i32
    %c0_i32_1 = arith.constant 0 : i32
    return %c0_i32, %c0_i32_0 : i32, i32
  }
  func.func @transform_12(%arg0: i32) -> (i32, i32) {
    %c0_i32 = arith.constant 0 : i32
    %c0_i32_0 = arith.constant 0 : i32
    %c0_i32_1 = arith.constant 0 : i32
    return %c0_i32, %c0_i32_0 : i32, i32
  }
  func.func @transform_13(%arg0: i32) -> (i32, i32) {
    %c0_i32 = arith.constant 0 : i32
    %c0_i32_0 = arith.constant 0 : i32
    %c0_i32_1 = arith.constant 0 : i32
    return %c0_i32, %c0_i32_0 : i32, i32
  }
  func.func @transform_14(%arg0: i32) -> (i32, i32) {
    %c0_i32 = arith.constant 0 : i32
    %c0_i32_0 = arith.constant 0 : i32
    %c0_i32_1 = arith.constant 0 : i32
    return %c0_i32, %c0_i32_0 : i32, i32
  }
  func.func @transform_15(%arg0: i32) -> (i32, i32) {
    %c0_i32 = arith.constant 0 : i32
    %c0_i32_0 = arith.constant 0 : i32
    %c0_i32_1 = arith.constant 0 : i32
    return %c0_i32, %c0_i32_0 : i32, i32
  }
}

module attributes {stable_mosaic.version = 11 : i64} {
  func.func @_decoder_kernel(%arg0: i32, %arg1: memref<160x48xf32, #tpu.memory_space<vmem>>, %arg2: memref<41x160x160xbf16, #tpu.memory_space<vmem>>, %arg3: memref<41x48x48xbf16, #tpu.memory_space<vmem>>, %arg4: memref<1x48xf32, #tpu.memory_space<vmem>>, %arg5: memref<41x48x32xbf16, #tpu.memory_space<vmem>>, %arg6: memref<1x32xf32, #tpu.memory_space<vmem>>, %arg7: memref<41x32x32xbf16, #tpu.memory_space<vmem>>, %arg8: memref<1x32xf32, #tpu.memory_space<vmem>>, %arg9: memref<41x32x16xbf16, #tpu.memory_space<vmem>>, %arg10: memref<1x16xf32, #tpu.memory_space<vmem>>, %arg11: memref<41x16x128xbf16, #tpu.memory_space<vmem>>, %arg12: memref<1x128xf32, #tpu.memory_space<vmem>>, %arg13: memref<160x128xf32, #tpu.memory_space<vmem>>) attributes {dimension_semantics = [#tpu.dimension_semantics<arbitrary>], iteration_bounds = array<i64: 1>, scalar_prefetch = 0 : i64, scratch_operands = 0 : i64, tpu.core_type = #tpu.core_type<tc>, window_params = [{pipeline_mode = #tpu.pipeline_mode<synchronous>, transform_indices = @transform_0, window_bounds = array<i64: 160, 48>}, {pipeline_mode = #tpu.pipeline_mode<synchronous>, transform_indices = @transform_1, window_bounds = array<i64: 41, 160, 160>}, {pipeline_mode = #tpu.pipeline_mode<synchronous>, transform_indices = @transform_2, window_bounds = array<i64: 41, 48, 48>}, {pipeline_mode = #tpu.pipeline_mode<synchronous>, transform_indices = @transform_3, window_bounds = array<i64: 1, 48>}, {pipeline_mode = #tpu.pipeline_mode<synchronous>, transform_indices = @transform_4, window_bounds = array<i64: 41, 48, 32>}, {pipeline_mode = #tpu.pipeline_mode<synchronous>, transform_indices = @transform_5, window_bounds = array<i64: 1, 32>}, {pipeline_mode = #tpu.pipeline_mode<synchronous>, transform_indices = @transform_6, window_bounds = array<i64: 41, 32, 32>}, {pipeline_mode = #tpu.pipeline_mode<synchronous>, transform_indices = @transform_7, window_bounds = array<i64: 1, 32>}, {pipeline_mode = #tpu.pipeline_mode<synchronous>, transform_indices = @transform_8, window_bounds = array<i64: 41, 32, 16>}, {pipeline_mode = #tpu.pipeline_mode<synchronous>, transform_indices = @transform_9, window_bounds = array<i64: 1, 16>}, {pipeline_mode = #tpu.pipeline_mode<synchronous>, transform_indices = @transform_10, window_bounds = array<i64: 41, 16, 128>}, {pipeline_mode = #tpu.pipeline_mode<synchronous>, transform_indices = @transform_11, window_bounds = array<i64: 1, 128>}, {pipeline_mode = #tpu.pipeline_mode<synchronous>, transform_indices = @transform_12, window_bounds = array<i64: 160, 128>}]} {
    %c0 = arith.constant 0 : index
    %c0_0 = arith.constant 0 : index
    %0 = vector.load %arg1[%c0, %c0_0] : memref<160x48xf32, #tpu.memory_space<vmem>>, vector<160x48xf32>
    %1 = arith.truncf %0 : vector<160x48xf32> to vector<160x48xbf16>
    %c0_1 = arith.constant 0 : index
    %c0_2 = arith.constant 0 : index
    %2 = vector.load %arg4[%c0_1, %c0_2] : memref<1x48xf32, #tpu.memory_space<vmem>>, vector<1x48xf32>
    %3 = vector.shape_cast %2 : vector<1x48xf32> to vector<1x48xf32>
    %4 = vector.broadcast %3 : vector<1x48xf32> to vector<160x48xf32>
    %c0_i32 = arith.constant 0 : i32
    %c41_i32 = arith.constant 41 : i32
    %5 = arith.addi %c0_i32, %c41_i32 : i32
    %c1_i32 = arith.constant 1 : i32
    %6 = scf.for %arg14 = %c0_i32 to %5 step %c1_i32 iter_args(%arg15 = %4) -> (vector<160x48xf32>)  : i32 {
      %64 = arith.index_cast %arg14 : i32 to index
      %c0_41 = arith.constant 0 : index
      %c0_42 = arith.constant 0 : index
      %65 = vector.load %arg2[%64, %c0_41, %c0_42] : memref<41x160x160xbf16, #tpu.memory_space<vmem>>, vector<1x160x160xbf16>
      %66 = vector.shape_cast %65 : vector<1x160x160xbf16> to vector<160x160xbf16>
      %67 = arith.index_cast %arg14 : i32 to index
      %c0_43 = arith.constant 0 : index
      %c0_44 = arith.constant 0 : index
      %68 = vector.load %arg3[%67, %c0_43, %c0_44] : memref<41x48x48xbf16, #tpu.memory_space<vmem>>, vector<1x48x48xbf16>
      %69 = vector.shape_cast %68 : vector<1x48x48xbf16> to vector<48x48xbf16>
      %cst_45 = arith.constant dense<0.000000e+00> : vector<160x48xf32>
      %70 = tpu.matmul %66, %1, %cst_45 {dimension_numbers = #tpu.dot_dimension_numbers<[1], [0], [0], [1], [0, 0, 1, 1], [], []>} : vector<160x160xbf16>, vector<160x48xbf16>, vector<160x48xf32> -> vector<160x48xf32>
      %71 = arith.truncf %70 : vector<160x48xf32> to vector<160x48xbf16>
      %cst_46 = arith.constant dense<0.000000e+00> : vector<160x48xf32>
      %72 = tpu.matmul %71, %69, %cst_46 {dimension_numbers = #tpu.dot_dimension_numbers<[1], [0], [0], [1], [0, 0, 1, 1], [], []>} : vector<160x48xbf16>, vector<48x48xbf16>, vector<160x48xf32> -> vector<160x48xf32>
      %73 = arith.addf %arg15, %72 : vector<160x48xf32>
      scf.yield %73 : vector<160x48xf32>
    }
    %c41_i32_3 = arith.constant 41 : i32
    %cst = arith.constant 0.000000e+00 : f32
    %7 = vector.broadcast %cst : f32 to vector<160x48xf32>
    %8 = arith.cmpf ogt, %6, %7 : vector<160x48xf32>
    %cst_4 = arith.constant 0.000000e+00 : f32
    %9 = vector.broadcast %cst_4 : f32 to vector<160x48xf32>
    %10 = arith.minimumf %6, %9 : vector<160x48xf32>
    %11 = math.exp %10 : vector<160x48xf32>
    %cst_5 = arith.constant 1.000000e+00 : f32
    %12 = vector.broadcast %cst_5 : f32 to vector<160x48xf32>
    %13 = arith.subf %11, %12 : vector<160x48xf32>
    %14 = arith.select %8, %6, %13 : vector<160x48xi1>, vector<160x48xf32>
    %15 = arith.truncf %14 : vector<160x48xf32> to vector<160x48xbf16>
    %c0_6 = arith.constant 0 : index
    %c0_7 = arith.constant 0 : index
    %16 = vector.load %arg6[%c0_6, %c0_7] : memref<1x32xf32, #tpu.memory_space<vmem>>, vector<1x32xf32>
    %17 = vector.shape_cast %16 : vector<1x32xf32> to vector<1x32xf32>
    %18 = vector.broadcast %17 : vector<1x32xf32> to vector<160x32xf32>
    %c0_i32_8 = arith.constant 0 : i32
    %c41_i32_9 = arith.constant 41 : i32
    %19 = arith.addi %c0_i32_8, %c41_i32_9 : i32
    %c1_i32_10 = arith.constant 1 : i32
    %20 = scf.for %arg14 = %c0_i32_8 to %19 step %c1_i32_10 iter_args(%arg15 = %18) -> (vector<160x32xf32>)  : i32 {
      %64 = arith.index_cast %arg14 : i32 to index
      %c0_41 = arith.constant 0 : index
      %c0_42 = arith.constant 0 : index
      %65 = vector.load %arg2[%64, %c0_41, %c0_42] : memref<41x160x160xbf16, #tpu.memory_space<vmem>>, vector<1x160x160xbf16>
      %66 = vector.shape_cast %65 : vector<1x160x160xbf16> to vector<160x160xbf16>
      %67 = arith.index_cast %arg14 : i32 to index
      %c0_43 = arith.constant 0 : index
      %c0_44 = arith.constant 0 : index
      %68 = vector.load %arg5[%67, %c0_43, %c0_44] : memref<41x48x32xbf16, #tpu.memory_space<vmem>>, vector<1x48x32xbf16>
      %69 = vector.shape_cast %68 : vector<1x48x32xbf16> to vector<48x32xbf16>
      %cst_45 = arith.constant dense<0.000000e+00> : vector<160x48xf32>
      %70 = tpu.matmul %66, %15, %cst_45 {dimension_numbers = #tpu.dot_dimension_numbers<[1], [0], [0], [1], [0, 0, 1, 1], [], []>} : vector<160x160xbf16>, vector<160x48xbf16>, vector<160x48xf32> -> vector<160x48xf32>
      %71 = arith.truncf %70 : vector<160x48xf32> to vector<160x48xbf16>
      %cst_46 = arith.constant dense<0.000000e+00> : vector<160x32xf32>
      %72 = tpu.matmul %71, %69, %cst_46 {dimension_numbers = #tpu.dot_dimension_numbers<[1], [0], [0], [1], [0, 0, 1, 1], [], []>} : vector<160x48xbf16>, vector<48x32xbf16>, vector<160x32xf32> -> vector<160x32xf32>
      %73 = arith.addf %arg15, %72 : vector<160x32xf32>
      scf.yield %73 : vector<160x32xf32>
    }
    %c41_i32_11 = arith.constant 41 : i32
    %cst_12 = arith.constant 0.000000e+00 : f32
    %21 = vector.broadcast %cst_12 : f32 to vector<160x32xf32>
    %22 = arith.cmpf ogt, %20, %21 : vector<160x32xf32>
    %cst_13 = arith.constant 0.000000e+00 : f32
    %23 = vector.broadcast %cst_13 : f32 to vector<160x32xf32>
    %24 = arith.minimumf %20, %23 : vector<160x32xf32>
    %25 = math.exp %24 : vector<160x32xf32>
    %cst_14 = arith.constant 1.000000e+00 : f32
    %26 = vector.broadcast %cst_14 : f32 to vector<160x32xf32>
    %27 = arith.subf %25, %26 : vector<160x32xf32>
    %28 = arith.select %22, %20, %27 : vector<160x32xi1>, vector<160x32xf32>
    %29 = arith.truncf %28 : vector<160x32xf32> to vector<160x32xbf16>
    %c0_15 = arith.constant 0 : index
    %c0_16 = arith.constant 0 : index
    %30 = vector.load %arg8[%c0_15, %c0_16] : memref<1x32xf32, #tpu.memory_space<vmem>>, vector<1x32xf32>
    %31 = vector.shape_cast %30 : vector<1x32xf32> to vector<1x32xf32>
    %32 = vector.broadcast %31 : vector<1x32xf32> to vector<160x32xf32>
    %c0_i32_17 = arith.constant 0 : i32
    %c41_i32_18 = arith.constant 41 : i32
    %33 = arith.addi %c0_i32_17, %c41_i32_18 : i32
    %c1_i32_19 = arith.constant 1 : i32
    %34 = scf.for %arg14 = %c0_i32_17 to %33 step %c1_i32_19 iter_args(%arg15 = %32) -> (vector<160x32xf32>)  : i32 {
      %64 = arith.index_cast %arg14 : i32 to index
      %c0_41 = arith.constant 0 : index
      %c0_42 = arith.constant 0 : index
      %65 = vector.load %arg2[%64, %c0_41, %c0_42] : memref<41x160x160xbf16, #tpu.memory_space<vmem>>, vector<1x160x160xbf16>
      %66 = vector.shape_cast %65 : vector<1x160x160xbf16> to vector<160x160xbf16>
      %67 = arith.index_cast %arg14 : i32 to index
      %c0_43 = arith.constant 0 : index
      %c0_44 = arith.constant 0 : index
      %68 = vector.load %arg7[%67, %c0_43, %c0_44] : memref<41x32x32xbf16, #tpu.memory_space<vmem>>, vector<1x32x32xbf16>
      %69 = vector.shape_cast %68 : vector<1x32x32xbf16> to vector<32x32xbf16>
      %cst_45 = arith.constant dense<0.000000e+00> : vector<160x32xf32>
      %70 = tpu.matmul %66, %29, %cst_45 {dimension_numbers = #tpu.dot_dimension_numbers<[1], [0], [0], [1], [0, 0, 1, 1], [], []>} : vector<160x160xbf16>, vector<160x32xbf16>, vector<160x32xf32> -> vector<160x32xf32>
      %71 = arith.truncf %70 : vector<160x32xf32> to vector<160x32xbf16>
      %cst_46 = arith.constant dense<0.000000e+00> : vector<160x32xf32>
      %72 = tpu.matmul %71, %69, %cst_46 {dimension_numbers = #tpu.dot_dimension_numbers<[1], [0], [0], [1], [0, 0, 1, 1], [], []>} : vector<160x32xbf16>, vector<32x32xbf16>, vector<160x32xf32> -> vector<160x32xf32>
      %73 = arith.addf %arg15, %72 : vector<160x32xf32>
      scf.yield %73 : vector<160x32xf32>
    }
    %c41_i32_20 = arith.constant 41 : i32
    %cst_21 = arith.constant 0.000000e+00 : f32
    %35 = vector.broadcast %cst_21 : f32 to vector<160x32xf32>
    %36 = arith.cmpf ogt, %34, %35 : vector<160x32xf32>
    %cst_22 = arith.constant 0.000000e+00 : f32
    %37 = vector.broadcast %cst_22 : f32 to vector<160x32xf32>
    %38 = arith.minimumf %34, %37 : vector<160x32xf32>
    %39 = math.exp %38 : vector<160x32xf32>
    %cst_23 = arith.constant 1.000000e+00 : f32
    %40 = vector.broadcast %cst_23 : f32 to vector<160x32xf32>
    %41 = arith.subf %39, %40 : vector<160x32xf32>
    %42 = arith.select %36, %34, %41 : vector<160x32xi1>, vector<160x32xf32>
    %43 = arith.truncf %42 : vector<160x32xf32> to vector<160x32xbf16>
    %c0_24 = arith.constant 0 : index
    %c0_25 = arith.constant 0 : index
    %44 = vector.load %arg10[%c0_24, %c0_25] : memref<1x16xf32, #tpu.memory_space<vmem>>, vector<1x16xf32>
    %45 = vector.shape_cast %44 : vector<1x16xf32> to vector<1x16xf32>
    %46 = vector.broadcast %45 : vector<1x16xf32> to vector<160x16xf32>
    %c0_i32_26 = arith.constant 0 : i32
    %c41_i32_27 = arith.constant 41 : i32
    %47 = arith.addi %c0_i32_26, %c41_i32_27 : i32
    %c1_i32_28 = arith.constant 1 : i32
    %48 = scf.for %arg14 = %c0_i32_26 to %47 step %c1_i32_28 iter_args(%arg15 = %46) -> (vector<160x16xf32>)  : i32 {
      %64 = arith.index_cast %arg14 : i32 to index
      %c0_41 = arith.constant 0 : index
      %c0_42 = arith.constant 0 : index
      %65 = vector.load %arg2[%64, %c0_41, %c0_42] : memref<41x160x160xbf16, #tpu.memory_space<vmem>>, vector<1x160x160xbf16>
      %66 = vector.shape_cast %65 : vector<1x160x160xbf16> to vector<160x160xbf16>
      %67 = arith.index_cast %arg14 : i32 to index
      %c0_43 = arith.constant 0 : index
      %c0_44 = arith.constant 0 : index
      %68 = vector.load %arg9[%67, %c0_43, %c0_44] : memref<41x32x16xbf16, #tpu.memory_space<vmem>>, vector<1x32x16xbf16>
      %69 = vector.shape_cast %68 : vector<1x32x16xbf16> to vector<32x16xbf16>
      %cst_45 = arith.constant dense<0.000000e+00> : vector<160x32xf32>
      %70 = tpu.matmul %66, %43, %cst_45 {dimension_numbers = #tpu.dot_dimension_numbers<[1], [0], [0], [1], [0, 0, 1, 1], [], []>} : vector<160x160xbf16>, vector<160x32xbf16>, vector<160x32xf32> -> vector<160x32xf32>
      %71 = arith.truncf %70 : vector<160x32xf32> to vector<160x32xbf16>
      %cst_46 = arith.constant dense<0.000000e+00> : vector<160x16xf32>
      %72 = tpu.matmul %71, %69, %cst_46 {dimension_numbers = #tpu.dot_dimension_numbers<[1], [0], [0], [1], [0, 0, 1, 1], [], []>} : vector<160x32xbf16>, vector<32x16xbf16>, vector<160x16xf32> -> vector<160x16xf32>
      %73 = arith.addf %arg15, %72 : vector<160x16xf32>
      scf.yield %73 : vector<160x16xf32>
    }
    %c41_i32_29 = arith.constant 41 : i32
    %cst_30 = arith.constant 0.000000e+00 : f32
    %49 = vector.broadcast %cst_30 : f32 to vector<160x16xf32>
    %50 = arith.cmpf ogt, %48, %49 : vector<160x16xf32>
    %cst_31 = arith.constant 0.000000e+00 : f32
    %51 = vector.broadcast %cst_31 : f32 to vector<160x16xf32>
    %52 = arith.minimumf %48, %51 : vector<160x16xf32>
    %53 = math.exp %52 : vector<160x16xf32>
    %cst_32 = arith.constant 1.000000e+00 : f32
    %54 = vector.broadcast %cst_32 : f32 to vector<160x16xf32>
    %55 = arith.subf %53, %54 : vector<160x16xf32>
    %56 = arith.select %50, %48, %55 : vector<160x16xi1>, vector<160x16xf32>
    %57 = arith.truncf %56 : vector<160x16xf32> to vector<160x16xbf16>
    %c0_33 = arith.constant 0 : index
    %c0_34 = arith.constant 0 : index
    %58 = vector.load %arg12[%c0_33, %c0_34] : memref<1x128xf32, #tpu.memory_space<vmem>>, vector<1x128xf32>
    %59 = vector.shape_cast %58 : vector<1x128xf32> to vector<1x128xf32>
    %60 = vector.broadcast %59 : vector<1x128xf32> to vector<160x128xf32>
    %c0_i32_35 = arith.constant 0 : i32
    %c41_i32_36 = arith.constant 41 : i32
    %61 = arith.addi %c0_i32_35, %c41_i32_36 : i32
    %c1_i32_37 = arith.constant 1 : i32
    %62 = scf.for %arg14 = %c0_i32_35 to %61 step %c1_i32_37 iter_args(%arg15 = %60) -> (vector<160x128xf32>)  : i32 {
      %64 = arith.index_cast %arg14 : i32 to index
      %c0_41 = arith.constant 0 : index
      %c0_42 = arith.constant 0 : index
      %65 = vector.load %arg2[%64, %c0_41, %c0_42] : memref<41x160x160xbf16, #tpu.memory_space<vmem>>, vector<1x160x160xbf16>
      %66 = vector.shape_cast %65 : vector<1x160x160xbf16> to vector<160x160xbf16>
      %67 = arith.index_cast %arg14 : i32 to index
      %c0_43 = arith.constant 0 : index
      %c0_44 = arith.constant 0 : index
      %68 = vector.load %arg11[%67, %c0_43, %c0_44] : memref<41x16x128xbf16, #tpu.memory_space<vmem>>, vector<1x16x128xbf16>
      %69 = vector.shape_cast %68 : vector<1x16x128xbf16> to vector<16x128xbf16>
      %cst_45 = arith.constant dense<0.000000e+00> : vector<160x16xf32>
      %70 = tpu.matmul %66, %57, %cst_45 {dimension_numbers = #tpu.dot_dimension_numbers<[1], [0], [0], [1], [0, 0, 1, 1], [], []>} : vector<160x160xbf16>, vector<160x16xbf16>, vector<160x16xf32> -> vector<160x16xf32>
      %71 = arith.truncf %70 : vector<160x16xf32> to vector<160x16xbf16>
      %cst_46 = arith.constant dense<0.000000e+00> : vector<160x128xf32>
      %72 = tpu.matmul %71, %69, %cst_46 {dimension_numbers = #tpu.dot_dimension_numbers<[1], [0], [0], [1], [0, 0, 1, 1], [], []>} : vector<160x16xbf16>, vector<16x128xbf16>, vector<160x128xf32> -> vector<160x128xf32>
      %73 = arith.addf %arg15, %72 : vector<160x128xf32>
      scf.yield %73 : vector<160x128xf32>
    }
    %c41_i32_38 = arith.constant 41 : i32
    %c0_39 = arith.constant 0 : index
    %c0_40 = arith.constant 0 : index
    %63 = vector.load %arg13[%c0_39, %c0_40] : memref<160x128xf32, #tpu.memory_space<vmem>>, vector<160x128xf32>
    tpu.vector_store %arg13[%c0_39, %c0_40], %62 {strides = array<i32>} : memref<160x128xf32, #tpu.memory_space<vmem>>, vector<160x128xf32>,
    return
  }
  func.func @transform_0(%arg0: i32) -> (i32, i32) {
    %c0_i32 = arith.constant 0 : i32
    %c0_i32_0 = arith.constant 0 : i32
    %c0_i32_1 = arith.constant 0 : i32
    return %c0_i32, %c0_i32_0 : i32, i32
  }
  func.func @transform_1(%arg0: i32) -> (i32, i32, i32) {
    %c0_i32 = arith.constant 0 : i32
    %c0_i32_0 = arith.constant 0 : i32
    %c0_i32_1 = arith.constant 0 : i32
    %c0_i32_2 = arith.constant 0 : i32
    return %c0_i32, %c0_i32_0, %c0_i32_1 : i32, i32, i32
  }
  func.func @transform_2(%arg0: i32) -> (i32, i32, i32) {
    %c0_i32 = arith.constant 0 : i32
    %c0_i32_0 = arith.constant 0 : i32
    %c0_i32_1 = arith.constant 0 : i32
    %c0_i32_2 = arith.constant 0 : i32
    return %c0_i32, %c0_i32_0, %c0_i32_1 : i32, i32, i32
  }
  func.func @transform_3(%arg0: i32) -> (i32, i32) {
    %c0_i32 = arith.constant 0 : i32
    %c0_i32_0 = arith.constant 0 : i32
    %c0_i32_1 = arith.constant 0 : i32
    return %c0_i32, %c0_i32_0 : i32, i32
  }
  func.func @transform_4(%arg0: i32) -> (i32, i32, i32) {
    %c0_i32 = arith.constant 0 : i32
    %c0_i32_0 = arith.constant 0 : i32
    %c0_i32_1 = arith.constant 0 : i32
    %c0_i32_2 = arith.constant 0 : i32
    return %c0_i32, %c0_i32_0, %c0_i32_1 : i32, i32, i32
  }
  func.func @transform_5(%arg0: i32) -> (i32, i32) {
    %c0_i32 = arith.constant 0 : i32
    %c0_i32_0 = arith.constant 0 : i32
    %c0_i32_1 = arith.constant 0 : i32
    return %c0_i32, %c0_i32_0 : i32, i32
  }
  func.func @transform_6(%arg0: i32) -> (i32, i32, i32) {
    %c0_i32 = arith.constant 0 : i32
    %c0_i32_0 = arith.constant 0 : i32
    %c0_i32_1 = arith.constant 0 : i32
    %c0_i32_2 = arith.constant 0 : i32
    return %c0_i32, %c0_i32_0, %c0_i32_1 : i32, i32, i32
  }
  func.func @transform_7(%arg0: i32) -> (i32, i32) {
    %c0_i32 = arith.constant 0 : i32
    %c0_i32_0 = arith.constant 0 : i32
    %c0_i32_1 = arith.constant 0 : i32
    return %c0_i32, %c0_i32_0 : i32, i32
  }
  func.func @transform_8(%arg0: i32) -> (i32, i32, i32) {
    %c0_i32 = arith.constant 0 : i32
    %c0_i32_0 = arith.constant 0 : i32
    %c0_i32_1 = arith.constant 0 : i32
    %c0_i32_2 = arith.constant 0 : i32
    return %c0_i32, %c0_i32_0, %c0_i32_1 : i32, i32, i32
  }
  func.func @transform_9(%arg0: i32) -> (i32, i32) {
    %c0_i32 = arith.constant 0 : i32
    %c0_i32_0 = arith.constant 0 : i32
    %c0_i32_1 = arith.constant 0 : i32
    return %c0_i32, %c0_i32_0 : i32, i32
  }
  func.func @transform_10(%arg0: i32) -> (i32, i32, i32) {
    %c0_i32 = arith.constant 0 : i32
    %c0_i32_0 = arith.constant 0 : i32
    %c0_i32_1 = arith.constant 0 : i32
    %c0_i32_2 = arith.constant 0 : i32
    return %c0_i32, %c0_i32_0, %c0_i32_1 : i32, i32, i32
  }
  func.func @transform_11(%arg0: i32) -> (i32, i32) {
    %c0_i32 = arith.constant 0 : i32
    %c0_i32_0 = arith.constant 0 : i32
    %c0_i32_1 = arith.constant 0 : i32
    return %c0_i32, %c0_i32_0 : i32, i32
  }
  func.func @transform_12(%arg0: i32) -> (i32, i32) {
    %c0_i32 = arith.constant 0 : i32
    %c0_i32_0 = arith.constant 0 : i32
    %c0_i32_1 = arith.constant 0 : i32
    return %c0_i32, %c0_i32_0 : i32, i32
  }
}

</mosaic_0001>

<bundles_post_ra>
// kernel: efgcn_tmp_forward.3
= control target key start
LH: loop header
LB: loop body
LE: loop exit
PB: predicated region body
PF: predicated region fallthrough
CT: control target
= control target key end

     0   :  { %8 = vsyncpa [#allocation4], 0  ;;  %s1136_s0 = inlined_call_operand.vmem [shape: f32[2,3072], index: 0, kind: input, shape index: {}]   ;;  %s1137_s1 = inlined_call_operand.hbm [shape: bf16[3072,128], index: 1, kind: input, shape index: {}]   ;;  %s1138_s2 = inlined_call_operand.hbm [shape: f32[1,128], index: 2, kind: input, shape index: {}]   ;;  %s1139_s3 = inlined_call_operand.vmem [shape: f32[2,128], index: 3, kind: output, shape index: {}]  }
   0x1   :  { %10 = vsyncpa [#allocation4 + $0x1], 0 }
   0x2   :  { %11 = vsyncpa [#allocation6], 0  ;;  %s961_s12 = smov 0   ;;  %s963_s13 = smov 0  }
   0x3   :  { %s965_s14 = smov 0   ;;  %s967_s15 = smov 0  }
   0x4 LB: > { %s980_s16 = sadd.s32 4294967295, %s933_s15   ;;  %s983_s17 = sadd.s32 1, %s933_s15   ;;  %s933_s15 = sphi %s967_s15, %s1156_s15   ;;  %s929_s14 = sphi %s965_s14, %s1155_s14   ;;  %s925_s13 = sphi %s963_s13, %s1154_s13   ;;  %s921_s12 = sphi %s961_s12, %s1153_s12  }
   0x5   : > { %s47_s18 = ssub.s32 %s933_s15, %s983_s17  ;;  %s50_s19 = sadd.s32 1, %s929_s14 }
   0x6   : > { %p48_p0 = scmp.eq.s32.totalorder %s47_s18, 0  ;;  %p57_p1 = scmp.ne.s32.totalorder %s929_s14, %s925_s13 }
   0x7   : > { %p58_p2 = scmp.eq.s32.totalorder %s933_s15, 0  ;;  %p63_p3 = scmp.ne.s32.totalorder %s925_s13, %s921_s12 }
   0x8   : > { %s993_s20 = scalar_select %p48_p0, %s929_s14, %s50_s19  }
   0x9   : > { %p995_p4 = por %p58_p2, %p57_p1  ;;  %p1140_p5 = scmp.eq.s32.totalorder %s980_s16, 0 }
   0xa   : > { %p661_p6 = scmp.ge.s32.totalorder %s933_s15, 1  ;;  %p116_p7 = scmp.lt.s32.totalorder %s933_s15, 7 }
   0xb   : > { %p1004_p8 = por %p1140_p5, %p63_p3  ;;  %s935_s24 = smov [#allocation5]  }
   0xc   : > { %p1009_p10 = pnand %p661_p6, %p116_p7  ;;  %s129_s25 = sshll.u32 %s935_s24, 4  ;;  %s130_s25 = int_to_ptr.vmem [resolvable:$true] %s129_s25 }
   0xd   : > { %s1144_s22 = scalar_select %p1004_p8, 1, 0 }
   0xe   : > { %s1145_s23 = scalar_select %p1009_p10, 1, 0 }
   0xf   : > { %p760_p11 = pneg %p1009_p10  ;;  %p769_p12 = scmp.lt.s32.totalorder %s933_s15, 6 }
  0x10   : > { %s149_s26 = sand.u32 1, %s929_s14   ;;  %s852_s30 = scalar_lea.vmem %s130_s25, 16 }
  0x11   : > { %p1019_p13 = pnand %p760_p11, %p1140_p5  ;;  %p1025_p0 = pnand %p769_p12, %p995_p4 }
  0x12   : > { %s664_s29 = sshll.u32 %s149_s26, 8  ;;  %p853_p2 = scmp.ne.s32.totalorder %s130_s25, %s852_s30 }
  0x13   : > { %p843_p1 = pneg %p1019_p13  ;;  %s859_s4 = scalar_lea.vmem %s130_s25, 32 }
  0x14   : > { %p860_p7 = scmp.lt.s32.totalorder %s130_s25, %s130_s25  ;;  %p861_p9 = scmp.lt.s32.totalorder %s859_s4, %s852_s30 }
  0x15   : > { %p855_p3 = pnand %p853_p2, %p843_p1 }
  0x16   : > { %p862_p11 = por %p861_p9, %p860_p7 }
  0x17   : > { %p856_p6 = pneg %p855_p3 }
  0x19   : > { %p863_p5 = pnand %p862_p11, %p856_p6 }
  0x1b   : > { %866 = shalt.err (!%p863_p5)
}
  0x1c   : > { %763 = dma.hbm_to_vmem [thread:$0]  (!%p1019_p13), %s1138_s2, 16, %s130_s25, [#allocation6]  }
  0x1d   : > { %s709_s7 = sshll.u32 %s933_s15, 12  ;;  %s153_s11 = scalar_lea.vmem [#allocation3], %s664_s29 }
  0x1e   : > { %s1040_s10 = scalar_lea.hbm %s1137_s1, %s709_s7  ;;  %s160_s12 = sshll.u32 %s153_s11, 4  ;;  %s1042_s12 = int_to_ptr.vmem [resolvable:$true] %s160_s12 }
  0x1f   : > { %s1044_s18 = scalar_lea.sflag [#allocation4], %s149_s26  ;;  %s867_s19 = scalar_lea.hbm %s1040_s10, 4096 }
  0x20   : > { %p868_p4 = scmp.ne.s32.totalorder %s1040_s10, %s867_s19  ;;  %p869_p5 = pneg %p1025_p0 }
  0x21   : > { %s872_s24 = scalar_lea.hbm %s1137_s1, 24576  ;;  %p873_p13 = scmp.lt.s32.totalorder %s1040_s10, %s1137_s1 }
  0x22   : > { %p870_p9 = pnand %p869_p5, %p868_p4  ;;  %p874_p1 = scmp.lt.s32.totalorder %s872_s24, %s867_s19 }
  0x24   : > { %p871_p12 = pneg %p870_p9  ;;  %p875_p2 = por %p874_p1, %p873_p13 }
  0x26   : > { %p876_p3 = pnand %p875_p2, %p871_p12 }
  0x28   : > { %879 = shalt.err (!%p876_p3)
}
  0x29   : > { %s880_s26 = scalar_lea.vmem %s1042_s12, 4096  ;;  %s936_s29 = smov [#allocation3]  }
  0x2a   : > { %p881_p6 = scmp.ne.s32.totalorder %s1042_s12, %s880_s26  ;;  %s885_s30 = sshll.u32 %s936_s29, 4  ;;  %s886_s30 = int_to_ptr.vmem [resolvable:$false] %s885_s30 }
  0x2b   : > { %s887_s4 = scalar_lea.vmem %s886_s30, 8192  ;;  %p888_p4 = scmp.lt.s32.totalorder %s1042_s12, %s886_s30 }
  0x2c   : > { %p883_p7 = pnand %p881_p6, %p869_p5  ;;  %p889_p9 = scmp.lt.s32.totalorder %s887_s4, %s880_s26 }
  0x2e   : > { %p884_p11 = pneg %p883_p7  ;;  %p890_p8 = por %p889_p9, %p888_p4 }
  0x30   : > { %p891_p10 = pnand %p890_p8, %p884_p11 }
  0x32   : > { %894 = shalt.err (!%p891_p10)
}
  0x33   : > { %s937_s5 = smov 64   ;;  %s938_s6 = smov 4  }
  0x34   : > { %767 = dma.hbm_to_vmem [thread:$0]  (!%p1025_p0), %s1040_s10, 4096, %s1042_s12, %s1044_s18, %s937_s5, %s937_s5, %s938_s6  }
  0x35   : > { %p1148_p5 = scmp.ne.s32.totalorder %s1145_s23, 0 }
  0x36   : > { %s174_s7 = sand.u32 (!%p1148_p5), 1, %s925_s13   ;;  %p1149_p8 = scmp.ne.s32.totalorder (!%p1148_p5), %s1144_s22, 0 }
  0x37   : > { %172 = sbr.rel (%p1148_p5) target bundleno = 322 (0x142), region = 32  ;;  %s668_s8 = sshll.u32 (!%p1148_p5), %s174_s7, 8 }
  0x38   : > { %s175_s9 = scalar_lea.sflag (!%p1148_p5), [#allocation4], %s174_s7  ;;  %s1068_s11 = scalar_lea.vmem (!%p1148_p5), [#allocation3], %s668_s8 }
  0x3c   : > { %912 = dma.done.wait (%p1149_p8), %s175_s9, 4096  }
  0x3d   : > { %914 = vsyncadd (%p1149_p8), %s175_s9, 4294963200  ;;  %p1150_p10 = scmp.eq.s32.totalorder %s980_s16, 0 }
  0x3f   : > { %916 = dma.done.wait (%p1150_p10), [#allocation6], 16   ;;  %p1151_p0 = pmov %p1150_p10 }
  0x40   : > { %s670_s23 = sshll.u32 %s980_s16, 2  ;;  %p1152_p13 = scmp.ne.s32.totalorder %s980_s16, 0 }
  0x41   : > { %918 = vsyncadd (%p1151_p0), [#allocation6], 4294967280  ;;  %p206_p12 = scmp.lt.s32.totalorder %s670_s23, 23 }
  0x42   : > { %216 = sbr.rel (%p1152_p13) target bundleno = 73 (0x49), region = 44 }
  0x43   : > { %s1158_s23 = smov (!%p206_p12, %s670_s23), 23 }
  0x44   : > { %s671_s28 = sshll.u32 %s1158_s23, 1 }
  0x45   : > { %s1082_s18 = scalar_lea.vmem %s1136_s0, %s671_s28 }
  0x47   : > { %v939_v0 = vmov 0.0  }
  0x48   : > { %217 = vst [vmem:[#allocation2] sm:$0x3] %v939_v0 }
  0x49 PF: > { %v808_v1 = vld [vmem:[%s1068_s11 + $0x78] sm:$0xff]   ;;  %v812_v5 = vld [vmem:[%s1068_s11 + $0x70] sm:$0xff]   ;;  %v816_v9 = vld [vmem:[%s1068_s11 + $0x68] sm:$0xff]   ;;  %v225_v31 = vlaneseq  ;;  %v940_v35 = vmov 1983009808   ;;  %p705_p1 = scmp.ne.s32.totalorder %s980_s16, 5 }
  0x4a   : > { %v809_v2 = vld [vmem:[%s1068_s11 + $0xf8] sm:$0xff]   ;;  %710 = vmatprep.subr.bf16.mxu0 %v808_v1  ;;  %v813_v6 = vld [vmem:[%s1068_s11 + $0xf0] sm:$0xff]   ;;  %v817_v10 = vld [vmem:[%s1068_s11 + $0xe8] sm:$0xff]   ;;  %v223_v36 = vunpack.c.l.s4 %v940_v35 }
  0x4b   : > { %v810_v3 = vld [vmem:[%s1068_s11 + $0x38] sm:$0xff]   ;;  %732 = vmatprep.subr.bf16.mxu1 %v809_v2  ;;  %v814_v7 = vld [vmem:[%s1068_s11 + $0x30] sm:$0xff]   ;;  %v818_v11 = vld [vmem:[%s1068_s11 + $0x28] sm:$0xff]   ;;  %v226_v37 = vshrl.u32 %v225_v31, 7 }
  0x4c   : > { %v811_v4 = vld [vmem:[%s1068_s11 + $0xb8] sm:$0xff]   ;;  %711 = vmatpush3.bf16.msra.mxu0 %v810_v3  ;;  %v815_v8 = vld [vmem:[%s1068_s11 + $0xb0] sm:$0xff]   ;;  %v819_v12 = vld [vmem:[%s1068_s11 + $0xa8] sm:$0xff]   ;;  %v224_v38 = vunpack.c.0.s8 %v223_v36 }
  0x4d   : > { %733 = vmatpush3.bf16.msra.mxu1 %v811_v4  ;;  %712 = vmatprep.subr.bf16.mxu0 %v812_v5  ;;  %v820_v13 = vld [vmem:[%s1068_s11 + $0x60] sm:$0xff]   ;;  %v824_v17 = vld [vmem:[%s1068_s11 + $0x58] sm:$0xff]   ;;  %v828_v21 = vld [vmem:[%s1068_s11 + $0x50] sm:$0xff]  }
  0x4e   : > { %734 = vmatprep.subr.bf16.mxu1 %v813_v6  ;;  %v821_v14 = vld [vmem:[%s1068_s11 + $0xe0] sm:$0xff]   ;;  %v825_v18 = vld [vmem:[%s1068_s11 + $0xd8] sm:$0xff]   ;;  %v829_v22 = vld [vmem:[%s1068_s11 + $0xd0] sm:$0xff]   ;;  %v227_v40 = vsub.s32 %v224_v38, %v226_v37 }
  0x4f   : > { %v822_v15 = vld [vmem:[%s1068_s11 + $0x20] sm:$0xff]   ;;  %v826_v19 = vld [vmem:[%s1068_s11 + $0x18] sm:$0xff]   ;;  %v830_v23 = vld [vmem:[%s1068_s11 + $0x10] sm:$0xff]  }
  0x50   : > { %713 = vmatpush3.bf16.msra.mxu0 %v814_v7  ;;  %v823_v16 = vld [vmem:[%s1068_s11 + $0xa0] sm:$0xff]   ;;  %v827_v20 = vld [vmem:[%s1068_s11 + $0x98] sm:$0xff]   ;;  %v831_v24 = vld [vmem:[%s1068_s11 + $0x90] sm:$0xff]  }
  0x51   : > { %735 = vmatpush3.bf16.msra.mxu1 %v815_v8  ;;  %714 = vmatprep.subr.bf16.mxu0 %v816_v9  ;;  %v832_v25 = vld [vmem:[%s1068_s11 + $0x48] sm:$0xff]   ;;  %v836_v29 = vld [vmem:[%s1068_s11 + $0x40] sm:$0xff]   ;;  %v218_v55 = vld [vmem:[#allocation2] sm:$0x3] }
  0x52   : > { %736 = vmatprep.subr.bf16.mxu1 %v817_v10  ;;  %v833_v26 = vld [vmem:[%s1068_s11 + $0xc8] sm:$0xff]   ;;  %v837_v30 = vld [vmem:[%s1068_s11 + $0xc0] sm:$0xff]  }
  0x53   : > { %v834_v27 = vld [vmem:[%s1068_s11 + $0x8] sm:$0xff]   ;;  %v838_v32 = vld [vmem:[%s1068_s11] sm:$0xff]  }
  0x54   : > { %715 = vmatpush3.bf16.msra.mxu0 %v818_v11  ;;  %v835_v28 = vld [vmem:[%s1068_s11 + $0x88] sm:$0xff]   ;;  %v839_v33 = vld [vmem:[%s1068_s11 + $0x80] sm:$0xff]  }
  0x55   : > { %737 = vmatpush3.bf16.msra.mxu1 %v819_v12  ;;  %716 = vmatprep.subr.bf16.mxu0 %v820_v13  ;;  %v219_v34 = vld [vmem:[%s1082_s18] sm:$0xff] }
  0x56   : > { %738 = vmatprep.subr.bf16.mxu1 %v821_v14  ;;  %v221_v39 = vcombine.high %v219_v34, %v219_v34  ;;  %v228_v41 = vrot.slane %v219_v34, %v227_v40 }
  0x58   : > { %717 = vmatpush3.bf16.msra.mxu0 %v822_v15  ;;  %v235_v42 = vrot.slane %v221_v39, %v227_v40  ;;  %v236_v43 = vcombine.high %v228_v41, %v228_v41  ;;  %v242_v45 = vpack.c.bf16 %v228_v41, %v228_v41 }
  0x59   : > { %739 = vmatpush3.bf16.msra.mxu1 %v823_v16  ;;  %718 = vmatprep.subr.bf16.mxu0 %v824_v17 }
  0x5a   : > { %740 = vmatprep.subr.bf16.mxu1 %v825_v18  ;;  %v237_v44 = vcombine.high %v235_v42, %v235_v42  ;;  %v244_v46 = vpack.c.bf16 %v235_v42, %v235_v42  ;;  %v243_v47 = vpack.c.bf16 %v236_v43, %v236_v43 }
  0x5c   : > { %719 = vmatpush3.bf16.msra.mxu0 %v826_v19  ;;  %v245_v48 = vpack.c.bf16 %v237_v44, %v237_v44  ;;  %534 = vmatprep.mubr.bf16.mxu0 %v243_v47 }
  0x5d   : > { %741 = vmatpush3.bf16.msra.mxu1 %v827_v20  ;;  %720 = vmatprep.subr.bf16.mxu0 %v828_v21 }
  0x5e   : > { %742 = vmatprep.subr.bf16.mxu1 %v829_v22  ;;  %574 = vmatprep.mubr.bf16.mxu1 %v245_v48 }
  0x60   : > { %721 = vmatpush3.bf16.msra.mxu0 %v830_v23 }
  0x61   : > { %743 = vmatpush3.bf16.msra.mxu1 %v831_v24  ;;  %722 = vmatprep.subr.bf16.mxu0 %v832_v25 }
  0x62   : > { %744 = vmatprep.subr.bf16.mxu1 %v833_v26 }
  0x64   : > { %723 = vmatpush3.bf16.msra.mxu0 %v834_v27 }
  0x65   : > { %745 = vmatpush3.bf16.msra.mxu1 %v835_v28  ;;  %724 = vmatprep.subr.bf16.mxu0 %v836_v29 }
  0x66   : > { %746 = vmatprep.subr.bf16.mxu1 %v837_v30 }
  0x68   : > { %725 = vmatpush3.bf16.msra.mxu0 %v838_v32 }
  0x69   : > { %747 = vmatpush3.bf16.msra.mxu1 %v839_v33 }
  0x6b   : > { %535 = vmatmul.mubr.bf16.vlgmr.msra.gmra.mxu0 %v242_v45 }
  0x6c   : > { %575 = vmatmul.mubr.bf16.vlgmr.msra.gmra.mxu1 %v244_v46 }
 0x12b   : > { %v726_v49 = vpop.f32.mrf.mxu0 }
 0x12c   : > { %v748_v50 = vpop.f32.mrf.mxu1 }
 0x12d   : > { %v727_v51 = vpop.f32.mrf.mxu0 }
 0x12e   : > { %v749_v52 = vpop.f32.mrf.mxu1  ;;  %v728_v53 = vadd.f32 %v727_v51, %v726_v49 }
 0x12f   : > { %v750_v54 = vadd.f32 %v749_v52, %v748_v50  ;;  %v729_v56 = vpop.f32.mrf.mxu0 }
 0x130   : > { %v751_v57 = vpop.f32.mrf.mxu1 }
 0x131   : > { %v577_v58 = vadd.f32 %v750_v54, %v728_v53  ;;  %v730_v59 = vpop.f32.mrf.mxu0  ;;  %587 = sbr.rel (%p705_p1) target bundleno = 322 (0x142), region = 48 }
 0x132   : > { %v752_v60 = vpop.f32.mrf.mxu1 }
 0x133   : > { %v582_v61 = vadd.f32 %v577_v58, %v218_v55 }
 0x135   : > { %583 = vst [vmem:[#allocation2] sm:$0x3] %v582_v61 }
 0x136   : > { %v706_v63 = vld [vmem:[#allocation5] ss:$0 sm:$0xff] }
 0x13c   : > { %v588_v62 = vld [vmem:[#allocation2] sm:$0x3] }
 0x13d   : > { %v596_v0 = vadd.f32 %v706_v63, %v588_v62 }
 0x13f   : > { %v597_v1 = vmax.f32 %v596_v0, 0.0 }
 0x141   : > { %598 = vst [vmem:[%s1139_s3] sm:$0x3] %v597_v1 }
 0x142 PF: > { %p14_p2 = scmp.ge.s32.totalorder %s983_s17, 8   ;;  %s1153_s12 = smov %s925_s13 }
 0x143   : > { %s1154_s13 = smov %s929_s14  ;;  %s1155_s14 = smov %s993_s20 }
 0x144   : > { %s1156_s15 = smov %s983_s17  ;;  %16 = sbr.rel (!%p14_p2) target bundleno = 4 (0x4), region = 83 }
 0x149   :  { %610 = vsyncpa [#allocation4], 1 }
 0x14a   :  { %612 = vsyncpa [#allocation4 + $0x1], 1 }
 0x14b   :  { %613 = vsyncpa [#allocation6], 1 }

// kernel: efgcn_tmp_forward.4
= control target key start
LH: loop header
LB: loop body
LE: loop exit
PB: predicated region body
PF: predicated region fallthrough
CT: control target
= control target key end

     0   :  { %s4342_s0 = inlined_call_operand.vmem [shape: f32[2,128], index: 0, kind: input, shape index: {}]   ;;  %s4343_s1 = inlined_call_operand.vmem [shape: bf16[128,16], index: 1, kind: input, shape index: {}]   ;;  %s4344_s2 = inlined_call_operand.hbm [shape: f32[1,16], index: 2, kind: input, shape index: {}]   ;;  %s4345_s3 = inlined_call_operand.hbm [shape: bf16[16,32], index: 3, kind: input, shape index: {}]   ;;  %s4346_s4 = inlined_call_operand.hbm [shape: f32[1,32], index: 4, kind: input, shape index: {}]   ;;  %s4347_s5 = inlined_call_operand.hbm [shape: bf16[32,32], index: 5, kind: input, shape index: {}]   ;;  %s4348_s6 = inlined_call_operand.hbm [shape: f32[1,32], index: 6, kind: input, shape index: {}]   ;;  %s4349_s7 = inlined_call_operand.hbm [shape: bf16[32,48], index: 7, kind: input, shape index: {}]   ;;  %s4350_s8 = inlined_call_operand.hbm [shape: f32[1,48], index: 8, kind: input, shape index: {}]   ;;  %s4351_s9 = inlined_call_operand.vmem [shape: bf16[48,1], index: 9, kind: input, shape index: {}]   ;;  %s4352_s10 = inlined_call_operand.<no memory space> [shape: f32[1,1], index: 10, kind: input, shape index: {}]   ;;  %s4353_s11 = inlined_call_operand.hbm [shape: bf16[128,3840], index: 11, kind: input, shape index: {}]   ;;  %s4354_s12 = inlined_call_operand.hbm [shape: f32[1,3840], index: 12, kind: input, shape index: {}]   ;;  %s4355_s13 = inlined_call_operand.vmem [shape: f32[2,1], index: 13, kind: output, shape index: {0}]   ;;  %s4356_s14 = inlined_call_operand.hbm [shape: f32[2,48], index: 14, kind: output, shape index: {1}]   ;;  %s4357_s15 = inlined_call_operand.vmem [shape: f32[2,3840], index: 15, kind: output, shape index: {2}]  }
   0x1   :  { %v21_v0 = vstv %s4352_s10 }
   0x2   :  { %22 = vst [vmem:[#allocation2] sm:$0x1] %v21_v0 }
   0x3   :  { %23 = vsyncpa [#allocation4], 0 }
   0x4   :  { %24 = vsyncpa [#allocation7], 0 }
   0x5   :  { %25 = vsyncpa [#allocation10], 0 }
   0x6   :  { %26 = vsyncpa [#allocation13], 0 }
   0x7   :  { %27 = vsyncpa [#allocation16], 0 }
   0x8   :  { %28 = vsyncpa [#allocation5], 0  ;;  %s3913_s20 = smov [#allocation6]  }
   0x9   :  { %s48_s21 = sshll.u32 %s3913_s20, 4  ;;  %s49_s21 = int_to_ptr.vmem [resolvable:$true] %s48_s21 }
   0xa   :  { %s3709_s22 = scalar_lea.vmem %s49_s21, 128  ;;  %p3714_p1 = scmp.lt.s32.totalorder %s49_s21, %s49_s21 }
   0xb   :  { %p3710_p0 = scmp.ne.s32.totalorder %s49_s21, %s3709_s22  ;;  %p3715_p2 = scmp.lt.s32.totalorder %s3709_s22, %s3709_s22 }
   0xd   :  { %p3716_p3 = por %p3715_p2, %p3714_p1 }
   0xf   :  { %p3717_p4 = pnand %p3716_p3, %p3710_p0 }
  0x11   :  { %3720 = shalt.err (!%p3717_p4)
}
  0x12   :  { %s3914_s23 = smov 64   ;;  %s3915_s24 = smov 4  }
  0x13   :  { %54 = dma.hbm_to_vmem [thread:$0]  %s4345_s3, 128, %s49_s21, [#allocation7], %s3914_s23, %s3914_s23, %s3915_s24  }
  0x14   :  { %s3916_s26 = smov [#allocation9]   ;;  %s3917_s28 = smov [#allocation12]  }
  0x15   :  { %s70_s27 = sshll.u32 %s3916_s26, 4  ;;  %s92_s29 = sshll.u32 %s3917_s28, 4  ;;  %s71_s27 = int_to_ptr.vmem [resolvable:$true] %s70_s27  ;;  %s93_s29 = int_to_ptr.vmem [resolvable:$true] %s92_s29 }
  0x16   :  { %s3729_s30 = scalar_lea.vmem %s71_s27, 256  ;;  %p3734_p6 = scmp.lt.s32.totalorder %s71_s27, %s71_s27 }
  0x17   :  { %p3730_p5 = scmp.ne.s32.totalorder %s71_s27, %s3729_s30  ;;  %p3735_p7 = scmp.lt.s32.totalorder %s3729_s30, %s3729_s30 }
  0x19   :  { %p3736_p8 = por %p3735_p7, %p3734_p6 }
  0x1b   :  { %p3737_p9 = pnand %p3736_p8, %p3730_p5 }
  0x1d   :  { %3740 = shalt.err (!%p3737_p9)
}
  0x1e   :  { %76 = dma.hbm_to_vmem [thread:$0]  %s4347_s5, 256, %s71_s27, [#allocation10], %s3914_s23, %s3914_s23, %s3915_s24  }
  0x1f   :  { %s3749_s18 = scalar_lea.vmem %s93_s29, 256  ;;  %p3754_p11 = scmp.lt.s32.totalorder %s93_s29, %s93_s29 }
  0x20   :  { %p3750_p10 = scmp.ne.s32.totalorder %s93_s29, %s3749_s18  ;;  %p3755_p12 = scmp.lt.s32.totalorder %s3749_s18, %s3749_s18 }
  0x22   :  { %p3756_p13 = por %p3755_p12, %p3754_p11 }
  0x24   :  { %p3757_p0 = pnand %p3756_p13, %p3750_p10 }
  0x26   :  { %3760 = shalt.err (!%p3757_p0)
}
  0x27   :  { %98 = dma.hbm_to_vmem [thread:$0]  %s4349_s7, 256, %s93_s29, [#allocation13], %s3914_s23, %s3914_s23, %s3915_s24  }
  0x28   :  { %s3918_s20 = smov [#allocation15]  }
  0x29   :  { %s118_s21 = sshll.u32 %s3918_s20, 4  ;;  %s119_s21 = int_to_ptr.vmem [resolvable:$true] %s118_s21 }
  0x2a   :  { %s3769_s22 = scalar_lea.vmem %s119_s21, 30720  ;;  %p3774_p2 = scmp.lt.s32.totalorder %s119_s21, %s119_s21 }
  0x2b   :  { %p3770_p1 = scmp.ne.s32.totalorder %s119_s21, %s3769_s22  ;;  %p3775_p3 = scmp.lt.s32.totalorder %s3769_s22, %s3769_s22 }
  0x2d   :  { %p3776_p4 = por %p3775_p3, %p3774_p2 }
  0x2f   :  { %p3777_p5 = pnand %p3776_p4, %p3770_p1 }
  0x31   :  { %3780 = shalt.err (!%p3777_p5)
}
  0x32   :  { %s3919_s5 = smov 1920   ;;  %s3920_s10 = smov 120  }
  0x33   :  { %124 = dma.hbm_to_vmem [thread:$0]  %s4353_s11, 30720, %s119_s21, [#allocation16], %s3919_s5, %s3919_s5, %s3920_s10  }
  0x34   :  { %s3921_s27 = smov [#allocation3]   ;;  %s3922_s30 = smov [#allocation8]  }
  0x35   :  { %s39_s28 = sshll.u32 %s3921_s27, 4  ;;  %s61_s7 = sshll.u32 %s3922_s30, 4  ;;  %s40_s28 = int_to_ptr.vmem [resolvable:$true] %s39_s28  ;;  %s62_s7 = int_to_ptr.vmem [resolvable:$true] %s61_s7 }
  0x36   :  { %s3789_s23 = scalar_lea.vmem %s40_s28, 16  ;;  %s3793_s24 = scalar_lea.vmem %s40_s28, 32 }
  0x37   :  { %p3790_p6 = scmp.ne.s32.totalorder %s40_s28, %s3789_s23  ;;  %p3794_p7 = scmp.lt.s32.totalorder %s40_s28, %s40_s28 }
  0x38   :  { %p3795_p8 = scmp.lt.s32.totalorder %s3793_s24, %s3789_s23 }
  0x3a   :  { %p3796_p9 = por %p3795_p8, %p3794_p7 }
  0x3c   :  { %p3797_p10 = pnand %p3796_p9, %p3790_p6 }
  0x3e   :  { %3800 = shalt.err (!%p3797_p10)
}
  0x3f   :  { %42 = dma.hbm_to_vmem [thread:$0]  %s4344_s2, 16, %s40_s28, [#allocation4]  }
  0x40   :  { %s3809_s17 = scalar_lea.vmem %s62_s7, 16  ;;  %s3813_s11 = scalar_lea.vmem %s62_s7, 32 }
  0x41   :  { %p3810_p11 = scmp.ne.s32.totalorder %s62_s7, %s3809_s17  ;;  %p3814_p12 = scmp.lt.s32.totalorder %s62_s7, %s62_s7 }
  0x42   :  { %p3815_p13 = scmp.lt.s32.totalorder %s3813_s11, %s3809_s17 }
  0x44   :  { %p3816_p0 = por %p3815_p13, %p3814_p12 }
  0x46   :  { %p3817_p1 = pnand %p3816_p0, %p3810_p11 }
  0x48   :  { %3820 = shalt.err (!%p3817_p1)
}
  0x49   :  { %64 = dma.hbm_to_vmem [thread:$0]  %s4346_s4, 16, %s62_s7, [#allocation7]  }
  0x4a   :  { %s3923_s19 = smov [#allocation11]   ;;  %s3924_s21 = smov [#allocation14]  }
  0x4b   :  { %s83_s20 = sshll.u32 %s3923_s19, 4  ;;  %s105_s22 = sshll.u32 %s3924_s21, 4  ;;  %s84_s20 = int_to_ptr.vmem [resolvable:$true] %s83_s20  ;;  %s106_s22 = int_to_ptr.vmem [resolvable:$true] %s105_s22 }
  0x4c   :  { %s3829_s5 = scalar_lea.vmem %s84_s20, 16  ;;  %s3833_s2 = scalar_lea.vmem %s84_s20, 32 }
  0x4d   :  { %p3830_p2 = scmp.ne.s32.totalorder %s84_s20, %s3829_s5  ;;  %p3834_p3 = scmp.lt.s32.totalorder %s84_s20, %s84_s20 }
  0x4e   :  { %p3835_p4 = scmp.lt.s32.totalorder %s3833_s2, %s3829_s5 }
  0x50   :  { %p3836_p5 = por %p3835_p4, %p3834_p3 }
  0x52   :  { %p3837_p6 = pnand %p3836_p5, %p3830_p2 }
  0x54   :  { %3840 = shalt.err (!%p3837_p6)
}
  0x55   :  { %86 = dma.hbm_to_vmem [thread:$0]  %s4348_s6, 16, %s84_s20, [#allocation10]  }
  0x56   :  { %s3849_s26 = scalar_lea.vmem %s106_s22, 16  ;;  %s3853_s4 = scalar_lea.vmem %s106_s22, 32 }
  0x57   :  { %p3850_p7 = scmp.ne.s32.totalorder %s106_s22, %s3849_s26  ;;  %p3854_p8 = scmp.lt.s32.totalorder %s106_s22, %s106_s22 }
  0x58   :  { %p3855_p9 = scmp.lt.s32.totalorder %s3853_s4, %s3849_s26 }
  0x5a   :  { %p3856_p10 = por %p3855_p9, %p3854_p8 }
  0x5c   :  { %p3857_p11 = pnand %p3856_p10, %p3850_p7 }
  0x5e   :  { %3860 = shalt.err (!%p3857_p11)
}
  0x5f   :  { %108 = dma.hbm_to_vmem [thread:$0]  %s4350_s8, 16, %s106_s22, [#allocation13]  }
  0x60   :  { %s3925_s30 = smov [#allocation17]  }
  0x61   :  { %s131_s7 = sshll.u32 %s3925_s30, 4  ;;  %s132_s7 = int_to_ptr.vmem [resolvable:$true] %s131_s7 }
  0x62   :  { %s3869_s23 = scalar_lea.vmem %s132_s7, 480  ;;  %p3874_p13 = scmp.lt.s32.totalorder %s132_s7, %s132_s7 }
  0x63   :  { %p3870_p12 = scmp.ne.s32.totalorder %s132_s7, %s3869_s23  ;;  %p3875_p0 = scmp.lt.s32.totalorder %s3869_s23, %s3869_s23 }
  0x65   :  { %p3876_p1 = por %p3875_p0, %p3874_p13 }
  0x67   :  { %p3877_p2 = pnand %p3876_p1, %p3870_p12 }
  0x69   :  { %3880 = shalt.err (!%p3877_p2)
}
  0x6a   :  { %134 = dma.hbm_to_vmem [thread:$0]  %s4354_s12, 480, %s132_s7, [#allocation16]  }
  0x6b   :  { %3901 = dma.done.wait [#allocation4], 16  }
  0x6c   :  { %3902 = vsyncadd [#allocation4], 4294967280 }
  0x6d   :  { %3903 = dma.done.wait [#allocation7], 144  }
  0x6e   :  { %3904 = vsyncadd [#allocation7], 4294967152 }
  0x6f   :  { %3905 = dma.done.wait [#allocation10], 272  }
  0x70   :  { %3906 = vsyncadd [#allocation10], 4294967024 }
  0x71   :  { %3907 = dma.done.wait [#allocation13], 272  }
  0x72   :  { %3908 = vsyncadd [#allocation13], 4294967024 }
  0x73   :  { %3909 = dma.done.wait [#allocation16], 31200  }
  0x74   :  { %3910 = vsyncadd [#allocation16], 4294936096  ;;  %v3926_v1 = vmov 0.0   ;;  %vm3927_vm0 = vmmov 0   ;;  %v3325_v2 = vld [vmem:[%s4343_s1 + $0x38] sm:$0xff]   ;;  %v3326_v3 = vld [vmem:[%s4343_s1 + $0x30] sm:$0xff]  }
  0x75   :  { %3255 = vmatprep.subr.bf16.mxu0 %v3926_v1  ;;  %3271 = vmatprep.mubr.msk.bf16.mxu0 %vm3927_vm0, %v3926_v1  ;;  %v3327_v4 = vld [vmem:[%s4343_s1 + $0x28] sm:$0xff]   ;;  %v3328_v5 = vld [vmem:[%s4343_s1 + $0x20] sm:$0xff]   ;;  %v3329_v6 = vld [vmem:[%s4343_s1 + $0x18] sm:$0xff]   ;;  %vm293_vm1 = vcmask 130048   ;;  %vm362_vm2 = vcmask 261120   ;;  %v3928_v62 = vmov 0  }
  0x76   :  { %3275 = vmatprep.subr.bf16.mxu1 %v3926_v1  ;;  %3277 = vmatprep.mubr.msk.bf16.mxu1 %vm3927_vm0, %v3926_v1  ;;  %v3330_v7 = vld [vmem:[%s4343_s1 + $0x10] sm:$0xff]   ;;  %v3331_v8 = vld [vmem:[%s4343_s1 + $0x8] sm:$0xff]   ;;  %v3332_v9 = vld [vmem:[%s4343_s1] sm:$0xff]   ;;  %vm475_vm3 = vcmask 386048   ;;  %vm509_vm4 = vcmask 392192   ;;  %vm553_vm5 = vcmask 1024  }
  0x77   :  { %3256 = vmatpush3.bf16.msra.mxu0 %v3325_v2  ;;  %v163_v10 = vld [vmem:[%s4342_s0] sm:$0x3]  ;;  %v3333_v12 = vld [vmem:[#allocation6] sm:$0xff]   ;;  %v3334_v19 = vld [vmem:[#allocation9 + $0x8] sm:$0xff]   ;;  %s3930_s16 = smov [#allocation18]  }
  0x78   :  { %3257 = vmatprep.subr.bf16.mxu0 %v3926_v1  ;;  %v4081_v11 = vpack.c.bf16 %v163_v10, %v163_v10  ;;  %3276 = vmatpush3.bf16.msra.mxu1 %v3333_v12  ;;  %v2968_v13 = vld [vmem:[#allocation3] ss:$0 sm:$0xff]  ;;  %v3335_v22 = vld [vmem:[#allocation9] sm:$0xff]   ;;  %v2977_v23 = vld [vmem:[#allocation8] ss:$0 sm:$0xff]  ;;  %s2949_s17 = sshll.u32 %s3930_s16, 4  ;;  %s2950_s17 = int_to_ptr.vmem [resolvable:$true] %s2949_s17 }
  0x79   :  { %3281 = vmatprep.subr.bf16.mxu1 %v3926_v1  ;;  %v3336_v29 = vld [vmem:[#allocation12 + $0x8] sm:$0xff]   ;;  %v3337_v32 = vld [vmem:[#allocation12] sm:$0xff]   ;;  %v2980_v47 = vld [vmem:[#allocation11] ss:$0 sm:$0xff]  ;;  %s3881_s3 = scalar_lea.vmem %s2950_s17, 32  ;;  %p3886_p4 = scmp.lt.s32.totalorder %s2950_s17, %s2950_s17 }
  0x7a   :  { %v3338_v33 = vld [vmem:[#allocation15 + $0x690] ss:$120 sps:$4 sm:$0xff]   ;;  %v3340_v34 = vld [vmem:[#allocation15 + $0x694] ss:$120 sps:$4 sm:$0xff]   ;;  %v3343_v35 = vld [vmem:[#allocation15 + $0x5a4] ss:$120 sps:$4 sm:$0xff]   ;;  %p3882_p3 = scmp.ne.s32.totalorder %s2950_s17, %s3881_s3  ;;  %p3887_p5 = scmp.lt.s32.totalorder %s3881_s3, %s3881_s3 }
  0x7b   :  { %3258 = vmatpush3.bf16.msra.mxu0 %v3326_v3  ;;  %v3341_v36 = vld [vmem:[#allocation15 + $0x5a0] ss:$120 sps:$4 sm:$0xff]   ;;  %v3346_v37 = vld [vmem:[#allocation15 + $0x4b4] ss:$120 sps:$4 sm:$0xff]   ;;  %v3344_v38 = vld [vmem:[#allocation15 + $0x4b0] ss:$120 sps:$4 sm:$0xff]  }
  0x7c   :  { %3259 = vmatprep.subr.bf16.mxu0 %v3926_v1  ;;  %v3349_v39 = vld [vmem:[#allocation15 + $0x3c4] ss:$120 sps:$4 sm:$0xff]   ;;  %v3347_v40 = vld [vmem:[#allocation15 + $0x3c0] ss:$120 sps:$4 sm:$0xff]   ;;  %v3352_v41 = vld [vmem:[#allocation15 + $0x2d4] ss:$120 sps:$4 sm:$0xff]   ;;  %p3888_p6 = por %p3887_p5, %p3886_p4 }
  0x7d   :  { %v3350_v42 = vld [vmem:[#allocation15 + $0x2d0] ss:$120 sps:$4 sm:$0xff]   ;;  %v3355_v43 = vld [vmem:[#allocation15 + $0x1e4] ss:$120 sps:$4 sm:$0xff]   ;;  %v3353_v44 = vld [vmem:[#allocation15 + $0x1e0] ss:$120 sps:$4 sm:$0xff]  }
  0x7e   :  { %v3359_v45 = vld [vmem:[#allocation15 + $0xf4] ss:$120 sps:$4 sm:$0xff]   ;;  %v3357_v46 = vld [vmem:[#allocation15 + $0xf0] ss:$120 sps:$4 sm:$0xff]   ;;  %v3356_v53 = vld [vmem:[%s4351_s9 + $0x10] sm:$0xff]   ;;  %p3889_p7 = pnand %p3888_p6, %p3882_p3 }
  0x7f   :  { %3260 = vmatpush3.bf16.msra.mxu0 %v3327_v4  ;;  %v3360_v56 = vld [vmem:[%s4351_s9 + $0x8] sm:$0xff]   ;;  %v3364_v59 = vld [vmem:[%s4351_s9] sm:$0xff]  }
  0x80   :  { %3261 = vmatprep.subr.bf16.mxu0 %v3926_v1  ;;  %v3363_v57 = vld [vmem:[#allocation15 + $0x4] ss:$120 sps:$4 sm:$0xff]   ;;  %v3361_v58 = vld [vmem:[#allocation15] ss:$120 sps:$4 sm:$0xff]   ;;  %v3373_v0 = vld [vmem:[#allocation15 + $0x5b4] ss:$120 sps:$4 sm:$0xff]  }
  0x81   :  { %v3367_v60 = vld [vmem:[#allocation15 + $0x6a4] ss:$120 sps:$4 sm:$0xff]   ;;  %v3365_v61 = vld [vmem:[#allocation15 + $0x6a0] ss:$120 sps:$4 sm:$0xff]   ;;  %v3385_v4 = vld [vmem:[#allocation15 + $0x3d4] ss:$120 sps:$4 sm:$0xff]  }
  0x82   :  { %v3370_v63 = vld [vmem:[#allocation15 + $0x69c] ss:$120 sps:$4 sm:$0xff]   ;;  %v3377_v3 = vld [vmem:[#allocation15 + $0x4c0] ss:$120 sps:$4 sm:$0xff]  }
  0x83   :  { %3262 = vmatpush3.bf16.msra.mxu0 %v3328_v5  ;;  %v3379_v2 = vld [vmem:[#allocation15 + $0x4c4] ss:$120 sps:$4 sm:$0xff]   ;;  %v3383_v5 = vld [vmem:[#allocation15 + $0x3d0] ss:$120 sps:$4 sm:$0xff]   ;;  %v3401_v12 = vld [vmem:[#allocation15 + $0x100] ss:$120 sps:$4 sm:$0xff]  }
  0x84   :  { %3263 = vmatprep.subr.bf16.mxu0 %v3926_v1  ;;  %v3403_v10 = vld [vmem:[#allocation15 + $0x104] ss:$120 sps:$4 sm:$0xff]  }
  0x87   :  { %3264 = vmatpush3.bf16.msra.mxu0 %v3329_v6  ;;  %v3391_v6 = vld [vmem:[#allocation15 + $0x2e4] ss:$120 sps:$4 sm:$0xff]  }
  0x88   :  { %3265 = vmatprep.subr.bf16.mxu0 %v3926_v1 }
  0x8b   :  { %3266 = vmatpush3.bf16.msra.mxu0 %v3330_v7  ;;  %v3389_v7 = vld [vmem:[#allocation15 + $0x2e0] ss:$120 sps:$4 sm:$0xff]  }
  0x8c   :  { %3267 = vmatprep.subr.bf16.mxu0 %v3926_v1 }
  0x8f   :  { %3268 = vmatpush3.bf16.msra.mxu0 %v3331_v8  ;;  %v3397_v8 = vld [vmem:[#allocation15 + $0x1f4] ss:$120 sps:$4 sm:$0xff]  }
  0x90   :  { %3269 = vmatprep.subr.bf16.mxu0 %v3926_v1 }
  0x93   :  { %3270 = vmatpush3.bf16.msra.mxu0 %v3332_v9  ;;  %v3395_v9 = vld [vmem:[#allocation15 + $0x1f0] ss:$120 sps:$4 sm:$0xff]  }
  0x94   :  { %2153 = vmatprep.subr.bf16.mxu0 %v3340_v34  ;;  %v3467_v34 = vld [vmem:[#allocation15 + $0x5d0] ss:$120 sps:$4 sm:$0xff]  }
  0x96   :  { %3272 = vmatmul.mubr.bf16.vlgmr.msra.gmra.mxu0 %v4081_v11 }
  0x97   :  { %2154 = vmatpush1.bf16.msra.mxu0 %v3338_v33  ;;  %2185 = vmatprep.mubr.bf16.mxu0 %v3928_v62  ;;  %v3469_v33 = vld [vmem:[#allocation15 + $0x5d4] ss:$120 sps:$4 sm:$0xff]  }
  0x98   :  { %2155 = vmatprep.subr.bf16.mxu0 %v3343_v35  ;;  %v3475_v35 = vld [vmem:[#allocation15 + $0x4e4] ss:$120 sps:$4 sm:$0xff]  }
  0x9b   :  { %2156 = vmatpush1.bf16.msra.mxu0 %v3341_v36  ;;  %v3473_v36 = vld [vmem:[#allocation15 + $0x4e0] ss:$120 sps:$4 sm:$0xff]  }
  0x9c   :  { %2157 = vmatprep.subr.bf16.mxu0 %v3346_v37  ;;  %v3481_v37 = vld [vmem:[#allocation15 + $0x3f4] ss:$120 sps:$4 sm:$0xff]  }
  0x9f   :  { %2158 = vmatpush1.bf16.msra.mxu0 %v3344_v38  ;;  %v3479_v38 = vld [vmem:[#allocation15 + $0x3f0] ss:$120 sps:$4 sm:$0xff]  }
  0xa0   :  { %2159 = vmatprep.subr.bf16.mxu0 %v3349_v39  ;;  %v3487_v39 = vld [vmem:[#allocation15 + $0x304] ss:$120 sps:$4 sm:$0xff]  }
  0xa3   :  { %2160 = vmatpush1.bf16.msra.mxu0 %v3347_v40  ;;  %v3485_v40 = vld [vmem:[#allocation15 + $0x300] ss:$120 sps:$4 sm:$0xff]  }
  0xa4   :  { %2161 = vmatprep.subr.bf16.mxu0 %v3352_v41  ;;  %v3493_v41 = vld [vmem:[#allocation15 + $0x214] ss:$120 sps:$4 sm:$0xff]  }
  0xa7   :  { %2162 = vmatpush1.bf16.msra.mxu0 %v3350_v42  ;;  %v3491_v42 = vld [vmem:[#allocation15 + $0x210] ss:$120 sps:$4 sm:$0xff]  }
  0xa8   :  { %2163 = vmatprep.subr.bf16.mxu0 %v3355_v43  ;;  %v3499_v43 = vld [vmem:[#allocation15 + $0x124] ss:$120 sps:$4 sm:$0xff]  }
  0xab   :  { %2164 = vmatpush1.bf16.msra.mxu0 %v3353_v44  ;;  %v3497_v44 = vld [vmem:[#allocation15 + $0x120] ss:$120 sps:$4 sm:$0xff]  }
  0xac   :  { %2165 = vmatprep.subr.bf16.mxu0 %v3359_v45  ;;  %v3505_v45 = vld [vmem:[#allocation15 + $0x34] ss:$120 sps:$4 sm:$0xff]  }
  0xaf   :  { %2166 = vmatpush1.bf16.msra.mxu0 %v3357_v46  ;;  %v3503_v46 = vld [vmem:[#allocation15 + $0x30] ss:$120 sps:$4 sm:$0xff]  }
  0xb0   :  { %2167 = vmatprep.subr.bf16.mxu0 %v3363_v57  ;;  %v3541_v57 = vld [vmem:[#allocation15 + $0x224] ss:$120 sps:$4 sm:$0xff]  }
  0xb3   :  { %2168 = vmatpush1.bf16.msra.mxu0 %v3361_v58  ;;  %v3539_v58 = vld [vmem:[#allocation15 + $0x220] ss:$120 sps:$4 sm:$0xff]  }
  0xb4   :  { %2235 = vmatprep.subr.bf16.mxu0 %v3367_v60  ;;  %v3545_v60 = vld [vmem:[#allocation15 + $0x130] ss:$120 sps:$4 sm:$0xff]  }
  0xb6   :  { %2186 = vmatmul.mubr.bf16.vlgmr.msra.gmra.mxu0 %v4081_v11 }
  0xb7   :  { %2236 = vmatpush1.bf16.msra.mxu0 %v3365_v61  ;;  %2267 = vmatprep.mubr.bf16.mxu0 %v3928_v62  ;;  %v2984_v61 = vld [vmem:[#allocation14] ss:$0 sm:$0xff] }
  0xb8   :  { %2237 = vmatprep.subr.bf16.mxu0 %v3373_v0 }
 0x156   :  { %v270_v14 = vpop.f32.mrf.mxu0 }
 0x157   :  { %v271_v15 = vadd.f32 %v2968_v13, %v270_v14  ;;  %v3409_v13 = vld [vmem:[#allocation15 + $0x14] ss:$120 sps:$4 sm:$0xff]   ;;  %v3407_v14 = vld [vmem:[#allocation15 + $0x10] ss:$120 sps:$4 sm:$0xff]  }
 0x158   :  { %v3273_v16 = vpop.f32.mrf.mxu0 }
 0x159   :  { %v276_v17 = vmax.f32 %v271_v15, 0.0  ;;  %v3415_v15 = vld [vmem:[#allocation15 + $0x6b4] ss:$120 sps:$4 sm:$0xff]   ;;  %v3413_v16 = vld [vmem:[#allocation15 + $0x6b0] ss:$120 sps:$4 sm:$0xff]  }
 0x15a   :  { %v273_v18 = vpop.f32.mrf.mxu0 }
 0x15b   :  { %v280_v20 = vpack.c.bf16 %v276_v17, %v276_v17  ;;  %v3421_v17 = vld [vmem:[#allocation15 + $0x5c4] ss:$120 sps:$4 sm:$0xff]   ;;  %v3419_v18 = vld [vmem:[#allocation15 + $0x5c0] ss:$120 sps:$4 sm:$0xff]  }
 0x15c   :  { %v3274_v21 = vpop.f32.mrf.mxu0 }
 0x15d   :  { %3278 = vmatmul.mubr.msk.bf16.vlgmr.msra.gmra.mxu1 %vm293_vm1, %v280_v20  ;;  %v3425_v20 = vld [vmem:[#allocation15 + $0x4d0] ss:$120 sps:$4 sm:$0xff]   ;;  %v3433_v21 = vld [vmem:[#allocation15 + $0x3e4] ss:$120 sps:$4 sm:$0xff]  }
 0x15e   :  { %3282 = vmatpush3.bf16.msra.mxu1 %v3334_v19  ;;  %3285 = vmatprep.mubr.msk.bf16.mxu1 %vm3927_vm0, %v3926_v1  ;;  %v3427_v19 = vld [vmem:[#allocation15 + $0x4d4] ss:$120 sps:$4 sm:$0xff]  }
 0x15f   :  { %3283 = vmatprep.subr.bf16.mxu1 %v3926_v1 }
 0x162   :  { %3284 = vmatpush3.bf16.msra.mxu1 %v3335_v22  ;;  %v3431_v22 = vld [vmem:[#allocation15 + $0x3e0] ss:$120 sps:$4 sm:$0xff]  }
 0x163   :  { %3289 = vmatprep.subr.bf16.mxu1 %v3926_v1 }
 0x21d   :  { %v331_v24 = vpop.f32.mrf.mxu1 }
 0x21e   :  { %v332_v25 = vadd.f32 %v2977_v23, %v331_v24  ;;  %v3439_v23 = vld [vmem:[#allocation15 + $0x2f4] ss:$120 sps:$4 sm:$0xff]   ;;  %v3437_v24 = vld [vmem:[#allocation15 + $0x2f0] ss:$120 sps:$4 sm:$0xff]  }
 0x21f   :  { %v3279_v26 = vpop.f32.mrf.mxu1 }
 0x220   :  { %v337_v27 = vmax.f32 %v332_v25, 0.0  ;;  %v3445_v25 = vld [vmem:[#allocation15 + $0x204] ss:$120 sps:$4 sm:$0xff]   ;;  %v3443_v26 = vld [vmem:[#allocation15 + $0x200] ss:$120 sps:$4 sm:$0xff]  }
 0x221   :  { %v334_v28 = vpop.f32.mrf.mxu1 }
 0x222   :  { %v343_v30 = vpack.c.bf16 %v337_v27, %v337_v27  ;;  %v3451_v27 = vld [vmem:[#allocation15 + $0x114] ss:$120 sps:$4 sm:$0xff]   ;;  %v3449_v28 = vld [vmem:[#allocation15 + $0x110] ss:$120 sps:$4 sm:$0xff]  }
 0x223   :  { %v3280_v31 = vpop.f32.mrf.mxu1 }
 0x224   :  { %3286 = vmatmul.mubr.msk.bf16.vlgmr.msra.gmra.mxu1 %vm362_vm2, %v343_v30  ;;  %v3455_v30 = vld [vmem:[#allocation15 + $0x20] ss:$120 sps:$4 sm:$0xff]   ;;  %v3463_v31 = vld [vmem:[#allocation15 + $0x6c4] ss:$120 sps:$4 sm:$0xff]  }
 0x225   :  { %3290 = vmatpush3.bf16.msra.mxu1 %v3336_v29  ;;  %3293 = vmatprep.mubr.msk.bf16.mxu1 %vm3927_vm0, %v3926_v1  ;;  %v3457_v29 = vld [vmem:[#allocation15 + $0x24] ss:$120 sps:$4 sm:$0xff]  }
 0x226   :  { %3291 = vmatprep.subr.bf16.mxu1 %v3926_v1 }
 0x229   :  { %3292 = vmatpush3.bf16.msra.mxu1 %v3337_v32  ;;  %v3461_v32 = vld [vmem:[#allocation15 + $0x6c0] ss:$120 sps:$4 sm:$0xff]  }
 0x22a   :  { %3297 = vmatprep.subr.bf16.mxu1 %v3926_v1 }
 0x2e4   :  { %v400_v48 = vpop.f32.mrf.mxu1 }
 0x2e5   :  { %v401_v49 = vadd.f32 %v2980_v47, %v400_v48  ;;  %v3511_v47 = vld [vmem:[#allocation15 + $0x6d4] ss:$120 sps:$4 sm:$0xff]   ;;  %v3509_v48 = vld [vmem:[#allocation15 + $0x6d0] ss:$120 sps:$4 sm:$0xff]  }
 0x2e6   :  { %v3287_v50 = vpop.f32.mrf.mxu1 }
 0x2e7   :  { %v406_v51 = vmax.f32 %v401_v49, 0.0  ;;  %v3517_v49 = vld [vmem:[#allocation15 + $0x5e4] ss:$120 sps:$4 sm:$0xff]   ;;  %v3515_v50 = vld [vmem:[#allocation15 + $0x5e0] ss:$120 sps:$4 sm:$0xff]  }
 0x2e8   :  { %v403_v52 = vpop.f32.mrf.mxu1 }
 0x2e9   :  { %v412_v54 = vpack.c.bf16 %v406_v51, %v406_v51  ;;  %v3523_v51 = vld [vmem:[#allocation15 + $0x4f4] ss:$120 sps:$4 sm:$0xff]   ;;  %v3521_v52 = vld [vmem:[#allocation15 + $0x4f0] ss:$120 sps:$4 sm:$0xff]  }
 0x2ea   :  { %v3288_v55 = vpop.f32.mrf.mxu1 }
 0x2eb   :  { %3294 = vmatmul.mubr.msk.bf16.vlgmr.msra.gmra.mxu1 %vm362_vm2, %v412_v54  ;;  %v3527_v54 = vld [vmem:[#allocation15 + $0x400] ss:$120 sps:$4 sm:$0xff]   ;;  %v3535_v55 = vld [vmem:[#allocation15 + $0x314] ss:$120 sps:$4 sm:$0xff]  }
 0x2ec   :  { %3298 = vmatpush3.bf16.msra.mxu1 %v3356_v53  ;;  %3303 = vmatprep.mubr.msk.bf16.mxu1 %vm3927_vm0, %v3926_v1  ;;  %v3529_v53 = vld [vmem:[#allocation15 + $0x404] ss:$120 sps:$4 sm:$0xff]  }
 0x2ed   :  { %3299 = vmatprep.subr.bf16.mxu1 %v3926_v1 }
 0x2f0   :  { %3300 = vmatpush3.bf16.msra.mxu1 %v3360_v56  ;;  %v3533_v56 = vld [vmem:[#allocation15 + $0x310] ss:$120 sps:$4 sm:$0xff]  }
 0x2f1   :  { %3301 = vmatprep.subr.bf16.mxu1 %v3926_v1  ;;  %v3371_v1 = vld [vmem:[#allocation15 + $0x5b0] ss:$120 sps:$4 sm:$0xff]  }
 0x2f2   :  { %2238 = vmatpush1.bf16.msra.mxu0 %v3371_v1  ;;  %v3551_v1 = vld [vmem:[#allocation15 + $0x40] ss:$120 sps:$4 sm:$0xff]  }
 0x2f3   :  { %2239 = vmatprep.subr.bf16.mxu0 %v3379_v2 }
 0x2f4   :  { %3302 = vmatpush3.bf16.msra.mxu1 %v3364_v59  ;;  %v3547_v59 = vld [vmem:[#allocation15 + $0x134] ss:$120 sps:$4 sm:$0xff]  }
 0x2f5   :  { %2194 = vmatprep.subr.bf16.mxu1 %v3370_v63  ;;  %v3553_v63 = vld [vmem:[#allocation15 + $0x44] ss:$120 sps:$4 sm:$0xff]  }
 0x2f6   :  { %2240 = vmatpush1.bf16.msra.mxu0 %v3377_v3 }
 0x2f7   :  { %2241 = vmatprep.subr.bf16.mxu0 %v3385_v4 }
 0x2fa   :  { %2242 = vmatpush1.bf16.msra.mxu0 %v3383_v5  ;;  %v3559_v5 = vld [vmem:[#allocation15 + $0x6e4] ss:$120 sps:$4 sm:$0xff]  }
 0x2fb   :  { %2243 = vmatprep.subr.bf16.mxu0 %v3391_v6 }
 0x2fe   :  { %2244 = vmatpush1.bf16.msra.mxu0 %v3389_v7  ;;  %v3368_v7 = vld [vmem:[#allocation15 + $0x698] ss:$120 sps:$4 sm:$0xff]  }
 0x2ff   :  { %2245 = vmatprep.subr.bf16.mxu0 %v3397_v8  ;;  %v3557_v8 = vld [vmem:[#allocation15 + $0x6e0] ss:$120 sps:$4 sm:$0xff]  }
 0x302   :  { %2246 = vmatpush1.bf16.msra.mxu0 %v3395_v9 }
 0x303   :  { %2247 = vmatprep.subr.bf16.mxu0 %v3403_v10  ;;  %v3376_v10 = vld [vmem:[#allocation15 + $0x5ac] ss:$120 sps:$4 sm:$0xff]  }
 0x306   :  { %2248 = vmatpush1.bf16.msra.mxu0 %v3401_v12 }
 0x307   :  { %2249 = vmatprep.subr.bf16.mxu0 %v3409_v13  ;;  %v3565_v13 = vld [vmem:[#allocation15 + $0x5f4] ss:$120 sps:$4 sm:$0xff]  }
 0x30a   :  { %2250 = vmatpush1.bf16.msra.mxu0 %v3407_v14  ;;  %v3374_v14 = vld [vmem:[#allocation15 + $0x5a8] ss:$120 sps:$4 sm:$0xff]  }
 0x30b   :  { %2317 = vmatprep.subr.bf16.mxu0 %v3415_v15  ;;  %v3563_v15 = vld [vmem:[#allocation15 + $0x5f0] ss:$120 sps:$4 sm:$0xff]  }
 0x30d   :  { %2268 = vmatmul.mubr.bf16.vlgmr.msra.gmra.mxu0 %v4081_v11 }
 0x30e   :  { %2318 = vmatpush1.bf16.msra.mxu0 %v3413_v16  ;;  %2349 = vmatprep.mubr.bf16.mxu0 %v3928_v62  ;;  %v3382_v16 = vld [vmem:[#allocation15 + $0x4bc] ss:$120 sps:$4 sm:$0xff]  }
 0x30f   :  { %2319 = vmatprep.subr.bf16.mxu0 %v3421_v17  ;;  %v3571_v17 = vld [vmem:[#allocation15 + $0x504] ss:$120 sps:$4 sm:$0xff]  }
 0x312   :  { %2320 = vmatpush1.bf16.msra.mxu0 %v3419_v18  ;;  %v3380_v18 = vld [vmem:[#allocation15 + $0x4b8] ss:$120 sps:$4 sm:$0xff]  }
 0x313   :  { %2321 = vmatprep.subr.bf16.mxu0 %v3427_v19  ;;  %v3569_v19 = vld [vmem:[#allocation15 + $0x500] ss:$120 sps:$4 sm:$0xff]  }
 0x316   :  { %2322 = vmatpush1.bf16.msra.mxu0 %v3425_v20  ;;  %v3388_v20 = vld [vmem:[#allocation15 + $0x3cc] ss:$120 sps:$4 sm:$0xff]  }
 0x317   :  { %2323 = vmatprep.subr.bf16.mxu0 %v3433_v21  ;;  %v3577_v21 = vld [vmem:[#allocation15 + $0x414] ss:$120 sps:$4 sm:$0xff]  }
 0x31a   :  { %2324 = vmatpush1.bf16.msra.mxu0 %v3431_v22  ;;  %v3386_v22 = vld [vmem:[#allocation15 + $0x3c8] ss:$120 sps:$4 sm:$0xff]  }
 0x31b   :  { %2325 = vmatprep.subr.bf16.mxu0 %v3439_v23  ;;  %v3575_v23 = vld [vmem:[#allocation15 + $0x410] ss:$120 sps:$4 sm:$0xff]  }
 0x31e   :  { %2326 = vmatpush1.bf16.msra.mxu0 %v3437_v24  ;;  %v3394_v24 = vld [vmem:[#allocation15 + $0x2dc] ss:$120 sps:$4 sm:$0xff]  }
 0x31f   :  { %2327 = vmatprep.subr.bf16.mxu0 %v3445_v25  ;;  %v3583_v25 = vld [vmem:[#allocation15 + $0x324] ss:$120 sps:$4 sm:$0xff]  }
 0x322   :  { %2328 = vmatpush1.bf16.msra.mxu0 %v3443_v26  ;;  %v3392_v26 = vld [vmem:[#allocation15 + $0x2d8] ss:$120 sps:$4 sm:$0xff]  }
 0x323   :  { %2329 = vmatprep.subr.bf16.mxu0 %v3451_v27  ;;  %v3581_v27 = vld [vmem:[#allocation15 + $0x320] ss:$120 sps:$4 sm:$0xff]  }
 0x326   :  { %2330 = vmatpush1.bf16.msra.mxu0 %v3449_v28  ;;  %v3400_v28 = vld [vmem:[#allocation15 + $0x1ec] ss:$120 sps:$4 sm:$0xff]  }
 0x327   :  { %2331 = vmatprep.subr.bf16.mxu0 %v3457_v29  ;;  %v3589_v29 = vld [vmem:[#allocation15 + $0x234] ss:$120 sps:$4 sm:$0xff]  }
 0x32a   :  { %2332 = vmatpush1.bf16.msra.mxu0 %v3455_v30  ;;  %v3398_v30 = vld [vmem:[#allocation15 + $0x1e8] ss:$120 sps:$4 sm:$0xff]  }
 0x32b   :  { %2399 = vmatprep.subr.bf16.mxu0 %v3463_v31  ;;  %v3587_v31 = vld [vmem:[#allocation15 + $0x230] ss:$120 sps:$4 sm:$0xff]  }
 0x32d   :  { %2350 = vmatmul.mubr.bf16.vlgmr.msra.gmra.mxu0 %v4081_v11 }
 0x32e   :  { %2400 = vmatpush1.bf16.msra.mxu0 %v3461_v32  ;;  %2431 = vmatprep.mubr.bf16.mxu0 %v3928_v62  ;;  %v3406_v32 = vld [vmem:[#allocation15 + $0xfc] ss:$120 sps:$4 sm:$0xff]  }
 0x32f   :  { %2401 = vmatprep.subr.bf16.mxu0 %v3469_v33  ;;  %v3595_v33 = vld [vmem:[#allocation15 + $0x144] ss:$120 sps:$4 sm:$0xff]  }
 0x332   :  { %2402 = vmatpush1.bf16.msra.mxu0 %v3467_v34  ;;  %v3404_v34 = vld [vmem:[#allocation15 + $0xf8] ss:$120 sps:$4 sm:$0xff]  }
 0x333   :  { %2403 = vmatprep.subr.bf16.mxu0 %v3475_v35  ;;  %v3593_v35 = vld [vmem:[#allocation15 + $0x140] ss:$120 sps:$4 sm:$0xff]  }
 0x336   :  { %2404 = vmatpush1.bf16.msra.mxu0 %v3473_v36  ;;  %v3412_v36 = vld [vmem:[#allocation15 + $0xc] ss:$120 sps:$4 sm:$0xff]  }
 0x337   :  { %2405 = vmatprep.subr.bf16.mxu0 %v3481_v37  ;;  %v3601_v37 = vld [vmem:[#allocation15 + $0x54] ss:$120 sps:$4 sm:$0xff]  }
 0x33a   :  { %2406 = vmatpush1.bf16.msra.mxu0 %v3479_v38  ;;  %v3410_v38 = vld [vmem:[#allocation15 + $0x8] ss:$120 sps:$4 sm:$0xff]  }
 0x33b   :  { %2407 = vmatprep.subr.bf16.mxu0 %v3487_v39  ;;  %v3599_v39 = vld [vmem:[#allocation15 + $0x50] ss:$120 sps:$4 sm:$0xff]  }
 0x33e   :  { %2408 = vmatpush1.bf16.msra.mxu0 %v3485_v40  ;;  %v3418_v40 = vld [vmem:[#allocation15 + $0x6ac] ss:$120 sps:$4 sm:$0xff]  }
 0x33f   :  { %2409 = vmatprep.subr.bf16.mxu0 %v3493_v41  ;;  %v3607_v41 = vld [vmem:[#allocation15 + $0x6f4] ss:$120 sps:$4 sm:$0xff]  }
 0x342   :  { %2410 = vmatpush1.bf16.msra.mxu0 %v3491_v42  ;;  %v3416_v42 = vld [vmem:[#allocation15 + $0x6a8] ss:$120 sps:$4 sm:$0xff]  }
 0x343   :  { %2411 = vmatprep.subr.bf16.mxu0 %v3499_v43  ;;  %v3605_v43 = vld [vmem:[#allocation15 + $0x6f0] ss:$120 sps:$4 sm:$0xff]  }
 0x346   :  { %2412 = vmatpush1.bf16.msra.mxu0 %v3497_v44  ;;  %v3424_v44 = vld [vmem:[#allocation15 + $0x5bc] ss:$120 sps:$4 sm:$0xff]  }
 0x347   :  { %2413 = vmatprep.subr.bf16.mxu0 %v3505_v45  ;;  %v3613_v45 = vld [vmem:[#allocation15 + $0x604] ss:$120 sps:$4 sm:$0xff]  }
 0x34a   :  { %2414 = vmatpush1.bf16.msra.mxu0 %v3503_v46  ;;  %v3422_v46 = vld [vmem:[#allocation15 + $0x5b8] ss:$120 sps:$4 sm:$0xff]  }
 0x34b   :  { %2481 = vmatprep.subr.bf16.mxu0 %v3511_v47  ;;  %v3611_v47 = vld [vmem:[#allocation15 + $0x600] ss:$120 sps:$4 sm:$0xff]  }
 0x34d   :  { %2432 = vmatmul.mubr.bf16.vlgmr.msra.gmra.mxu0 %v4081_v11 }
 0x34e   :  { %2482 = vmatpush1.bf16.msra.mxu0 %v3509_v48  ;;  %2513 = vmatprep.mubr.bf16.mxu0 %v3928_v62  ;;  %v3430_v48 = vld [vmem:[#allocation15 + $0x4cc] ss:$120 sps:$4 sm:$0xff]  }
 0x34f   :  { %2483 = vmatprep.subr.bf16.mxu0 %v3517_v49  ;;  %v3619_v49 = vld [vmem:[#allocation15 + $0x514] ss:$120 sps:$4 sm:$0xff]  }
 0x352   :  { %2484 = vmatpush1.bf16.msra.mxu0 %v3515_v50  ;;  %v3428_v50 = vld [vmem:[#allocation15 + $0x4c8] ss:$120 sps:$4 sm:$0xff]  }
 0x353   :  { %2485 = vmatprep.subr.bf16.mxu0 %v3523_v51  ;;  %v3617_v51 = vld [vmem:[#allocation15 + $0x510] ss:$120 sps:$4 sm:$0xff]  }
 0x356   :  { %2486 = vmatpush1.bf16.msra.mxu0 %v3521_v52  ;;  %v3436_v52 = vld [vmem:[#allocation15 + $0x3dc] ss:$120 sps:$4 sm:$0xff]  }
 0x357   :  { %2487 = vmatprep.subr.bf16.mxu0 %v3529_v53  ;;  %v3625_v53 = vld [vmem:[#allocation15 + $0x424] ss:$120 sps:$4 sm:$0xff]  }
 0x35a   :  { %2488 = vmatpush1.bf16.msra.mxu0 %v3527_v54  ;;  %v3434_v54 = vld [vmem:[#allocation15 + $0x3d8] ss:$120 sps:$4 sm:$0xff]  }
 0x35b   :  { %2489 = vmatprep.subr.bf16.mxu0 %v3535_v55  ;;  %v3623_v55 = vld [vmem:[#allocation15 + $0x420] ss:$120 sps:$4 sm:$0xff]  }
 0x35e   :  { %2490 = vmatpush1.bf16.msra.mxu0 %v3533_v56  ;;  %v3442_v56 = vld [vmem:[#allocation15 + $0x2ec] ss:$120 sps:$4 sm:$0xff]  }
 0x35f   :  { %2491 = vmatprep.subr.bf16.mxu0 %v3541_v57  ;;  %v3631_v57 = vld [vmem:[#allocation15 + $0x334] ss:$120 sps:$4 sm:$0xff]  }
 0x362   :  { %2492 = vmatpush1.bf16.msra.mxu0 %v3539_v58  ;;  %v3440_v58 = vld [vmem:[#allocation15 + $0x2e8] ss:$120 sps:$4 sm:$0xff]  }
 0x363   :  { %2493 = vmatprep.subr.bf16.mxu0 %v3547_v59  ;;  %v3629_v59 = vld [vmem:[#allocation15 + $0x330] ss:$120 sps:$4 sm:$0xff]  }
 0x366   :  { %2494 = vmatpush1.bf16.msra.mxu0 %v3545_v60  ;;  %v3448_v60 = vld [vmem:[#allocation15 + $0x1fc] ss:$120 sps:$4 sm:$0xff]  }
 0x367   :  { %2495 = vmatprep.subr.bf16.mxu0 %v3553_v63  ;;  %v3446_v63 = vld [vmem:[#allocation15 + $0x1f8] ss:$120 sps:$4 sm:$0xff]  }
 0x36a   :  { %2496 = vmatpush1.bf16.msra.mxu0 %v3551_v1  ;;  %v3454_v1 = vld [vmem:[#allocation15 + $0x10c] ss:$120 sps:$4 sm:$0xff]  }
 0x36b   :  { %2563 = vmatprep.subr.bf16.mxu0 %v3559_v5  ;;  %v3460_v5 = vld [vmem:[#allocation15 + $0x1c] ss:$120 sps:$4 sm:$0xff]  }
 0x36d   :  { %2514 = vmatmul.mubr.bf16.vlgmr.msra.gmra.mxu0 %v4081_v11 }
 0x36e   :  { %2564 = vmatpush1.bf16.msra.mxu0 %v3557_v8  ;;  %2595 = vmatprep.mubr.bf16.mxu0 %v3928_v62  ;;  %v3647_v8 = vld [vmem:[#allocation15 + $0x60] ss:$120 sps:$4 sm:$0xff]  }
 0x36f   :  { %2565 = vmatprep.subr.bf16.mxu0 %v3565_v13  ;;  %v3653_v13 = vld [vmem:[#allocation15 + $0x700] ss:$120 sps:$4 sm:$0xff]  }
 0x372   :  { %2566 = vmatpush1.bf16.msra.mxu0 %v3563_v15  ;;  %v3472_v15 = vld [vmem:[#allocation15 + $0x5cc] ss:$120 sps:$4 sm:$0xff]  }
 0x373   :  { %2567 = vmatprep.subr.bf16.mxu0 %v3571_v17 }
 0x376   :  { %2568 = vmatpush1.bf16.msra.mxu0 %v3569_v19  ;;  %v3661_v19 = vld [vmem:[#allocation15 + $0x614] ss:$120 sps:$4 sm:$0xff]  }
 0x377   :  { %2569 = vmatprep.subr.bf16.mxu0 %v3577_v21 }
 0x37a   :  { %2570 = vmatpush1.bf16.msra.mxu0 %v3575_v23  ;;  %v3659_v23 = vld [vmem:[#allocation15 + $0x610] ss:$120 sps:$4 sm:$0xff]  }
 0x37b   :  { %2571 = vmatprep.subr.bf16.mxu0 %v3583_v25 }
 0x37e   :  { %2572 = vmatpush1.bf16.msra.mxu0 %v3581_v27 }
 0x37f   :  { %2573 = vmatprep.subr.bf16.mxu0 %v3589_v29  ;;  %v3667_v29 = vld [vmem:[#allocation15 + $0x524] ss:$120 sps:$4 sm:$0xff]  }
 0x382   :  { %2574 = vmatpush1.bf16.msra.mxu0 %v3587_v31 }
 0x383   :  { %2575 = vmatprep.subr.bf16.mxu0 %v3595_v33  ;;  %v3665_v33 = vld [vmem:[#allocation15 + $0x520] ss:$120 sps:$4 sm:$0xff]  }
 0x386   :  { %2576 = vmatpush1.bf16.msra.mxu0 %v3593_v35 }
 0x387   :  { %2577 = vmatprep.subr.bf16.mxu0 %v3601_v37  ;;  %v3673_v37 = vld [vmem:[#allocation15 + $0x434] ss:$120 sps:$4 sm:$0xff]  }
 0x38a   :  { %2578 = vmatpush1.bf16.msra.mxu0 %v3599_v39  ;;  %v3671_v39 = vld [vmem:[#allocation15 + $0x430] ss:$120 sps:$4 sm:$0xff]  }
 0x38b   :  { %2645 = vmatprep.subr.bf16.mxu0 %v3607_v41  ;;  %v3679_v41 = vld [vmem:[#allocation15 + $0x344] ss:$120 sps:$4 sm:$0xff]  }
 0x38d   :  { %2596 = vmatmul.mubr.bf16.vlgmr.msra.gmra.mxu0 %v4081_v11 }
 0x38e   :  { %2646 = vmatpush1.bf16.msra.mxu0 %v3605_v43  ;;  %2677 = vmatprep.mubr.bf16.mxu0 %v3928_v62  ;;  %v3677_v43 = vld [vmem:[#allocation15 + $0x340] ss:$120 sps:$4 sm:$0xff]  }
 0x38f   :  { %2647 = vmatprep.subr.bf16.mxu0 %v3613_v45  ;;  %v3685_v45 = vld [vmem:[#allocation15 + $0x254] ss:$120 sps:$4 sm:$0xff]  }
 0x392   :  { %2648 = vmatpush1.bf16.msra.mxu0 %v3611_v47  ;;  %v3683_v47 = vld [vmem:[#allocation15 + $0x250] ss:$120 sps:$4 sm:$0xff]  }
 0x393   :  { %2649 = vmatprep.subr.bf16.mxu0 %v3619_v49  ;;  %v3691_v49 = vld [vmem:[#allocation15 + $0x164] ss:$120 sps:$4 sm:$0xff]  }
 0x396   :  { %2650 = vmatpush1.bf16.msra.mxu0 %v3617_v51  ;;  %v3689_v51 = vld [vmem:[#allocation15 + $0x160] ss:$120 sps:$4 sm:$0xff]  }
 0x397   :  { %2651 = vmatprep.subr.bf16.mxu0 %v3625_v53  ;;  %v3697_v53 = vld [vmem:[#allocation15 + $0x74] ss:$120 sps:$4 sm:$0xff]  }
 0x39a   :  { %2652 = vmatpush1.bf16.msra.mxu0 %v3623_v55  ;;  %v3695_v55 = vld [vmem:[#allocation15 + $0x70] ss:$120 sps:$4 sm:$0xff]  }
 0x39b   :  { %2653 = vmatprep.subr.bf16.mxu0 %v3631_v57  ;;  %v3512_v57 = vld [vmem:[#allocation15 + $0x6c8] ss:$120 sps:$4 sm:$0xff]  }
 0x39e   :  { %2654 = vmatpush1.bf16.msra.mxu0 %v3629_v59  ;;  %v3520_v59 = vld [vmem:[#allocation15 + $0x5dc] ss:$120 sps:$4 sm:$0xff]  }
 0x3ab   :  { %v468_v0 = vpop.f32.mrf.mxu1 }
 0x3ac   :  { %v469_v2 = vadd.f32 %v2984_v61, %v468_v0  ;;  %v3637_v61 = vld [vmem:[#allocation15 + $0x244] ss:$120 sps:$4 sm:$0xff]   ;;  %v3635_v0 = vld [vmem:[#allocation15 + $0x240] ss:$120 sps:$4 sm:$0xff]  }
 0x3ad   :  { %v3295_v3 = vpop.f32.mrf.mxu1  ;;  %2655 = vmatprep.subr.bf16.mxu0 %v3637_v61 }
 0x3ae   :  { %v474_v4 = vmax.f32 %v469_v2, 0.0  ;;  %2656 = vmatpush1.bf16.msra.mxu0 %v3635_v0  ;;  %v3643_v2 = vld [vmem:[#allocation15 + $0x154] ss:$120 sps:$4 sm:$0xff]   ;;  %v3452_v3 = vld [vmem:[#allocation15 + $0x108] ss:$120 sps:$4 sm:$0xff]  }
 0x3af   :  { %v471_v6 = vpop.f32.mrf.mxu1  ;;  %2657 = vmatprep.subr.bf16.mxu0 %v3643_v2  ;;  %v3526_v2 = vld [vmem:[#allocation15 + $0x4ec] ss:$120 sps:$4 sm:$0xff]  }
 0x3b0   :  { %v477_v9 = vpack.c.bf16 %v474_v4, %v474_v4  ;;  %476 = vst.msk [vmem:[#allocation18] sm:$0x3] %vm475_vm3, %v474_v4  ;;  %v3641_v4 = vld [vmem:[#allocation15 + $0x150] ss:$120 sps:$4 sm:$0xff]   ;;  %v3649_v6 = vld [vmem:[#allocation15 + $0x64] ss:$120 sps:$4 sm:$0xff]  }
 0x3b1   :  { %v3296_v12 = vpop.f32.mrf.mxu1 }
 0x3b2   :  { %3304 = vmatmul.mubr.msk.bf16.vlgmr.msra.gmra.mxu1 %vm509_vm4, %v477_v9  ;;  %2658 = vmatpush1.bf16.msra.mxu0 %v3641_v4  ;;  %v3466_v9 = vld [vmem:[#allocation15 + $0x6bc] ss:$120 sps:$4 sm:$0xff]   ;;  %v3464_v12 = vld [vmem:[#allocation15 + $0x6b8] ss:$120 sps:$4 sm:$0xff]  }
 0x3b3   :  { %2195 = vmatpush1.bf16.msra.mxu1 %v3368_v7  ;;  %2226 = vmatprep.mubr.bf16.mxu1 %v3928_v62  ;;  %v3458_v7 = vld [vmem:[#allocation15 + $0x18] ss:$120 sps:$4 sm:$0xff]  }
 0x3b4   :  { %2196 = vmatprep.subr.bf16.mxu1 %v3376_v10  ;;  %2659 = vmatprep.subr.bf16.mxu0 %v3649_v6  ;;  %v3655_v10 = vld [vmem:[#allocation15 + $0x704] ss:$120 sps:$4 sm:$0xff]   ;;  %v3524_v6 = vld [vmem:[#allocation15 + $0x4e8] ss:$120 sps:$4 sm:$0xff]  }
 0x3b6   :  { %2660 = vmatpush1.bf16.msra.mxu0 %v3647_v8 }
 0x3b7   :  { %2197 = vmatpush1.bf16.msra.mxu1 %v3374_v14  ;;  %v803_v14 = vlaneseq  ;;  %2727 = vmatprep.subr.bf16.mxu0 %v3655_v10 }
 0x3b8   :  { %2198 = vmatprep.subr.bf16.mxu1 %v3382_v16  ;;  %v2187_v16 = vpop.f32.mrf.mxu0 }
 0x3b9   :  { %v4124_v17 = vshrl.u32 %v803_v14, 7  ;;  %2678 = vmatmul.mubr.bf16.vlgmr.msra.gmra.mxu0 %v4081_v11  ;;  %v3536_v14 = vld [vmem:[#allocation15 + $0x308] ss:$120 sps:$4 sm:$0xff]  }
 0x3ba   :  { %2728 = vmatpush1.bf16.msra.mxu0 %v3653_v13  ;;  %2759 = vmatprep.mubr.bf16.mxu0 %v3928_v62  ;;  %v3538_v13 = vld [vmem:[#allocation15 + $0x30c] ss:$120 sps:$4 sm:$0xff]  }
 0x3bb   :  { %2199 = vmatpush1.bf16.msra.mxu1 %v3380_v18  ;;  %v4128_v18 = vld [vmem:[#allocation17] sm:$0xff]  ;;  %v4132_v21 = vsub.s32 0, %v4124_v17  ;;  %v4135_v25 = vsub.s32 1, %v4124_v17  ;;  %2729 = vmatprep.subr.bf16.mxu0 %v3661_v19  ;;  %v4157_v0 = vsub.s32 5, %v4124_v17 }
 0x3bc   :  { %2200 = vmatprep.subr.bf16.mxu1 %v3388_v20  ;;  %v3470_v20 = vld [vmem:[#allocation15 + $0x5c8] ss:$120 sps:$4 sm:$0xff]   ;;  %v3550_v19 = vld [vmem:[#allocation15 + $0x12c] ss:$120 sps:$4 sm:$0xff]  }
 0x3bd   :  { %v826_v4 = vrot.slane %v4128_v18, %v4157_v0 }
 0x3be   :  { %2730 = vmatpush1.bf16.msra.mxu0 %v3659_v23  ;;  %v3554_v23 = vld [vmem:[#allocation15 + $0x38] ss:$120 sps:$4 sm:$0xff]  }
 0x3bf   :  { %2201 = vmatpush1.bf16.msra.mxu1 %v3386_v22  ;;  %v2189_v22 = vpop.f32.mrf.mxu0  ;;  %2731 = vmatprep.subr.bf16.mxu0 %v3667_v29  ;;  %v3568_v29 = vld [vmem:[#allocation15 + $0x5ec] ss:$120 sps:$4 sm:$0xff]  }
 0x3c0   :  { %2202 = vmatprep.subr.bf16.mxu1 %v3394_v24  ;;  %v3478_v24 = vld [vmem:[#allocation15 + $0x4dc] ss:$120 sps:$4 sm:$0xff]  }
 0x3c1   :  { %v2191_v27 = vpop.f32.mrf.mxu0 }
 0x3c2   :  { %2732 = vmatpush1.bf16.msra.mxu0 %v3665_v33  ;;  %v3560_v27 = vld [vmem:[#allocation15 + $0x6d8] ss:$120 sps:$4 sm:$0xff]  }
 0x3c3   :  { %2203 = vmatpush1.bf16.msra.mxu1 %v3392_v26  ;;  %v806_v26 = vrot.slane %v4128_v18, %v4132_v21  ;;  %2733 = vmatprep.subr.bf16.mxu0 %v3673_v37 }
 0x3c4   :  { %2204 = vmatprep.subr.bf16.mxu1 %v3400_v28  ;;  %v810_v28 = vrot.slane %v4128_v18, %v4135_v25 }
 0x3c5   :  { %v4142_v31 = vadd.f32 %v2187_v16, %v806_v26  ;;  %v3542_v16 = vld [vmem:[#allocation15 + $0x218] ss:$120 sps:$4 sm:$0xff]   ;;  %v4167_v26 = vld [vmem:[#allocation17 + $0x8] sm:$0xff] }
 0x3c6   :  { %v4144_v35 = vadd.f32 %v2189_v22, %v810_v28  ;;  %2734 = vmatpush1.bf16.msra.mxu0 %v3671_v39  ;;  %v3556_v22 = vld [vmem:[#allocation15 + $0x3c] ss:$120 sps:$4 sm:$0xff]   ;;  %v838_v28 = vrot.slane %v4167_v26, %v4132_v21 }
 0x3c7   :  { %2205 = vmatpush1.bf16.msra.mxu1 %v3398_v30  ;;  %v3476_v30 = vld [vmem:[#allocation15 + $0x4d8] ss:$120 sps:$4 sm:$0xff]   ;;  %2735 = vmatprep.subr.bf16.mxu0 %v3679_v41 }
 0x3c8   :  { %2206 = vmatprep.subr.bf16.mxu1 %v3406_v32  ;;  %v2192_v32 = vpop.f32.mrf.mxu0  ;;  %v3572_v41 = vld [vmem:[#allocation15 + $0x4f8] ss:$120 sps:$4 sm:$0xff]  }
 0x3c9   :  { %v3566_v32 = vld [vmem:[#allocation15 + $0x5e8] ss:$120 sps:$4 sm:$0xff]  }
 0x3ca   :  { %2736 = vmatpush1.bf16.msra.mxu0 %v3677_v43 }
 0x3cb   :  { %2207 = vmatpush1.bf16.msra.mxu1 %v3404_v34  ;;  %v3484_v34 = vld [vmem:[#allocation15 + $0x3ec] ss:$120 sps:$4 sm:$0xff]   ;;  %2737 = vmatprep.subr.bf16.mxu0 %v3685_v45  ;;  %v3578_v45 = vld [vmem:[#allocation15 + $0x408] ss:$120 sps:$4 sm:$0xff]  }
 0x3cc   :  { %2208 = vmatprep.subr.bf16.mxu1 %v3412_v36  ;;  %v2798_v36 = vcombine.low %v4142_v31, %v4144_v35 }
 0x3ce   :  { %2738 = vmatpush1.bf16.msra.mxu0 %v3683_v47  ;;  %v3584_v47 = vld [vmem:[#allocation15 + $0x318] ss:$120 sps:$4 sm:$0xff]  }
 0x3cf   :  { %2209 = vmatpush1.bf16.msra.mxu1 %v3410_v38  ;;  %v3482_v38 = vld [vmem:[#allocation15 + $0x3e8] ss:$120 sps:$4 sm:$0xff]   ;;  %2739 = vmatprep.subr.bf16.mxu0 %v3691_v49 }
 0x3d0   :  { %2276 = vmatprep.subr.bf16.mxu1 %v3418_v40  ;;  %v3490_v40 = vld [vmem:[#allocation15 + $0x2fc] ss:$120 sps:$4 sm:$0xff]   ;;  %v3590_v49 = vld [vmem:[#allocation15 + $0x228] ss:$120 sps:$4 sm:$0xff]  }
 0x3d2   :  { %2227 = vmatmul.mubr.bf16.vlgmr.msra.gmra.mxu1 %v4081_v11  ;;  %2740 = vmatpush1.bf16.msra.mxu0 %v3689_v51  ;;  %v3596_v51 = vld [vmem:[#allocation15 + $0x138] ss:$120 sps:$4 sm:$0xff]  }
 0x3d3   :  { %2277 = vmatpush1.bf16.msra.mxu1 %v3416_v42  ;;  %2308 = vmatprep.mubr.bf16.mxu1 %v3928_v62  ;;  %v3488_v42 = vld [vmem:[#allocation15 + $0x2f8] ss:$120 sps:$4 sm:$0xff]  }
 0x3d4   :  { %2278 = vmatprep.subr.bf16.mxu1 %v3424_v44  ;;  %v3496_v44 = vld [vmem:[#allocation15 + $0x20c] ss:$120 sps:$4 sm:$0xff]   ;;  %2741 = vmatprep.subr.bf16.mxu0 %v3697_v53  ;;  %v3602_v53 = vld [vmem:[#allocation15 + $0x48] ss:$120 sps:$4 sm:$0xff]  }
 0x3d6   :  { %2742 = vmatpush1.bf16.msra.mxu0 %v3695_v55  ;;  %v3608_v55 = vld [vmem:[#allocation15 + $0x6e8] ss:$120 sps:$4 sm:$0xff]  }
 0x3d7   :  { %2279 = vmatpush1.bf16.msra.mxu1 %v3422_v46  ;;  %v3494_v46 = vld [vmem:[#allocation15 + $0x208] ss:$120 sps:$4 sm:$0xff]  }
 0x3d8   :  { %2280 = vmatprep.subr.bf16.mxu1 %v3430_v48  ;;  %v3502_v48 = vld [vmem:[#allocation15 + $0x11c] ss:$120 sps:$4 sm:$0xff]  }
 0x3d9   :  { %2760 = vmatmul.mubr.bf16.vlgmr.msra.gmra.mxu0 %v4081_v11 }
 0x3db   :  { %2281 = vmatpush1.bf16.msra.mxu1 %v3428_v50  ;;  %v3500_v50 = vld [vmem:[#allocation15 + $0x118] ss:$120 sps:$4 sm:$0xff]  }
 0x3dc   :  { %2282 = vmatprep.subr.bf16.mxu1 %v3436_v52  ;;  %v3508_v52 = vld [vmem:[#allocation15 + $0x2c] ss:$120 sps:$4 sm:$0xff]  }
 0x3df   :  { %2283 = vmatpush1.bf16.msra.mxu1 %v3434_v54  ;;  %v3506_v54 = vld [vmem:[#allocation15 + $0x28] ss:$120 sps:$4 sm:$0xff]  }
 0x3e0   :  { %2284 = vmatprep.subr.bf16.mxu1 %v3442_v56  ;;  %v3514_v56 = vld [vmem:[#allocation15 + $0x6cc] ss:$120 sps:$4 sm:$0xff]  }
 0x3e3   :  { %2285 = vmatpush1.bf16.msra.mxu1 %v3440_v58  ;;  %v4149_v58 = vsub.s32 4, %v4124_v17 }
 0x3e4   :  { %2286 = vmatprep.subr.bf16.mxu1 %v3448_v60  ;;  %v2269_v60 = vpop.f32.mrf.mxu0 }
 0x3e5   :  { %v822_v61 = vrot.slane %v4128_v18, %v4149_v58 }
 0x3e7   :  { %2287 = vmatpush1.bf16.msra.mxu1 %v3446_v63  ;;  %v3518_v63 = vld [vmem:[#allocation15 + $0x5d8] ss:$120 sps:$4 sm:$0xff]  }
 0x3e8   :  { %2288 = vmatprep.subr.bf16.mxu1 %v3454_v1  ;;  %v2271_v1 = vpop.f32.mrf.mxu0 }
 0x3eb   :  { %2289 = vmatpush1.bf16.msra.mxu1 %v3452_v3  ;;  %v4159_v3 = vadd.f32 %v2269_v60, %v822_v61  ;;  %v3614_v60 = vld [vmem:[#allocation15 + $0x5f8] ss:$120 sps:$4 sm:$0xff]  }
 0x3ec   :  { %2290 = vmatprep.subr.bf16.mxu1 %v3460_v5  ;;  %v2273_v5 = vpop.f32.mrf.mxu0 }
 0x3ee   :  { %v2274_v8 = vpop.f32.mrf.mxu0 }
 0x3ef   :  { %2291 = vmatpush1.bf16.msra.mxu1 %v3458_v7  ;;  %v4163_v7 = vadd.f32 %v2271_v1, %v826_v4 }
 0x3f0   :  { %2358 = vmatprep.subr.bf16.mxu1 %v3466_v9  ;;  %v3532_v9 = vld [vmem:[#allocation15 + $0x3fc] ss:$120 sps:$4 sm:$0xff]  }
 0x3f1   :  { %v2815_v10 = vcombine.low %v4159_v3, %v4163_v7 }
 0x3f2   :  { %2309 = vmatmul.mubr.bf16.vlgmr.msra.gmra.mxu1 %v4081_v11 }
 0x3f3   :  { %2359 = vmatpush1.bf16.msra.mxu1 %v3464_v12  ;;  %2390 = vmatprep.mubr.bf16.mxu1 %v3928_v62  ;;  %v3530_v12 = vld [vmem:[#allocation15 + $0x3f8] ss:$120 sps:$4 sm:$0xff]  }
 0x3f4   :  { %2360 = vmatprep.subr.bf16.mxu1 %v3472_v15  ;;  %v3544_v15 = vld [vmem:[#allocation15 + $0x21c] ss:$120 sps:$4 sm:$0xff]  }
 0x3f7   :  { %2361 = vmatpush1.bf16.msra.mxu1 %v3470_v20  ;;  %v3548_v20 = vld [vmem:[#allocation15 + $0x128] ss:$120 sps:$4 sm:$0xff]  }
 0x3f8   :  { %2362 = vmatprep.subr.bf16.mxu1 %v3478_v24  ;;  %v3562_v24 = vld [vmem:[#allocation15 + $0x6dc] ss:$120 sps:$4 sm:$0xff]  }
 0x3fb   :  { %2363 = vmatpush1.bf16.msra.mxu1 %v3476_v30  ;;  %v2351_v30 = vpop.f32.mrf.mxu0 }
 0x3fc   :  { %2364 = vmatprep.subr.bf16.mxu1 %v3484_v34  ;;  %v4173_v33 = vadd.f32 %v2351_v30, %v838_v28  ;;  %v842_v34 = vrot.slane %v4167_v26, %v4135_v25  ;;  %v4193_v28 = vld [vmem:[#allocation17 + $0x10] sm:$0xff] }
 0x3fd   :  { %v2353_v37 = vpop.f32.mrf.mxu0  ;;  %v870_v30 = vrot.slane %v4193_v28, %v4132_v21 }
 0x3fe   :  { %v4177_v39 = vadd.f32 %v2353_v37, %v842_v34  ;;  %v3664_v34 = vld [vmem:[#allocation15 + $0x60c] ss:$120 sps:$4 sm:$0xff]  }
 0x3ff   :  { %2365 = vmatpush1.bf16.msra.mxu1 %v3482_v38  ;;  %v3574_v38 = vld [vmem:[#allocation15 + $0x4fc] ss:$120 sps:$4 sm:$0xff]  }
 0x400   :  { %2366 = vmatprep.subr.bf16.mxu1 %v3490_v40  ;;  %v2355_v40 = vpop.f32.mrf.mxu0 }
 0x402   :  { %v2356_v43 = vpop.f32.mrf.mxu0 }
 0x403   :  { %2367 = vmatpush1.bf16.msra.mxu1 %v3488_v42  ;;  %v2832_v42 = vcombine.low %v4173_v33, %v4177_v39 }
 0x404   :  { %2368 = vmatprep.subr.bf16.mxu1 %v3496_v44  ;;  %v3580_v44 = vld [vmem:[#allocation15 + $0x40c] ss:$120 sps:$4 sm:$0xff]  }
 0x407   :  { %2369 = vmatpush1.bf16.msra.mxu1 %v3494_v46  ;;  %v3586_v46 = vld [vmem:[#allocation15 + $0x31c] ss:$120 sps:$4 sm:$0xff]  }
 0x408   :  { %2370 = vmatprep.subr.bf16.mxu1 %v3502_v48  ;;  %v3592_v48 = vld [vmem:[#allocation15 + $0x22c] ss:$120 sps:$4 sm:$0xff]  }
 0x40b   :  { %2371 = vmatpush1.bf16.msra.mxu1 %v3500_v50  ;;  %v3598_v50 = vld [vmem:[#allocation15 + $0x13c] ss:$120 sps:$4 sm:$0xff]  }
 0x40c   :  { %2372 = vmatprep.subr.bf16.mxu1 %v3508_v52  ;;  %v3604_v52 = vld [vmem:[#allocation15 + $0x4c] ss:$120 sps:$4 sm:$0xff]  }
 0x40f   :  { %2373 = vmatpush1.bf16.msra.mxu1 %v3506_v54  ;;  %v3610_v54 = vld [vmem:[#allocation15 + $0x6ec] ss:$120 sps:$4 sm:$0xff]  }
 0x410   :  { %2440 = vmatprep.subr.bf16.mxu1 %v3514_v56  ;;  %v854_v56 = vrot.slane %v4167_v26, %v4149_v58 }
 0x412   :  { %2391 = vmatmul.mubr.bf16.vlgmr.msra.gmra.mxu1 %v4081_v11 }
 0x413   :  { %2441 = vmatpush1.bf16.msra.mxu1 %v3512_v57  ;;  %2472 = vmatprep.mubr.bf16.mxu1 %v3928_v62  ;;  %v3616_v57 = vld [vmem:[#allocation15 + $0x5fc] ss:$120 sps:$4 sm:$0xff]  }
 0x414   :  { %2442 = vmatprep.subr.bf16.mxu1 %v3520_v59  ;;  %v2433_v59 = vpop.f32.mrf.mxu0 }
 0x415   :  { %v4185_v61 = vadd.f32 %v2433_v59, %v854_v56  ;;  %v3682_v56 = vld [vmem:[#allocation15 + $0x33c] ss:$120 sps:$4 sm:$0xff]   ;;  %v3688_v59 = vld [vmem:[#allocation15 + $0x24c] ss:$120 sps:$4 sm:$0xff]  }
 0x416   :  { %v2435_v1 = vpop.f32.mrf.mxu0 }
 0x417   :  { %2443 = vmatpush1.bf16.msra.mxu1 %v3518_v63  ;;  %v858_v63 = vrot.slane %v4167_v26, %v4157_v0 }
 0x418   :  { %2444 = vmatprep.subr.bf16.mxu1 %v3526_v2  ;;  %v3622_v2 = vld [vmem:[#allocation15 + $0x50c] ss:$120 sps:$4 sm:$0xff]   ;;  %v2437_v5 = vpop.f32.mrf.mxu0 }
 0x419   :  { %v4189_v4 = vadd.f32 %v2435_v1, %v858_v63  ;;  %v3694_v63 = vld [vmem:[#allocation15 + $0x15c] ss:$120 sps:$4 sm:$0xff]   ;;  %v3692_v1 = vld [vmem:[#allocation15 + $0x158] ss:$120 sps:$4 sm:$0xff]   ;;  %v3698_v5 = vld [vmem:[#allocation15 + $0x68] ss:$120 sps:$4 sm:$0xff]  }
 0x41b   :  { %2445 = vmatpush1.bf16.msra.mxu1 %v3524_v6  ;;  %v3620_v6 = vld [vmem:[#allocation15 + $0x508] ss:$120 sps:$4 sm:$0xff]   ;;  %v2849_v8 = vcombine.low %v4185_v61, %v4189_v4 }
 0x41c   :  { %2446 = vmatprep.subr.bf16.mxu1 %v3532_v9  ;;  %v2438_v9 = vpop.f32.mrf.mxu0 }
 0x41d   :  { %v3929_v9 = vmov 1983009808  }
 0x41f   :  { %2447 = vmatpush1.bf16.msra.mxu1 %v3530_v12  ;;  %v3628_v12 = vld [vmem:[#allocation15 + $0x41c] ss:$120 sps:$4 sm:$0xff]  }
 0x420   :  { %2448 = vmatprep.subr.bf16.mxu1 %v3538_v13  ;;  %v3626_v13 = vld [vmem:[#allocation15 + $0x418] ss:$120 sps:$4 sm:$0xff]  }
 0x423   :  { %2449 = vmatpush1.bf16.msra.mxu1 %v3536_v14  ;;  %v3634_v14 = vld [vmem:[#allocation15 + $0x32c] ss:$120 sps:$4 sm:$0xff]  }
 0x424   :  { %2450 = vmatprep.subr.bf16.mxu1 %v3544_v15  ;;  %v3632_v15 = vld [vmem:[#allocation15 + $0x328] ss:$120 sps:$4 sm:$0xff]  }
 0x427   :  { %2451 = vmatpush1.bf16.msra.mxu1 %v3542_v16  ;;  %v3640_v16 = vld [vmem:[#allocation15 + $0x23c] ss:$120 sps:$4 sm:$0xff]  }
 0x428   :  { %2452 = vmatprep.subr.bf16.mxu1 %v3550_v19  ;;  %v3638_v19 = vld [vmem:[#allocation15 + $0x238] ss:$120 sps:$4 sm:$0xff]  }
 0x42b   :  { %2453 = vmatpush1.bf16.msra.mxu1 %v3548_v20  ;;  %v3646_v20 = vld [vmem:[#allocation15 + $0x14c] ss:$120 sps:$4 sm:$0xff]  }
 0x42c   :  { %2454 = vmatprep.subr.bf16.mxu1 %v3556_v22  ;;  %v3644_v22 = vld [vmem:[#allocation15 + $0x148] ss:$120 sps:$4 sm:$0xff]  }
 0x42d   :  { %v2515_v37 = vpop.f32.mrf.mxu0 }
 0x42e   :  { %v4199_v43 = vadd.f32 %v2515_v37, %v870_v30 }
 0x42f   :  { %2455 = vmatpush1.bf16.msra.mxu1 %v3554_v23  ;;  %v3652_v23 = vld [vmem:[#allocation15 + $0x5c] ss:$120 sps:$4 sm:$0xff]  }
 0x430   :  { %2522 = vmatprep.subr.bf16.mxu1 %v3562_v24  ;;  %v3650_v24 = vld [vmem:[#allocation15 + $0x58] ss:$120 sps:$4 sm:$0xff]  }
 0x432   :  { %2473 = vmatmul.mubr.bf16.vlgmr.msra.gmra.mxu1 %v4081_v11 }
 0x433   :  { %2523 = vmatpush1.bf16.msra.mxu1 %v3560_v27  ;;  %2554 = vmatprep.mubr.bf16.mxu1 %v3928_v62  ;;  %v3658_v27 = vld [vmem:[#allocation15 + $0x6fc] ss:$120 sps:$4 sm:$0xff]  }
 0x434   :  { %2524 = vmatprep.subr.bf16.mxu1 %v3568_v29  ;;  %v3656_v29 = vld [vmem:[#allocation15 + $0x6f8] ss:$120 sps:$4 sm:$0xff]  }
 0x437   :  { %2525 = vmatpush1.bf16.msra.mxu1 %v3566_v32  ;;  %v2988_v32 = vld [vmem:[#allocation2] ss:$0 sm:$0xff] }
 0x438   :  { %2526 = vmatprep.subr.bf16.mxu1 %v3574_v38 }
 0x43b   :  { %2527 = vmatpush1.bf16.msra.mxu1 %v3572_v41  ;;  %v3662_v41 = vld [vmem:[#allocation15 + $0x608] ss:$120 sps:$4 sm:$0xff]  }
 0x43c   :  { %2528 = vmatprep.subr.bf16.mxu1 %v3580_v44  ;;  %v874_v44 = vrot.slane %v4193_v28, %v4135_v25 }
 0x43f   :  { %2529 = vmatpush1.bf16.msra.mxu1 %v3578_v45  ;;  %v2517_v45 = vpop.f32.mrf.mxu0 }
 0x440   :  { %2530 = vmatprep.subr.bf16.mxu1 %v3586_v46 }
 0x443   :  { %2531 = vmatpush1.bf16.msra.mxu1 %v3584_v47  ;;  %v3670_v47 = vld [vmem:[#allocation15 + $0x51c] ss:$120 sps:$4 sm:$0xff]  }
 0x444   :  { %2532 = vmatprep.subr.bf16.mxu1 %v3592_v48  ;;  %v4206_v48 = vadd.f32 %v2517_v45, %v874_v44 }
 0x447   :  { %2533 = vmatpush1.bf16.msra.mxu1 %v3590_v49  ;;  %v2519_v49 = vpop.f32.mrf.mxu0 }
 0x448   :  { %2534 = vmatprep.subr.bf16.mxu1 %v3598_v50 }
 0x44b   :  { %2535 = vmatpush1.bf16.msra.mxu1 %v3596_v51  ;;  %v3668_v51 = vld [vmem:[#allocation15 + $0x518] ss:$120 sps:$4 sm:$0xff]  }
 0x44c   :  { %2536 = vmatprep.subr.bf16.mxu1 %v3604_v52  ;;  %v2520_v52 = vpop.f32.mrf.mxu0 }
 0x44d   :  { %v4248_v52 = vsub.s32 7, %v4124_v17 }
 0x44f   :  { %2537 = vmatpush1.bf16.msra.mxu1 %v3602_v53  ;;  %v834_v35 = vrot.slane %v4128_v18, %v4248_v52 }
 0x450   :  { %2604 = vmatprep.subr.bf16.mxu1 %v3610_v54  ;;  %v3676_v54 = vld [vmem:[#allocation15 + $0x42c] ss:$120 sps:$4 sm:$0xff]  }
 0x452   :  { %2555 = vmatmul.mubr.bf16.vlgmr.msra.gmra.mxu1 %v4081_v11 }
 0x453   :  { %2605 = vmatpush1.bf16.msra.mxu1 %v3608_v55  ;;  %2636 = vmatprep.mubr.bf16.mxu1 %v3928_v62  ;;  %v3674_v55 = vld [vmem:[#allocation15 + $0x428] ss:$120 sps:$4 sm:$0xff]  }
 0x454   :  { %2606 = vmatprep.subr.bf16.mxu1 %v3616_v57  ;;  %v3680_v57 = vld [vmem:[#allocation15 + $0x338] ss:$120 sps:$4 sm:$0xff]  }
 0x457   :  { %2607 = vmatpush1.bf16.msra.mxu1 %v3614_v60  ;;  %v3686_v60 = vld [vmem:[#allocation15 + $0x248] ss:$120 sps:$4 sm:$0xff]  }
 0x458   :  { %2608 = vmatprep.subr.bf16.mxu1 %v3622_v2  ;;  %v3700_v2 = vld [vmem:[#allocation15 + $0x6c] ss:$120 sps:$4 sm:$0xff]  }
 0x45b   :  { %2609 = vmatpush1.bf16.msra.mxu1 %v3620_v6  ;;  %v4211_v6 = vsub.s32 2, %v4124_v17 }
 0x45c   :  { %2610 = vmatprep.subr.bf16.mxu1 %v3628_v12  ;;  %v2801_v12 = vunpack.c.l.s4 %v3929_v9 }
 0x45f   :  { %2611 = vmatpush1.bf16.msra.mxu1 %v3626_v13  ;;  %v4214_v13 = vsub.s32 3, %v4124_v17 }
 0x460   :  { %2612 = vmatprep.subr.bf16.mxu1 %v3634_v14  ;;  %v814_v14 = vrot.slane %v4128_v18, %v4211_v6 }
 0x463   :  { %2613 = vmatpush1.bf16.msra.mxu1 %v3632_v15  ;;  %v886_v15 = vrot.slane %v4193_v28, %v4149_v58 }
 0x464   :  { %2614 = vmatprep.subr.bf16.mxu1 %v3640_v16  ;;  %v2802_v16 = vunpack.c.0.s8 %v2801_v12 }
 0x467   :  { %2615 = vmatpush1.bf16.msra.mxu1 %v3638_v19  ;;  %v818_v19 = vrot.slane %v4128_v18, %v4214_v13 }
 0x468   :  { %2616 = vmatprep.subr.bf16.mxu1 %v3646_v20  ;;  %v2597_v20 = vpop.f32.mrf.mxu0 }
 0x46b   :  { %2617 = vmatpush1.bf16.msra.mxu1 %v3644_v22 }
 0x46c   :  { %2618 = vmatprep.subr.bf16.mxu1 %v3652_v23 }
 0x46f   :  { %2619 = vmatpush1.bf16.msra.mxu1 %v3650_v24  ;;  %v4223_v24 = vadd.f32 %v2597_v20, %v886_v15  ;;  %v846_v15 = vrot.slane %v4167_v26, %v4211_v6 }
 0x470   :  { %2686 = vmatprep.subr.bf16.mxu1 %v3658_v27  ;;  %v890_v27 = vrot.slane %v4193_v28, %v4157_v0 }
 0x472   :  { %2637 = vmatmul.mubr.bf16.vlgmr.msra.gmra.mxu1 %v4081_v11  ;;  %v547_v38 = vpop.f32.mrf.mxu1 }
 0x473   :  { %v548_v40 = vadd.f32 %v2988_v32, %v547_v38  ;;  %2687 = vmatpush1.bf16.msra.mxu1 %v3656_v29  ;;  %2718 = vmatprep.mubr.bf16.mxu1 %v3928_v62  ;;  %v2866_v62 = vcombine.low %v4199_v43, %v4206_v48  ;;  %v2599_v29 = vpop.f32.mrf.mxu0  ;;  %v4228_v32 = vsub.s32 %v2802_v16, %v4124_v17 }
 0x474   :  { %v3305_v46 = vpop.f32.mrf.mxu1  ;;  %2688 = vmatprep.subr.bf16.mxu1 %v3664_v34  ;;  %v4230_v37 = vadd.f32 %v2599_v29, %v890_v27 }
 0x475   :  { %554 = vst.msk [vmem:[%s4355_s13] sm:$0x3] %vm553_vm5, %v548_v40  ;;  %v2601_v38 = vpop.f32.mrf.mxu0  ;;  %v2806_v46 = vrot.slane %v2798_v36, %v4228_v32  ;;  %v2823_v12 = vrot.slane %v2815_v10, %v4228_v32 }
 0x476   :  { %v550_v50 = vpop.f32.mrf.mxu1 }
 0x477   :  { %2689 = vmatpush1.bf16.msra.mxu1 %v3662_v41  ;;  %v2602_v44 = vpop.f32.mrf.mxu0  ;;  %v4243_v50 = vsub.s32 6, %v4124_v17 }
 0x478   :  { %v3306_v53 = vpop.f32.mrf.mxu1  ;;  %2690 = vmatprep.subr.bf16.mxu1 %v3670_v47 }
 0x479   :  { %v830_v31 = vrot.slane %v4128_v18, %v4243_v50  ;;  %v2679_v36 = vpop.f32.mrf.mxu0 }
 0x47b   :  { %2691 = vmatpush1.bf16.msra.mxu1 %v3668_v51  ;;  %v4245_v51 = vld [vmem:[#allocation17 + $0x18] sm:$0x3f] }
 0x47c   :  { %2692 = vmatprep.subr.bf16.mxu1 %v3676_v54  ;;  %v902_v53 = vrot.slane %v4245_v51, %v4132_v21  ;;  %v918_v16 = vrot.slane %v4245_v51, %v4149_v58  ;;  %v922_v10 = vrot.slane %v4245_v51, %v4157_v0 }
 0x47f   :  { %2693 = vmatpush1.bf16.msra.mxu1 %v3674_v55  ;;  %v4256_v55 = vadd.f32 %v2679_v36, %v902_v53 }
 0x480   :  { %2694 = vmatprep.subr.bf16.mxu1 %v3682_v56 }
 0x483   :  { %2695 = vmatpush1.bf16.msra.mxu1 %v3680_v57  ;;  %v906_v57 = vrot.slane %v4245_v51, %v4135_v25 }
 0x484   :  { %2696 = vmatprep.subr.bf16.mxu1 %v3688_v59  ;;  %v2681_v59 = vpop.f32.mrf.mxu0 }
 0x486   :  { %v2683_v21 = vpop.f32.mrf.mxu0 }
 0x487   :  { %2697 = vmatpush1.bf16.msra.mxu1 %v3686_v60 }
 0x488   :  { %2698 = vmatprep.subr.bf16.mxu1 %v3694_v63  ;;  %v4260_v63 = vadd.f32 %v2681_v59, %v906_v57  ;;  %v2684_v18 = vpop.f32.mrf.mxu0 }
 0x48b   :  { %2699 = vmatpush1.bf16.msra.mxu1 %v3692_v1 }
 0x48c   :  { %2700 = vmatprep.subr.bf16.mxu1 %v3700_v2 }
 0x48f   :  { %2701 = vmatpush1.bf16.msra.mxu1 %v3698_v5  ;;  %v2900_v5 = vcombine.low %v4256_v55, %v4260_v63 }
 0x492   :  { %v2228_v22 = vpop.f32.mrf.mxu1  ;;  %2719 = vmatmul.mubr.bf16.vlgmr.msra.gmra.mxu1 %v4081_v11  ;;  %v2883_v11 = vcombine.low %v4223_v24, %v4230_v37 }
 0x493   :  { %v2229_v23 = vadd.f32 %v2228_v22, %v814_v14 }
 0x494   :  { %v2230_v30 = vpop.f32.mrf.mxu1 }
 0x495   :  { %v2231_v34 = vadd.f32 %v2230_v30, %v818_v19  ;;  %v850_v19 = vrot.slane %v4167_v26, %v4214_v13 }
 0x496   :  { %v2232_v40 = vpop.f32.mrf.mxu1 }
 0x497   :  { %v2799_v41 = vcombine.low %v2229_v23, %v2231_v34 }
 0x498   :  { %v2233_v45 = vpop.f32.mrf.mxu1 }
 0x499   :  { %v2813_v47 = vrot.slane %v2799_v41, %v4228_v32  ;;  %v2761_v20 = vpop.f32.mrf.mxu0  ;;  %v2840_v45 = vrot.slane %v2832_v42, %v4228_v32 }
 0x49a   :  { %v2762_v7 = vadd.f32 %v2761_v20, %v918_v16 }
 0x49b   :  { %v2814_v49 = vcombine.low %v2806_v46, %v2813_v47  ;;  %v2763_v23 = vpop.f32.mrf.mxu0 }
 0x49c   :  { %v2764_v30 = vadd.f32 %v2763_v23, %v922_v10 }
 0x49d   :  { %2933 = vst [vmem:[%s4357_s15] sm:$0xff] %v2814_v49  ;;  %v2765_v34 = vpop.f32.mrf.mxu0 }
 0x49e   :  { %v2917_v41 = vcombine.low %v2762_v7, %v2764_v30 }
 0x49f   :  { %v2766_v44 = vpop.f32.mrf.mxu0 }
 0x4a0   :  { %3233 = vst.sshfl [vmem:[%s4357_s15 + $0x38] sm:$0x33 pattern:$0x76325410] %v2917_v41 }
 0x4b2   :  { %v2310_v54 = vpop.f32.mrf.mxu1 }
 0x4b3   :  { %v2311_v56 = vadd.f32 %v2310_v54, %v830_v31 }
 0x4b4   :  { %v2312_v17 = vpop.f32.mrf.mxu1 }
 0x4b5   :  { %v2313_v60 = vadd.f32 %v2312_v17, %v834_v35 }
 0x4b6   :  { %v2314_v1 = vpop.f32.mrf.mxu1 }
 0x4b7   :  { %v2816_v2 = vcombine.low %v2311_v56, %v2313_v60 }
 0x4b8   :  { %v2315_v9 = vpop.f32.mrf.mxu1 }
 0x4b9   :  { %v2830_v25 = vrot.slane %v2816_v2, %v4228_v32 }
 0x4bb   :  { %v2831_v14 = vcombine.low %v2823_v12, %v2830_v25 }
 0x4bd   :  { %2934 = vst [vmem:[%s4357_s15 + $0x8] sm:$0xff] %v2831_v14 }
 0x4d2   :  { %v2392_v22 = vpop.f32.mrf.mxu1 }
 0x4d3   :  { %v2393_v3 = vadd.f32 %v2392_v22, %v846_v15 }
 0x4d4   :  { %v2394_v27 = vpop.f32.mrf.mxu1 }
 0x4d5   :  { %v2395_v29 = vadd.f32 %v2394_v27, %v850_v19 }
 0x4d6   :  { %v2396_v38 = vpop.f32.mrf.mxu1 }
 0x4d7   :  { %v2833_v40 = vcombine.low %v2393_v3, %v2395_v29 }
 0x4d8   :  { %v2397_v58 = vpop.f32.mrf.mxu1 }
 0x4d9   :  { %v2847_v46 = vrot.slane %v2833_v40, %v4228_v32 }
 0x4db   :  { %v2848_v0 = vcombine.low %v2840_v45, %v2847_v46 }
 0x4dd   :  { %2935 = vst [vmem:[%s4357_s15 + $0x10] sm:$0xff] %v2848_v0 }
 0x4de   :  { %3892 = shalt.err (!%p3889_p7)
}
 0x4df   :  { %2952 = dma.vmem_to_hbm [thread:$0]  %s2950_s17, 32, %s4356_s14, [#allocation5]   ;;  %v862_v33 = vrot.slane %v4167_v26, %v4243_v50  ;;  %v866_v39 = vrot.slane %v4167_v26, %v4248_v52  ;;  %v2857_v54 = vrot.slane %v2849_v8, %v4228_v32  ;;  %v878_v26 = vrot.slane %v4193_v28, %v4211_v6 }
 0x4e0   :  { %v882_v59 = vrot.slane %v4193_v28, %v4214_v13  ;;  %v2874_v8 = vrot.slane %v2866_v62, %v4228_v32  ;;  %v894_v12 = vrot.slane %v4193_v28, %v4243_v50  ;;  %v898_v25 = vrot.slane %v4193_v28, %v4248_v52 }
 0x4e1   :  { %v2891_v62 = vrot.slane %v2883_v11, %v4228_v32  ;;  %v910_v28 = vrot.slane %v4245_v51, %v4211_v6  ;;  %v914_v50 = vrot.slane %v4245_v51, %v4214_v13  ;;  %v2908_v11 = vrot.slane %v2900_v5, %v4228_v32 }
 0x4f2   :  { %v2474_v42 = vpop.f32.mrf.mxu1 }
 0x4f3   :  { %v2475_v47 = vadd.f32 %v2474_v42, %v862_v33 }
 0x4f4   :  { %v2476_v49 = vpop.f32.mrf.mxu1 }
 0x4f5   :  { %v2477_v53 = vadd.f32 %v2476_v49, %v866_v39 }
 0x4f6   :  { %v2478_v31 = vpop.f32.mrf.mxu1 }
 0x4f7   :  { %v2850_v35 = vcombine.low %v2475_v47, %v2477_v53 }
 0x4f8   :  { %v2479_v36 = vpop.f32.mrf.mxu1 }
 0x4f9   :  { %v2864_v56 = vrot.slane %v2850_v35, %v4228_v32 }
 0x4fb   :  { %v2865_v57 = vcombine.low %v2857_v54, %v2864_v56 }
 0x4fd   :  { %2936 = vst [vmem:[%s4357_s15 + $0x18] sm:$0xff] %v2865_v57 }
 0x512   :  { %v2556_v17 = vpop.f32.mrf.mxu1 }
 0x513   :  { %v2557_v60 = vadd.f32 %v2556_v17, %v878_v26 }
 0x514   :  { %v2558_v21 = vpop.f32.mrf.mxu1 }
 0x515   :  { %v2559_v1 = vadd.f32 %v2558_v21, %v882_v59 }
 0x516   :  { %v2560_v2 = vpop.f32.mrf.mxu1 }
 0x517   :  { %v2867_v61 = vcombine.low %v2557_v60, %v2559_v1 }
 0x518   :  { %v2561_v4 = vpop.f32.mrf.mxu1 }
 0x519   :  { %v2881_v18 = vrot.slane %v2867_v61, %v4228_v32 }
 0x51b   :  { %v2882_v9 = vcombine.low %v2874_v8, %v2881_v18 }
 0x51d   :  { %2937 = vst [vmem:[%s4357_s15 + $0x20] sm:$0xff] %v2882_v9 }
 0x532   :  { %v2638_v14 = vpop.f32.mrf.mxu1 }
 0x533   :  { %v2639_v15 = vadd.f32 %v2638_v14, %v894_v12 }
 0x534   :  { %v2640_v16 = vpop.f32.mrf.mxu1 }
 0x535   :  { %v2641_v19 = vadd.f32 %v2640_v16, %v898_v25 }
 0x536   :  { %v2642_v20 = vpop.f32.mrf.mxu1 }
 0x537   :  { %v2884_v43 = vcombine.low %v2639_v15, %v2641_v19 }
 0x538   :  { %v2643_v48 = vpop.f32.mrf.mxu1 }
 0x539   :  { %v2898_v22 = vrot.slane %v2884_v43, %v4228_v32 }
 0x53b   :  { %v2899_v3 = vcombine.low %v2891_v62, %v2898_v22 }
 0x53d   :  { %2938 = vst [vmem:[%s4357_s15 + $0x28] sm:$0xff] %v2899_v3 }
 0x552   :  { %v2720_v52 = vpop.f32.mrf.mxu1 }
 0x553   :  { %v2721_v10 = vadd.f32 %v2720_v52, %v910_v28 }
 0x554   :  { %v2722_v7 = vpop.f32.mrf.mxu1 }
 0x555   :  { %v2723_v23 = vadd.f32 %v2722_v7, %v914_v50 }
 0x556   :  { %v2724_v27 = vpop.f32.mrf.mxu1 }
 0x557   :  { %v2901_v24 = vcombine.low %v2721_v10, %v2723_v23 }
 0x558   :  { %v2725_v37 = vpop.f32.mrf.mxu1 }
 0x559   :  { %v2915_v29 = vrot.slane %v2901_v24, %v4228_v32 }
 0x55b   :  { %v2916_v30 = vcombine.low %v2908_v11, %v2915_v29 }
 0x55d   :  { %2939 = vst [vmem:[%s4357_s15 + $0x30] sm:$0xff] %v2916_v30 }
 0x55e   :  { %3911 = dma.done.wait [#allocation5], 32  }
 0x55f   :  { %3912 = vsyncadd [#allocation5], 4294967264 }
 0x560   :  { %2962 = vsyncpa [#allocation4], 1 }
 0x561   :  { %2963 = vsyncpa [#allocation7], 1 }
 0x562   :  { %2964 = vsyncpa [#allocation10], 1 }
 0x563   :  { %2965 = vsyncpa [#allocation13], 1 }
 0x564   :  { %2966 = vsyncpa [#allocation16], 1 }
 0x565   :  { %2967 = vsyncpa [#allocation5], 1 }

// kernel: efgcn_tmp_forward.5
= control target key start
LH: loop header
LB: loop body
LE: loop exit
PB: predicated region body
PF: predicated region fallthrough
CT: control target
= control target key end

     0   :  { %s8183_s0 = inlined_call_operand.vmem [shape: f32[160,48], index: 0, kind: input, shape index: {}]   ;;  %s8184_s1 = inlined_call_operand.vmem [shape: bf16[41,160,160], index: 1, kind: input, shape index: {}]   ;;  %s8185_s2 = inlined_call_operand.vmem [shape: bf16[41,48,48], index: 2, kind: input, shape index: {}]   ;;  %s8186_s4 = inlined_call_operand.vmem [shape: bf16[41,48,32], index: 4, kind: input, shape index: {}]   ;;  %s8187_s5 = inlined_call_operand.vmem [shape: f32[1,32], index: 5, kind: input, shape index: {}]   ;;  %s8188_s6 = inlined_call_operand.vmem [shape: bf16[41,32,32], index: 6, kind: input, shape index: {}]   ;;  %s8189_s7 = inlined_call_operand.vmem [shape: f32[1,32], index: 7, kind: input, shape index: {}]   ;;  %s8190_s8 = inlined_call_operand.vmem [shape: bf16[41,32,16], index: 8, kind: input, shape index: {}]   ;;  %s8191_s9 = inlined_call_operand.vmem [shape: f32[1,16], index: 9, kind: input, shape index: {}]   ;;  %s8192_s10 = inlined_call_operand.vmem [shape: bf16[41,16,128], index: 10, kind: input, shape index: {}]   ;;  %s8193_s11 = inlined_call_operand.vmem [shape: f32[1,128], index: 11, kind: input, shape index: {}]   ;;  %s8194_s12 = inlined_call_operand.vmem [shape: f32[160,128], index: 12, kind: output, shape index: {}]   ;;  %s8195_s3 = inlined_call_operand.vmem [shape: f32[1,48], index: 3, kind: input, shape index: {}]  }
   0x1   :  { %v42_v0 = vld [vmem:[%s8183_s0] sm:$0xff]  ;;  %v43_v1 = vld [vmem:[%s8183_s0 + $0x8] sm:$0xff]  ;;  %v44_v2 = vld [vmem:[%s8183_s0 + $0x10] sm:$0xff] }
   0x2   :  { %v45_v3 = vld [vmem:[%s8183_s0 + $0x18] sm:$0xff]  ;;  %v46_v4 = vld [vmem:[%s8183_s0 + $0x20] sm:$0xff]  ;;  %v47_v5 = vld [vmem:[%s8183_s0 + $0x28] sm:$0xff]  ;;  %v6078_v6 = vpack.c.bf16 %v43_v1, %v42_v0 }
   0x3   :  { %v48_v7 = vld [vmem:[%s8183_s0 + $0x30] sm:$0xff]  ;;  %v49_v8 = vld [vmem:[%s8183_s0 + $0x38] sm:$0xff]  ;;  %v50_v9 = vld [vmem:[%s8183_s0 + $0x40] sm:$0xff]  ;;  %v6089_v10 = vpack.c.bf16 %v45_v3, %v44_v2  ;;  %v6091_v11 = vpack.c.bf16 %v47_v5, %v46_v4 }
   0x4   :  { %v51_v12 = vld [vmem:[%s8183_s0 + $0x48] sm:$0xff]  ;;  %v52_v13 = vld [vmem:[%s8183_s0 + $0x50] sm:$0xff]  ;;  %v53_v14 = vld [vmem:[%s8183_s0 + $0x58] sm:$0xff]  ;;  %v6102_v15 = vpack.c.bf16 %v49_v8, %v48_v7 }
   0x5   :  { %v54_v16 = vld [vmem:[%s8183_s0 + $0x60] sm:$0xff]  ;;  %v55_v17 = vld [vmem:[%s8183_s0 + $0x68] sm:$0xff]  ;;  %v56_v18 = vld [vmem:[%s8183_s0 + $0x70] sm:$0xff]  ;;  %v6113_v19 = vpack.c.bf16 %v51_v12, %v50_v9  ;;  %v6115_v20 = vpack.c.bf16 %v53_v14, %v52_v13 }
   0x6   :  { %v57_v21 = vld [vmem:[%s8183_s0 + $0x78] sm:$0xff]  ;;  %v58_v22 = vld [vmem:[%s8183_s0 + $0x80] sm:$0xff]  ;;  %v59_v23 = vld [vmem:[%s8183_s0 + $0x88] sm:$0xff]  ;;  %v6126_v24 = vpack.c.bf16 %v55_v17, %v54_v16 }
   0x7   :  { %v60_v25 = vld [vmem:[%s8183_s0 + $0x90] sm:$0xff]  ;;  %v61_v26 = vld [vmem:[%s8183_s0 + $0x98] sm:$0xff]  ;;  %v6134_v27 = vpack.c.bf16 %v57_v21, %v56_v18  ;;  %v6136_v28 = vpack.c.bf16 %v59_v23, %v58_v22  ;;  %v3382_v29 = vld [vmem:[%s8195_s3] ss:$0 sm:$0xff]   ;;  %s6183_s0 = smov 0  }
   0x8   :  { %v6141_v30 = vpack.c.bf16 %v61_v26, %v60_v25  ;;  %v8196_v31 = vmov %v3382_v29  ;;  %v8197_v32 = vmov %v3382_v29  ;;  %v8198_v33 = vmov %v3382_v29 }
   0x9   :  { %v8199_v34 = vmov %v3382_v29  ;;  %v8200_v35 = vmov %v3382_v29  ;;  %v8201_v36 = vmov %v3382_v29  ;;  %v8202_v37 = vmov %v3382_v29 }
   0xa   :  { %v8203_v38 = vmov %v3382_v29  ;;  %v8204_v39 = vmov %v3382_v29  ;;  %v8205_v40 = vmov %v3382_v29  ;;  %v8206_v41 = vmov %v3382_v29 }
   0xb   :  { %v8207_v42 = vmov %v3382_v29  ;;  %v8208_v43 = vmov %v3382_v29  ;;  %v8209_v44 = vmov %v3382_v29  ;;  %v8210_v45 = vmov %v3382_v29 }
   0xc   :  { %v8211_v46 = vmov %v3382_v29  ;;  %v8212_v47 = vmov %v3382_v29  ;;  %v8213_v48 = vmov %v3382_v29  ;;  %v8214_v49 = vmov %v3382_v29 }
   0xd LB: > { %v5990_v50 = vmov 0   ;;  %s3691_s3 = smul.u32 160, %s5652_s0  ;;  %vm227_vm0 = vcmask 261120   ;;  %vm399_vm1 = vcmask 392192   ;;  %s5652_s0 = sphi %s6183_s0, %s84_s0   ;;  %v5648_v29 = vphi %v3382_v29, %v8255_v29   ;;  %v5644_v49 = vphi %v8214_v49, %v8254_v49   ;;  %v5640_v48 = vphi %v8213_v48, %v8253_v48   ;;  %v5636_v47 = vphi %v8212_v47, %v8252_v47   ;;  %v5632_v46 = vphi %v8211_v46, %v8251_v46   ;;  %v5628_v45 = vphi %v8210_v45, %v8250_v45   ;;  %v5624_v44 = vphi %v8209_v44, %v8249_v44   ;;  %v5620_v43 = vphi %v8208_v43, %v8248_v43   ;;  %v5616_v42 = vphi %v8207_v42, %v8247_v42   ;;  %v5612_v41 = vphi %v8206_v41, %v8246_v41   ;;  %v5608_v40 = vphi %v8205_v40, %v8245_v40   ;;  %v5604_v39 = vphi %v8204_v39, %v8244_v39   ;;  %v5600_v38 = vphi %v8203_v38, %v8243_v38   ;;  %v5596_v37 = vphi %v8202_v37, %v8242_v37   ;;  %v5592_v36 = vphi %v8201_v36, %v8241_v36   ;;  %v5588_v35 = vphi %v8200_v35, %v8240_v35   ;;  %v5584_v34 = vphi %v8199_v34, %v8239_v34   ;;  %v5580_v33 = vphi %v8198_v33, %v8238_v33   ;;  %v5576_v32 = vphi %v8197_v32, %v8237_v32   ;;  %v5572_v31 = vphi %v8196_v31, %v8236_v31  }
   0xe   : > { %258 = vmatprep.subr.bf16.mxu0 %v5990_v50  ;;  %3884 = vmatprep.subr.bf16.mxu1 %v5990_v50  ;;  %s3692_s30 = smul.u32 24, %s5652_s0  ;;  %s84_s0 = sadd.s32 1, %s5652_s0  }
   0xf   : > { %259 = vmatpush1.bf16.msra.mxu0 %v6134_v27  ;;  %3894 = vmatpush1.bf16.msra.mxu1 %v6134_v27  ;;  %s6254_s29 = scalar_lea.vmem %s8184_s1, %s3691_s3  ;;  %p6379_p0 = scmp.ge.s32.totalorder %s84_s0, 41  }
  0x10   : > { %260 = vmatprep.subr.bf16.mxu0 %v5990_v50  ;;  %3885 = vmatprep.subr.bf16.mxu1 %v5990_v50  ;;  %v4831_v51 = vld [vmem:[%s6254_s29 + $0x4] ss:$8 sps:$4 sm:$0xff]   ;;  %v4829_v53 = vld [vmem:[%s6254_s29] ss:$8 sps:$4 sm:$0xff]   ;;  %v4832_v55 = vld [vmem:[%s6254_s29 + $0x14] ss:$8 sps:$4 sm:$0xff]   ;;  %s130_s15 = scalar_lea.vmem %s8185_s2, %s3692_s30 }
  0x11   : > { %3405 = vmatprep.mubr.msk.bf16.mxu0 %vm227_vm0, %v4831_v51  ;;  %v4852_v52 = vld [vmem:[%s6254_s29 + $0x84] ss:$8 sps:$4 sm:$0xff]   ;;  %v4850_v54 = vld [vmem:[%s6254_s29 + $0x80] ss:$8 sps:$4 sm:$0xff]   ;;  %v4856_v56 = vld [vmem:[%s6254_s29 + $0x94] ss:$8 sps:$4 sm:$0xff]  }
  0x12   : > { %3413 = vmatprep.mubr.msk.bf16.mxu1 %vm227_vm0, %v4852_v52  ;;  %v4834_v57 = vld [vmem:[%s6254_s29 + $0x10] ss:$8 sps:$4 sm:$0xff]   ;;  %v4835_v59 = vld [vmem:[%s6254_s29 + $0x24] ss:$8 sps:$4 sm:$0xff]   ;;  %v4837_v60 = vld [vmem:[%s6254_s29 + $0x20] ss:$8 sps:$4 sm:$0xff]  }
  0x13   : > { %261 = vmatpush1.bf16.msra.mxu0 %v6126_v24  ;;  %3895 = vmatpush1.bf16.msra.mxu1 %v6126_v24  ;;  %v4858_v58 = vld [vmem:[%s6254_s29 + $0x90] ss:$8 sps:$4 sm:$0xff]   ;;  %v4838_v61 = vld [vmem:[%s6254_s29 + $0x34] ss:$8 sps:$4 sm:$0xff]   ;;  %v4841_v63 = vld [vmem:[%s6254_s29 + $0x44] ss:$8 sps:$4 sm:$0xff]  }
  0x14   : > { %262 = vmatprep.subr.bf16.mxu0 %v5990_v50  ;;  %3886 = vmatprep.subr.bf16.mxu1 %v5990_v50  ;;  %v4840_v62 = vld [vmem:[%s6254_s29 + $0x30] ss:$8 sps:$4 sm:$0xff]   ;;  %v4843_v0 = vld [vmem:[%s6254_s29 + $0x40] ss:$8 sps:$4 sm:$0xff]   ;;  %v4844_v1 = vld [vmem:[%s6254_s29 + $0x54] ss:$8 sps:$4 sm:$0xff]  }
  0x15   : > { %v4846_v2 = vld [vmem:[%s6254_s29 + $0x50] ss:$8 sps:$4 sm:$0xff]   ;;  %v4847_v3 = vld [vmem:[%s6254_s29 + $0x64] ss:$8 sps:$4 sm:$0xff]   ;;  %v4849_v4 = vld [vmem:[%s6254_s29 + $0x60] ss:$8 sps:$4 sm:$0xff]  }
  0x16   : > { %v4853_v5 = vld [vmem:[%s6254_s29 + $0x74] ss:$8 sps:$4 sm:$0xff]   ;;  %v4855_v7 = vld [vmem:[%s6254_s29 + $0x70] ss:$8 sps:$4 sm:$0xff]   ;;  %v4860_v9 = vld [vmem:[%s130_s15 + $0x8] sm:$0xff]   ;;  %s6616_s2 = smov (%p6379_p0), 0  }
  0x17   : > { %263 = vmatpush1.bf16.msra.mxu0 %v6115_v20  ;;  %3896 = vmatpush1.bf16.msra.mxu1 %v6115_v20  ;;  %v4859_v8 = vld [vmem:[%s130_s15 + $0x10] sm:$0xff]   ;;  %v4861_v12 = vld [vmem:[%s130_s15] sm:$0xff]  }
  0x18   : > { %264 = vmatprep.subr.bf16.mxu0 %v5990_v50  ;;  %3887 = vmatprep.subr.bf16.mxu1 %v5990_v50 }
  0x1b   : > { %265 = vmatpush1.bf16.msra.mxu0 %v6113_v19  ;;  %3897 = vmatpush1.bf16.msra.mxu1 %v6113_v19 }
  0x1c   : > { %266 = vmatprep.subr.bf16.mxu0 %v5990_v50  ;;  %3888 = vmatprep.subr.bf16.mxu1 %v5990_v50 }
  0x1f   : > { %267 = vmatpush1.bf16.msra.mxu0 %v6102_v15  ;;  %3898 = vmatpush1.bf16.msra.mxu1 %v6102_v15 }
  0x20   : > { %268 = vmatprep.subr.bf16.mxu0 %v5990_v50  ;;  %3889 = vmatprep.subr.bf16.mxu1 %v5990_v50 }
  0x23   : > { %269 = vmatpush1.bf16.msra.mxu0 %v6091_v11  ;;  %3899 = vmatpush1.bf16.msra.mxu1 %v6091_v11 }
  0x24   : > { %270 = vmatprep.subr.bf16.mxu0 %v5990_v50  ;;  %3890 = vmatprep.subr.bf16.mxu1 %v5990_v50 }
  0x27   : > { %271 = vmatpush1.bf16.msra.mxu0 %v6089_v10  ;;  %3900 = vmatpush1.bf16.msra.mxu1 %v6089_v10 }
  0x28   : > { %272 = vmatprep.subr.bf16.mxu0 %v5990_v50  ;;  %3891 = vmatprep.subr.bf16.mxu1 %v5990_v50 }
  0x2b   : > { %273 = vmatpush1.bf16.msra.mxu0 %v6078_v6  ;;  %3901 = vmatpush1.bf16.msra.mxu1 %v6078_v6 }
  0x2c   : > { %286 = vmatprep.subr.bf16.mxu0 %v5990_v50  ;;  %3892 = vmatprep.subr.bf16.mxu1 %v5990_v50 }
  0x2f   : > { %287 = vmatpush2.bf16.msra.mxu0 %v6141_v30  ;;  %3902 = vmatpush2.bf16.msra.mxu1 %v6141_v30 }
  0x30   : > { %288 = vmatprep.subr.bf16.mxu0 %v5990_v50  ;;  %3893 = vmatprep.subr.bf16.mxu1 %v5990_v50 }
  0x33   : > { %289 = vmatpush2.bf16.msra.mxu0 %v6136_v28  ;;  %3903 = vmatpush2.bf16.msra.mxu1 %v6136_v28 }
  0x34   : > { %3762 = vmatprep.subr.bf16.mxu1 %v4859_v8 }
  0x36   : > { %291 = vmatmul.mubr.bf16.vlgmr.msra.gmra.mxu0 %v4829_v53  ;;  %355 = vmatmul.mubr.bf16.vlgmr.msra.gmra.mxu1 %v4850_v54 }
  0x37   : > { %3406 = vmatprep.mubr.msk.bf16.mxu0 %vm227_vm0, %v4832_v55  ;;  %3414 = vmatprep.mubr.msk.bf16.mxu1 %vm227_vm0, %v4856_v56 }
  0x38   : > { %3763 = vmatpush3.bf16.msra.mxu1 %v4859_v8 }
  0x39   : > { %3764 = vmatprep.subr.bf16.mxu1 %v4860_v9 }
  0x3c   : > { %3765 = vmatpush3.bf16.msra.mxu1 %v4860_v9 }
  0x3d   : > { %3766 = vmatprep.subr.bf16.mxu1 %v4861_v12 }
  0x3e   : > { %299 = vmatmul.mubr.bf16.gmra.mxu0 %v4834_v57  ;;  %363 = vmatmul.mubr.bf16.gmra.mxu1 %v4858_v58 }
  0x3f   : > { %3407 = vmatprep.mubr.msk.bf16.mxu0 %vm227_vm0, %v4835_v59 }
  0x40   : > { %3767 = vmatpush3.bf16.msra.mxu1 %v4861_v12 }
  0x46   : > { %307 = vmatmul.mubr.bf16.gmra.mxu0 %v4837_v60 }
  0x47   : > { %3408 = vmatprep.mubr.msk.bf16.mxu0 %vm227_vm0, %v4838_v61 }
  0x4e   : > { %315 = vmatmul.mubr.bf16.gmra.mxu0 %v4840_v62 }
  0x4f   : > { %3409 = vmatprep.mubr.msk.bf16.mxu0 %vm227_vm0, %v4841_v63 }
  0x56   : > { %323 = vmatmul.mubr.bf16.gmra.mxu0 %v4843_v0 }
  0x57   : > { %3410 = vmatprep.mubr.msk.bf16.mxu0 %vm227_vm0, %v4844_v1 }
  0x5e   : > { %331 = vmatmul.mubr.bf16.gmra.mxu0 %v4846_v2 }
  0x5f   : > { %3411 = vmatprep.mubr.msk.bf16.mxu0 %vm227_vm0, %v4847_v3 }
  0x66   : > { %339 = vmatmul.mubr.bf16.gmra.mxu0 %v4849_v4 }
  0x67   : > { %3412 = vmatprep.mubr.msk.bf16.mxu0 %vm227_vm0, %v4853_v5 }
  0x6e   : > { %347 = vmatmul.mubr.bf16.gmra.mxu0 %v4855_v7 }
  0xf6   : > { %v292_v13 = vpop.f32.mrf.mxu0  ;;  %v356_v14 = vpop.f32.mrf.mxu1 }
  0xf8   : > { %v294_v16 = vpop.f32.mrf.mxu0  ;;  %v358_v17 = vpop.f32.mrf.mxu1 }
  0xfa   : > { %v295_v18 = vpop.f32.mrf.mxu0  ;;  %v359_v21 = vpop.f32.mrf.mxu1 }
  0xfb   : > { %v371_v22 = vpack.c.bf16 %v295_v18, %v292_v13 }
  0xfc   : > { %v297_v23 = vpop.f32.mrf.mxu0  ;;  %v361_v25 = vpop.f32.mrf.mxu1 }
  0xfd   : > { %3768 = vmatprep.mubr.msk.bf16.mxu1 %vm399_vm1, %v371_v22 }
  0xfe   : > { %v300_v26 = vpop.f32.mrf.mxu0  ;;  %v364_v50 = vpop.f32.mrf.mxu1 }
 0x100   : > { %v302_v51 = vpop.f32.mrf.mxu0  ;;  %v366_v52 = vpop.f32.mrf.mxu1 }
 0x102   : > { %v303_v53 = vpop.f32.mrf.mxu0  ;;  %v367_v54 = vpop.f32.mrf.mxu1 }
 0x103   : > { %v372_v55 = vpack.c.bf16 %v303_v53, %v300_v26 }
 0x104   : > { %v305_v56 = vpop.f32.mrf.mxu0  ;;  %v369_v57 = vpop.f32.mrf.mxu1 }
 0x105   : > { %3769 = vmatmul.mubr.msk.bf16.vlgmr.msra.gmra.mxu1 %vm399_vm1, %v372_v55  ;;  %v379_v57 = vpack.c.bf16 %v359_v21, %v356_v14 }
 0x106   : > { %v308_v58 = vpop.f32.mrf.mxu0 }
 0x108   : > { %v310_v59 = vpop.f32.mrf.mxu0 }
 0x109   : > { %v380_v59 = vpack.c.bf16 %v367_v54, %v364_v50 }
 0x10a   : > { %v311_v60 = vpop.f32.mrf.mxu0 }
 0x10b   : > { %v373_v61 = vpack.c.bf16 %v311_v60, %v308_v58 }
 0x10c   : > { %v313_v62 = vpop.f32.mrf.mxu0 }
 0x10d   : > { %3772 = vmatprep.mubr.msk.bf16.mxu1 %vm399_vm1, %v373_v61 }
 0x10e   : > { %v316_v63 = vpop.f32.mrf.mxu0 }
 0x110   : > { %v318_v0 = vpop.f32.mrf.mxu0 }
 0x112   : > { %v319_v1 = vpop.f32.mrf.mxu0 }
 0x113   : > { %v374_v2 = vpack.c.bf16 %v319_v1, %v316_v63 }
 0x114   : > { %v321_v3 = vpop.f32.mrf.mxu0 }
 0x115   : > { %3773 = vmatmul.mubr.msk.bf16.gmra.mxu1 %vm399_vm1, %v374_v2 }
 0x116   : > { %v324_v4 = vpop.f32.mrf.mxu0 }
 0x118   : > { %v326_v5 = vpop.f32.mrf.mxu0 }
 0x11a   : > { %v327_v7 = vpop.f32.mrf.mxu0 }
 0x11b   : > { %v375_v8 = vpack.c.bf16 %v327_v7, %v324_v4 }
 0x11c   : > { %v329_v9 = vpop.f32.mrf.mxu0 }
 0x11d   : > { %3776 = vmatprep.mubr.msk.bf16.mxu1 %vm399_vm1, %v375_v8 }
 0x11e   : > { %v332_v12 = vpop.f32.mrf.mxu0 }
 0x120   : > { %v334_v13 = vpop.f32.mrf.mxu0 }
 0x122   : > { %v335_v16 = vpop.f32.mrf.mxu0 }
 0x123   : > { %v376_v17 = vpack.c.bf16 %v335_v16, %v332_v12 }
 0x124   : > { %v337_v18 = vpop.f32.mrf.mxu0 }
 0x125   : > { %3777 = vmatmul.mubr.msk.bf16.gmra.mxu1 %vm399_vm1, %v376_v17 }
 0x126   : > { %v340_v22 = vpop.f32.mrf.mxu0 }
 0x128   : > { %v342_v23 = vpop.f32.mrf.mxu0 }
 0x12a   : > { %v343_v25 = vpop.f32.mrf.mxu0 }
 0x12b   : > { %v377_v26 = vpack.c.bf16 %v343_v25, %v340_v22 }
 0x12c   : > { %v345_v51 = vpop.f32.mrf.mxu0 }
 0x12d   : > { %3780 = vmatprep.mubr.msk.bf16.mxu1 %vm399_vm1, %v377_v26  ;;  %v6450_v51 = vld [vmem:[%s8187_s5] ss:$0 sm:$0xff] (%p6379_p0)  }
 0x12e   : > { %v348_v52 = vpop.f32.mrf.mxu0 }
 0x130   : > { %v350_v53 = vpop.f32.mrf.mxu0 }
 0x132   : > { %v351_v55 = vpop.f32.mrf.mxu0 }
 0x133   : > { %v378_v56 = vpack.c.bf16 %v351_v55, %v348_v52 }
 0x134   : > { %v353_v58 = vpop.f32.mrf.mxu0 }
 0x135   : > { %3781 = vmatmul.mubr.msk.bf16.gmra.mxu1 %vm399_vm1, %v378_v56 }
 0x136   : > { %3784 = vmatprep.mubr.msk.bf16.mxu1 %vm399_vm1, %v379_v57 }
 0x13d   : > { %3785 = vmatmul.mubr.msk.bf16.gmra.mxu1 %vm399_vm1, %v380_v59 }
 0x1c5   : > { %v3770_v60 = vpop.f32.mrf.mxu1 }
 0x1c6   : > { %v6319_v48 = vadd.f32 %v5640_v48, %v3770_v60  }
 0x1c7   : > { %v464_v62 = vpop.f32.mrf.mxu1 }
 0x1c8   : > { %v8215_v61 = vmov %v6319_v48  ;;  %v6322_v29 = vadd.f32 %v5648_v29, %v464_v62  }
 0x1c9   : > { %v3771_v0 = vpop.f32.mrf.mxu1  ;;  %v585_v55 = vmin.f32 (%p6379_p0), %v8215_v61, 0.0  ;;  %vm565_vm4 = vcmp.gt.f32.partialorder (%p6379_p0), %v8215_v61, 0.0 }
 0x1ca   : > { %v8216_v63 = vmov %v6322_v29  ;;  %v6325_v47 = vadd.f32 %v5636_v47, %v3771_v0  }
 0x1cb   : > { %v467_v21 = vpop.f32.mrf.mxu1  ;;  %v583_v52 = vmin.f32 (%p6379_p0), %v8216_v63, 0.0  ;;  %v607_v10 = vmul.f32 (%p6379_p0), 1.442695, %v585_v55  ;;  %vm563_vm2 = vcmp.gt.f32.partialorder (%p6379_p0), %v8216_v63, 0.0 }
 0x1cc   : > { %v8217_v14 = vmov %v6325_v47  ;;  %v6328_v49 = vadd.f32 %v5644_v49, %v467_v21  }
 0x1cd   :  { %v586_v56 = vmin.f32 (%p6379_p0), %v8217_v14, 0.0  ;;  %v603_v60 = vmul.f32 (%p6379_p0), 1.442695, %v583_v52  ;;  %vm566_vm5 = vcmp.gt.f32.partialorder (%p6379_p0), %v8217_v14, 0.0 }
 0x1ce   : > { %v8218_v1 = vmov %v6328_v49 }
 0x1cf   :  { %v584_v53 = vmin.f32 (%p6379_p0), %v8218_v1, 0.0  ;;  %v609_v15 = vmul.f32 (%p6379_p0), 1.442695, %v586_v56  ;;  %4862 = vpow2.f32 (%p6379_p0), %v603_v60  ;;  %vm564_vm3 = vcmp.gt.f32.partialorder (%p6379_p0), %v8218_v1, 0.0 }
 0x1d1   :  { %v605_v6 = vmul.f32 (%p6379_p0), 1.442695, %v584_v53 }
 0x1d3   :  { %4864 = vpow2.f32 (%p6379_p0), %v605_v6 }
 0x1d4   :  { %4866 = vpow2.f32 (%p6379_p0), %v607_v10 }
 0x1d5   : > { %v3774_v2 = vpop.f32.mrf.mxu1  ;;  %4868 = vpow2.f32 (%p6379_p0), %v609_v15 }
 0x1d6   : > { %v6331_v44 = vadd.f32 %v5624_v44, %v3774_v2  }
 0x1d7   : > { %v480_v54 = vpop.f32.mrf.mxu1 }
 0x1d8   : > { %v8219_v50 = vmov %v6331_v44  ;;  %v6334_v46 = vadd.f32 %v5632_v46, %v480_v54  }
 0x1d9   : > { %v3775_v48 = vpop.f32.mrf.mxu1  ;;  %v589_v59 = vmin.f32 (%p6379_p0), %v8219_v50, 0.0  ;;  %vm569_vm8 = vcmp.gt.f32.partialorder (%p6379_p0), %v8219_v50, 0.0 }
 0x1da   : > { %v8220_v3 = vmov %v6334_v46  ;;  %v6337_v43 = vadd.f32 %v5620_v43, %v3775_v48   ;;  %v8253_v48 = vmov %v8215_v61 }
 0x1db   : > { %v483_v29 = vpop.f32.mrf.mxu1  ;;  %v587_v57 = vmin.f32 (%p6379_p0), %v8220_v3, 0.0  ;;  %v615_v30 = vmul.f32 (%p6379_p0), 1.442695, %v589_v59  ;;  %vm567_vm6 = vcmp.gt.f32.partialorder (%p6379_p0), %v8220_v3, 0.0 }
 0x1dc   : > { %v8221_v4 = vmov %v6337_v43  ;;  %v6340_v45 = vadd.f32 %v5628_v45, %v483_v29   ;;  %v8255_v29 = vmov %v8216_v63 }
 0x1dd   :  { %v590_v11 = vmin.f32 (%p6379_p0), %v8221_v4, 0.0  ;;  %v611_v20 = vmul.f32 (%p6379_p0), 1.442695, %v587_v57  ;;  %vm570_vm9 = vcmp.gt.f32.partialorder (%p6379_p0), %v8221_v4, 0.0 }
 0x1de   : > { %v8222_v5 = vmov %v6340_v45 }
 0x1df   :  { %v588_v58 = vmin.f32 (%p6379_p0), %v8222_v5, 0.0  ;;  %4870 = vpow2.f32 (%p6379_p0), %v611_v20  ;;  %vm568_vm7 = vcmp.gt.f32.partialorder (%p6379_p0), %v8222_v5, 0.0 }
 0x1e1   :  { %v613_v27 = vmul.f32 (%p6379_p0), 1.442695, %v588_v58 }
 0x1e3   :  { %4872 = vpow2.f32 (%p6379_p0), %v613_v27 }
 0x1e4   :  { %4874 = vpow2.f32 (%p6379_p0), %v615_v30 }
 0x1e5   : > { %v3778_v47 = vpop.f32.mrf.mxu1 }
 0x1e6   : > { %v6343_v40 = vadd.f32 %v5608_v40, %v3778_v47   ;;  %v8252_v47 = vmov %v8217_v14 }
 0x1e7   : > { %v496_v49 = vpop.f32.mrf.mxu1 }
 0x1e8   : > { %v8223_v7 = vmov %v6343_v40  ;;  %v6346_v42 = vadd.f32 %v5616_v42, %v496_v49   ;;  %v8254_v49 = vmov %v8218_v1 }
 0x1e9   : > { %v3779_v44 = vpop.f32.mrf.mxu1  ;;  %v593_v28 = vmin.f32 (%p6379_p0), %v8223_v7, 0.0  ;;  %vm573_vm12 = vcmp.gt.f32.partialorder (%p6379_p0), %v8223_v7, 0.0 }
 0x1ea   : > { %v8224_v8 = vmov %v6346_v42  ;;  %v6349_v39 = vadd.f32 %v5604_v39, %v3779_v44   ;;  %v8249_v44 = vmov %v8219_v50 }
 0x1eb   : > { %v499_v46 = vpop.f32.mrf.mxu1  ;;  %v591_v19 = vmin.f32 (%p6379_p0), %v8224_v8, 0.0  ;;  %v623_v0 = vmul.f32 (%p6379_p0), 1.442695, %v593_v28  ;;  %vm571_vm10 = vcmp.gt.f32.partialorder (%p6379_p0), %v8224_v8, 0.0 }
 0x1ec   : > { %v8225_v9 = vmov %v6349_v39  ;;  %v6352_v41 = vadd.f32 %v5612_v41, %v499_v46   ;;  %v8251_v46 = vmov %v8220_v3 }
 0x1ed   :  { %vm574_vm13 = vcmp.gt.f32.partialorder (%p6379_p0), %v8225_v9, 0.0 }
 0x1ee   : > { %v8226_v12 = vmov %v6352_v41 }
 0x1ef   :  { %v592_v24 = vmin.f32 (%p6379_p0), %v8226_v12, 0.0  ;;  %vm572_vm11 = vcmp.gt.f32.partialorder (%p6379_p0), %v8226_v12, 0.0 }
 0x1f5   : > { %v3782_v43 = vpop.f32.mrf.mxu1 }
 0x1f6   : > { %v6355_v36 = vadd.f32 %v5592_v36, %v3782_v43   ;;  %v8248_v43 = vmov %v8221_v4 }
 0x1f7   : > { %v512_v45 = vpop.f32.mrf.mxu1 }
 0x1f8   : > { %v8227_v13 = vmov %v6355_v36  ;;  %v6358_v38 = vadd.f32 %v5600_v38, %v512_v45   ;;  %v8250_v45 = vmov %v8222_v5 }
 0x1f9   : > { %v3783_v40 = vpop.f32.mrf.mxu1  ;;  %v597_v62 = vmin.f32 (%p6379_p0), %v8227_v13, 0.0 }
 0x1fa   : > { %v8228_v16 = vmov %v6358_v38  ;;  %v6361_v35 = vadd.f32 %v5588_v35, %v3783_v40   ;;  %v8245_v40 = vmov %v8223_v7 }
 0x1fb   : > { %v515_v42 = vpop.f32.mrf.mxu1  ;;  %v631_v44 = vmul.f32 (%p6379_p0), 1.442695, %v597_v62  ;;  %v4863_v40 = vpop.eup (%p6379_p0), %4862  ;;  %vm575_vm14 = vcmp.gt.f32.partialorder (%p6379_p0), %v8228_v16, 0.0 }
 0x1fc   : > { %v8229_v17 = vmov %v6361_v35  ;;  %v6364_v37 = vadd.f32 %v5596_v37, %v515_v42   ;;  %v8247_v42 = vmov %v8224_v8 }
 0x1fd   : > { %v3786_v39 = vpop.f32.mrf.mxu1  ;;  %v8240_v35 = vmov %v8229_v17  ;;  %v598_v21 = vmin.f32 (%p6379_p0), %v8229_v17, 0.0 }
 0x1fe   : > { %v8230_v18 = vmov %v6364_v37  ;;  %v6367_v32 = vadd.f32 %v5576_v32, %v3786_v39   ;;  %v8244_v39 = vmov %v8225_v9 }
 0x1ff   : > { %v528_v41 = vpop.f32.mrf.mxu1  ;;  %v8242_v37 = vmov %v8230_v18  ;;  %v596_v35 = vmin.f32 (%p6379_p0), %v8230_v18, 0.0  ;;  %v633_v43 = vmul.f32 (%p6379_p0), 1.442695, %v598_v21  ;;  %v4865_v39 = vpop.eup (%p6379_p0), %4864  ;;  %vm576_vm15 = vcmp.gt.f32.partialorder (%p6379_p0), %v8230_v18, 0.0 }
 0x200   : > { %v8231_v22 = vmov %v6367_v32  ;;  %v6370_v34 = vadd.f32 %v5584_v34, %v528_v41   ;;  %v8246_v41 = vmov %v8226_v12  ;;  %v621_v37 = vmul.f32 (%p6379_p0), 1.442695, %v592_v24 }
 0x201   : > { %v3787_v36 = vpop.f32.mrf.mxu1  ;;  %v8237_v32 = vmov %v8231_v22  ;;  %v629_v47 = vmul.f32 (%p6379_p0), 1.442695, %v596_v35  ;;  %v601_v49 = vmin.f32 (%p6379_p0), %v8231_v22, 0.0  ;;  %v3429_v53 = vadd.f32 (%p6379_p0), -1.0, %v4865_v39 }
 0x202   : > { %v8232_v23 = vmov %v6370_v34  ;;  %v6373_v31 = vadd.f32 %v5572_v31, %v3787_v36   ;;  %v8241_v36 = vmov %v8227_v13  ;;  %v617_v32 = vmul.f32 (%p6379_p0), 1.442695, %v590_v11 }
 0x203   : > { %v531_v38 = vpop.f32.mrf.mxu1  ;;  %v8239_v34 = vmov %v8232_v23  ;;  %83 = sbr.rel (!%p6379_p0) target bundleno = 13 (0xd), region = 113  ;;  %v599_v54 = vmin.f32 (%p6379_p0), %v8232_v23, 0.0  ;;  %v639_v41 = vmul.f32 (%p6379_p0), 1.442695, %v601_v49  ;;  %v3428_v36 = vadd.f32 (%p6379_p0), -1.0, %v4863_v40 }
 0x204   : > { %v8233_v25 = vmov %v6373_v31  ;;  %v6376_v33 = vadd.f32 %v5580_v33, %v531_v38   ;;  %v8243_v38 = vmov %v8228_v16  ;;  %v619_v34 = vmul.f32 (%p6379_p0), 1.442695, %v591_v19 }
 0x205   : > { %v8236_v31 = vmov %v8233_v25  ;;  %4876 = vpow2.f32 (%p6379_p0), %v617_v32  ;;  %v602_v46 = vmin.f32 (%p6379_p0), %v8233_v25, 0.0  ;;  %v635_v45 = vmul.f32 (%p6379_p0), 1.442695, %v599_v54  ;;  %v4867_v38 = vpop.eup (%p6379_p0), %4866 }
 0x206   : > { %v8234_v26 = vmov %v6376_v33  ;;  %v594_v31 = vmin.f32 (%p6379_p0), %v8225_v9, 0.0  ;;  %4878 = vpow2.f32 (%p6379_p0), %v619_v34  ;;  %v4869_v55 = vpop.eup (%p6379_p0), %4868  ;;  %v3430_v56 = vadd.f32 (%p6379_p0), -1.0, %v4867_v38 }
 0x207   : > { %v8238_v33 = vmov %v8234_v26  ;;  %v600_v29 = vmin.f32 (%p6379_p0), %v8234_v26, 0.0  ;;  %4880 = vpow2.f32 (%p6379_p0), %v621_v37  ;;  %v641_v52 = vmul.f32 (%p6379_p0), 1.442695, %v602_v46  ;;  %v4871_v58 = vpop.eup (%p6379_p0), %4870 }
 0x208   :  { %v595_v33 = vmin.f32 %v8228_v16, 0.0  ;;  %v625_v2 = vmul.f32 1.442695, %v594_v31  ;;  %4882 = vpow2.f32 %v623_v0  ;;  %v663_v57 = vsel %vm563_vm2, %v8216_v63, %v3428_v36  ;;  %v4873_v6 = vpop.eup %4872 }
 0x209   :  { %v637_v42 = vmul.f32 1.442695, %v600_v29  ;;  %v3431_v59 = vadd.f32 -1.0, %v4869_v55  ;;  %v664_v60 = vsel %vm564_vm3, %v8218_v1, %v3429_v53  ;;  %v3432_v10 = vadd.f32 -1.0, %v4871_v58  ;;  %v4875_v19 = vpop.eup %4874 }
 0x20a   :  { %v627_v48 = vmul.f32 1.442695, %v595_v33  ;;  %4884 = vpow2.f32 %v625_v2  ;;  %v665_v11 = vsel %vm565_vm4, %v8215_v61, %v3430_v56  ;;  %v6487_v15 = vpack.c.bf16 %v664_v60, %v663_v57 }
 0x20b   :  { %v3433_v63 = vadd.f32 -1.0, %v4873_v6  ;;  %v666_v20 = vsel %vm566_vm5, %v8217_v14, %v3431_v59  ;;  %v3434_v1 = vadd.f32 -1.0, %v4875_v19  ;;  %v667_v27 = vsel %vm567_vm6, %v8220_v3, %v3432_v10 }
 0x20c   :  { %4886 = vpow2.f32 %v627_v48  ;;  %v6497_v61 = vpack.c.bf16 %v666_v20, %v665_v11  ;;  %vm577_vm2 = vcmp.gt.f32.partialorder %v8227_v13, 0.0  ;;  %vm578_vm3 = vcmp.gt.f32.partialorder %v8229_v17, 0.0 }
 0x20d   :  { %4888 = vpow2.f32 %v629_v47  ;;  %v668_v31 = vsel %vm568_vm7, %v8222_v5, %v3433_v63  ;;  %v669_v33 = vsel %vm569_vm8, %v8219_v50, %v3434_v1  ;;  %vm579_vm4 = vcmp.gt.f32.partialorder %v8232_v23, 0.0 }
 0x20e   :  { %4890 = vpow2.f32 %v631_v44  ;;  %v6507_v34 = vpack.c.bf16 %v668_v31, %v667_v27  ;;  %vm580_vm5 = vcmp.gt.f32.partialorder %v8234_v26, 0.0  ;;  %vm581_vm6 = vcmp.gt.f32.partialorder %v8231_v22, 0.0 }
 0x20f   :  { %4892 = vpow2.f32 %v633_v43  ;;  %vm582_vm7 = vcmp.gt.f32.partialorder %v8233_v25, 0.0  ;;  %v8257_v10 = vmov %v6450_v51  ;;  %v8262_v11 = vmov %v6450_v51 }
 0x210   :  { %4894 = vpow2.f32 %v635_v45  ;;  %v8263_v19 = vmov %v6450_v51  ;;  %v8264_v63 = vmov %v6450_v51  ;;  %v8265_v20 = vmov %v6450_v51 }
 0x211   :  { %4896 = vpow2.f32 %v637_v42  ;;  %v8267_v1 = vmov %v6450_v51  ;;  %v8268_v27 = vmov %v6450_v51  ;;  %v8271_v31 = vmov %v6450_v51 }
 0x212   :  { %4898 = vpow2.f32 %v639_v41  ;;  %v4877_v24 = vpop.eup %4876 }
 0x213   :  { %4900 = vpow2.f32 %v641_v52  ;;  %v4879_v28 = vpop.eup %4878  ;;  %v3435_v30 = vadd.f32 -1.0, %v4877_v24  ;;  %v8266_v24 = vmov %v6450_v51 }
 0x214   :  { %v4881_v32 = vpop.eup %4880  ;;  %v3436_v14 = vadd.f32 -1.0, %v4879_v28  ;;  %v8269_v28 = vmov %v6450_v51 }
 0x215   :  { %v4883_v3 = vpop.eup %4882  ;;  %v3437_v35 = vadd.f32 -1.0, %v4881_v32  ;;  %v670_v37 = vsel %vm570_vm9, %v8221_v4, %v3435_v30  ;;  %v8270_v30 = vmov %v6450_v51  ;;  %v8272_v32 = vmov %v6450_v51 }
 0x216   :  { %v3438_v5 = vadd.f32 -1.0, %v4883_v3  ;;  %v671_v0 = vsel %vm571_vm10, %v8224_v8, %v3436_v14  ;;  %v6515_v21 = vpack.c.bf16 %v670_v37, %v669_v33  ;;  %v8273_v14 = vmov %v6450_v51 }
 0x217   :  { %v4885_v62 = vpop.eup %4884  ;;  %v672_v54 = vsel %vm572_vm11, %v8226_v12, %v3437_v35  ;;  %v8274_v33 = vmov %v6450_v51 }
 0x218   :  { %v3439_v50 = vadd.f32 -1.0, %v4885_v62  ;;  %v673_v29 = vsel %vm573_vm12, %v8223_v7, %v3438_v5  ;;  %v6523_v47 = vpack.c.bf16 %v672_v54, %v671_v0 }
 0x219   :  { %v4887_v2 = vpop.eup %4886 }
 0x21a   :  { %v4889_v48 = vpop.eup %4888  ;;  %v3440_v4 = vadd.f32 -1.0, %v4887_v2  ;;  %v674_v44 = vsel %vm574_vm13, %v8225_v9, %v3439_v50 }
 0x21b   :  { %v4891_v49 = vpop.eup %4890  ;;  %v3441_v8 = vadd.f32 -1.0, %v4889_v48  ;;  %v6531_v45 = vpack.c.bf16 %v674_v44, %v673_v29 }
 0x21c   :  { %v4893_v46 = vpop.eup %4892  ;;  %v3442_v12 = vadd.f32 -1.0, %v4891_v49  ;;  %v675_v43 = vsel %vm575_vm14, %v8228_v16, %v3440_v4 }
 0x21d   :  { %v4895_v40 = vpop.eup %4894  ;;  %v3443_v7 = vadd.f32 -1.0, %v4893_v46  ;;  %v676_v42 = vsel %vm576_vm15, %v8230_v18, %v3441_v8 }
 0x21e   :  { %v4897_v39 = vpop.eup %4896  ;;  %v3444_v9 = vadd.f32 -1.0, %v4895_v40  ;;  %v677_v41 = vsel %vm577_vm2, %v8227_v13, %v3442_v12  ;;  %v6539_v36 = vpack.c.bf16 %v676_v42, %v675_v43 }
 0x21f   :  { %v4899_v38 = vpop.eup %4898  ;;  %v3445_v16 = vadd.f32 -1.0, %v4897_v39  ;;  %v678_v52 = vsel %vm578_vm3, %v8229_v17, %v3443_v7  ;;  %v8256_v17 = vmov %v6450_v51 }
 0x220   :  { %v4901_v53 = vpop.eup %4900  ;;  %v3446_v18 = vadd.f32 -1.0, %v4899_v38  ;;  %v679_v55 = vsel %vm579_vm4, %v8232_v23, %v3444_v9  ;;  %v6547_v56 = vpack.c.bf16 %v678_v52, %v677_v41  ;;  %v8258_v23 = vmov %v6450_v51 }
 0x221   :  { %v3447_v57 = vadd.f32 -1.0, %v4901_v53  ;;  %v680_v13 = vsel %vm580_vm5, %v8234_v26, %v3445_v16  ;;  %v8259_v26 = vmov %v6450_v51 }
 0x222   :  { %v681_v58 = vsel %vm581_vm6, %v8231_v22, %v3446_v18  ;;  %v6551_v59 = vpack.c.bf16 %v680_v13, %v679_v55  ;;  %v8260_v22 = vmov %v6450_v51 }
 0x223   :  { %v682_v60 = vsel %vm582_vm7, %v8233_v25, %v3447_v57  ;;  %v8261_v25 = vmov %v6450_v51 }
 0x224   :  { %v6554_v6 = vpack.c.bf16 %v682_v60, %v681_v58 }
 0x225 LB: > { %v5991_v3 = vmov 0   ;;  %s3693_s5 = smul.u32 160, %s5736_s2  ;;  %s5736_s2 = sphi %s6616_s2, %s705_s2   ;;  %v5732_v51 = vphi %v6450_v51, %v8315_v51   ;;  %v5728_v33 = vphi %v8274_v33, %v8314_v33   ;;  %v5724_v14 = vphi %v8273_v14, %v8313_v14   ;;  %v5720_v32 = vphi %v8272_v32, %v8312_v32   ;;  %v5716_v31 = vphi %v8271_v31, %v8311_v31   ;;  %v5712_v30 = vphi %v8270_v30, %v8310_v30   ;;  %v5708_v28 = vphi %v8269_v28, %v8309_v28   ;;  %v5704_v27 = vphi %v8268_v27, %v8308_v27   ;;  %v5700_v1 = vphi %v8267_v1, %v8307_v1   ;;  %v5696_v24 = vphi %v8266_v24, %v8306_v24   ;;  %v5692_v20 = vphi %v8265_v20, %v8305_v20   ;;  %v5688_v63 = vphi %v8264_v63, %v8304_v63   ;;  %v5684_v19 = vphi %v8263_v19, %v8303_v19   ;;  %v5680_v11 = vphi %v8262_v11, %v8302_v11   ;;  %v5676_v25 = vphi %v8261_v25, %v8301_v25   ;;  %v5672_v22 = vphi %v8260_v22, %v8300_v22   ;;  %v5668_v26 = vphi %v8259_v26, %v8299_v26   ;;  %v5664_v23 = vphi %v8258_v23, %v8298_v23   ;;  %v5660_v10 = vphi %v8257_v10, %v8297_v10   ;;  %v5656_v17 = vphi %v8256_v17, %v8296_v17  }
 0x226   : > { %879 = vmatprep.subr.bf16.mxu0 %v5991_v3  ;;  %3904 = vmatprep.subr.bf16.mxu1 %v5991_v3  ;;  %s3694_s22 = smul.u32 24, %s5736_s2  ;;  %s705_s2 = sadd.s32 1, %s5736_s2  }
 0x227   : > { %880 = vmatpush1.bf16.msra.mxu0 %v6547_v56  ;;  %3914 = vmatpush1.bf16.msra.mxu1 %v6547_v56  ;;  %s6687_s21 = scalar_lea.vmem %s8184_s1, %s3693_s5  ;;  %p6812_p1 = scmp.ge.s32.totalorder %s705_s2, 41  }
 0x228   : > { %881 = vmatprep.subr.bf16.mxu0 %v5991_v3  ;;  %3905 = vmatprep.subr.bf16.mxu1 %v5991_v3  ;;  %v4904_v35 = vld [vmem:[%s6687_s21 + $0x4] ss:$8 sps:$4 sm:$0xff]   ;;  %v4902_v62 = vld [vmem:[%s6687_s21] ss:$8 sps:$4 sm:$0xff]   ;;  %v4905_v0 = vld [vmem:[%s6687_s21 + $0x14] ss:$8 sps:$4 sm:$0xff]   ;;  %s751_s25 = scalar_lea.vmem %s8186_s4, %s3694_s22 }
 0x229   : > { %3471 = vmatprep.mubr.msk.bf16.mxu0 %vm227_vm0, %v4904_v35  ;;  %v4925_v37 = vld [vmem:[%s6687_s21 + $0x84] ss:$8 sps:$4 sm:$0xff]   ;;  %v4923_v5 = vld [vmem:[%s6687_s21 + $0x80] ss:$8 sps:$4 sm:$0xff]   ;;  %v4929_v2 = vld [vmem:[%s6687_s21 + $0x94] ss:$8 sps:$4 sm:$0xff]  }
 0x22a   : > { %3479 = vmatprep.mubr.msk.bf16.mxu1 %vm227_vm0, %v4925_v37  ;;  %v4907_v50 = vld [vmem:[%s6687_s21 + $0x10] ss:$8 sps:$4 sm:$0xff]   ;;  %v4908_v48 = vld [vmem:[%s6687_s21 + $0x24] ss:$8 sps:$4 sm:$0xff]   ;;  %v4910_v4 = vld [vmem:[%s6687_s21 + $0x20] ss:$8 sps:$4 sm:$0xff]  }
 0x22b   : > { %882 = vmatpush1.bf16.msra.mxu0 %v6539_v36  ;;  %3915 = vmatpush1.bf16.msra.mxu1 %v6539_v36  ;;  %v4931_v54 = vld [vmem:[%s6687_s21 + $0x90] ss:$8 sps:$4 sm:$0xff]   ;;  %v4911_v29 = vld [vmem:[%s6687_s21 + $0x34] ss:$8 sps:$4 sm:$0xff]   ;;  %v4914_v8 = vld [vmem:[%s6687_s21 + $0x44] ss:$8 sps:$4 sm:$0xff]  }
 0x22c   : > { %883 = vmatprep.subr.bf16.mxu0 %v5991_v3  ;;  %3906 = vmatprep.subr.bf16.mxu1 %v5991_v3  ;;  %v4913_v49 = vld [vmem:[%s6687_s21 + $0x30] ss:$8 sps:$4 sm:$0xff]   ;;  %v4916_v44 = vld [vmem:[%s6687_s21 + $0x40] ss:$8 sps:$4 sm:$0xff]   ;;  %v4917_v46 = vld [vmem:[%s6687_s21 + $0x54] ss:$8 sps:$4 sm:$0xff]  }
 0x22d   : > { %v4919_v12 = vld [vmem:[%s6687_s21 + $0x50] ss:$8 sps:$4 sm:$0xff]   ;;  %v4920_v43 = vld [vmem:[%s6687_s21 + $0x64] ss:$8 sps:$4 sm:$0xff]   ;;  %v4922_v40 = vld [vmem:[%s6687_s21 + $0x60] ss:$8 sps:$4 sm:$0xff]  }
 0x22e   : > { %v4926_v7 = vld [vmem:[%s6687_s21 + $0x74] ss:$8 sps:$4 sm:$0xff]   ;;  %v4928_v42 = vld [vmem:[%s6687_s21 + $0x70] ss:$8 sps:$4 sm:$0xff]   ;;  %v4933_v9 = vld [vmem:[%s751_s25 + $0x8] sm:$0xff]   ;;  %s7049_s4 = smov (%p6812_p1), 0  }
 0x22f   : > { %884 = vmatpush1.bf16.msra.mxu0 %v6531_v45  ;;  %3916 = vmatpush1.bf16.msra.mxu1 %v6531_v45  ;;  %v4932_v39 = vld [vmem:[%s751_s25 + $0x10] sm:$0xff]   ;;  %v4934_v41 = vld [vmem:[%s751_s25] sm:$0xff]  }
 0x230   : > { %885 = vmatprep.subr.bf16.mxu0 %v5991_v3  ;;  %3907 = vmatprep.subr.bf16.mxu1 %v5991_v3 }
 0x233   : > { %886 = vmatpush1.bf16.msra.mxu0 %v6523_v47  ;;  %3917 = vmatpush1.bf16.msra.mxu1 %v6523_v47 }
 0x234   : > { %887 = vmatprep.subr.bf16.mxu0 %v5991_v3  ;;  %3908 = vmatprep.subr.bf16.mxu1 %v5991_v3 }
 0x237   : > { %888 = vmatpush1.bf16.msra.mxu0 %v6515_v21  ;;  %3918 = vmatpush1.bf16.msra.mxu1 %v6515_v21 }
 0x238   : > { %889 = vmatprep.subr.bf16.mxu0 %v5991_v3  ;;  %3909 = vmatprep.subr.bf16.mxu1 %v5991_v3 }
 0x23b   : > { %890 = vmatpush1.bf16.msra.mxu0 %v6507_v34  ;;  %3919 = vmatpush1.bf16.msra.mxu1 %v6507_v34 }
 0x23c   : > { %891 = vmatprep.subr.bf16.mxu0 %v5991_v3  ;;  %3910 = vmatprep.subr.bf16.mxu1 %v5991_v3 }
 0x23f   : > { %892 = vmatpush1.bf16.msra.mxu0 %v6497_v61  ;;  %3920 = vmatpush1.bf16.msra.mxu1 %v6497_v61 }
 0x240   : > { %893 = vmatprep.subr.bf16.mxu0 %v5991_v3  ;;  %3911 = vmatprep.subr.bf16.mxu1 %v5991_v3 }
 0x243   : > { %894 = vmatpush1.bf16.msra.mxu0 %v6487_v15  ;;  %3921 = vmatpush1.bf16.msra.mxu1 %v6487_v15 }
 0x244   : > { %907 = vmatprep.subr.bf16.mxu0 %v5991_v3  ;;  %3912 = vmatprep.subr.bf16.mxu1 %v5991_v3 }
 0x247   : > { %908 = vmatpush2.bf16.msra.mxu0 %v6554_v6  ;;  %3922 = vmatpush2.bf16.msra.mxu1 %v6554_v6 }
 0x248   : > { %909 = vmatprep.subr.bf16.mxu0 %v5991_v3  ;;  %3913 = vmatprep.subr.bf16.mxu1 %v5991_v3 }
 0x24b   : > { %910 = vmatpush2.bf16.msra.mxu0 %v6551_v59  ;;  %3923 = vmatpush2.bf16.msra.mxu1 %v6551_v59 }
 0x24c   : > { %3788 = vmatprep.subr.bf16.mxu1 %v4932_v39 }
 0x24e   : > { %912 = vmatmul.mubr.bf16.vlgmr.msra.gmra.mxu0 %v4902_v62  ;;  %976 = vmatmul.mubr.bf16.vlgmr.msra.gmra.mxu1 %v4923_v5 }
 0x24f   : > { %3472 = vmatprep.mubr.msk.bf16.mxu0 %vm227_vm0, %v4905_v0  ;;  %3480 = vmatprep.mubr.msk.bf16.mxu1 %vm227_vm0, %v4929_v2 }
 0x250   : > { %3789 = vmatpush3.bf16.msra.mxu1 %v4932_v39 }
 0x251   : > { %3790 = vmatprep.subr.bf16.mxu1 %v4933_v9 }
 0x254   : > { %3791 = vmatpush3.bf16.msra.mxu1 %v4933_v9 }
 0x255   : > { %3792 = vmatprep.subr.bf16.mxu1 %v4934_v41 }
 0x256   : > { %920 = vmatmul.mubr.bf16.gmra.mxu0 %v4907_v50  ;;  %984 = vmatmul.mubr.bf16.gmra.mxu1 %v4931_v54 }
 0x257   : > { %3473 = vmatprep.mubr.msk.bf16.mxu0 %vm227_vm0, %v4908_v48 }
 0x258   : > { %3793 = vmatpush3.bf16.msra.mxu1 %v4934_v41 }
 0x25e   : > { %928 = vmatmul.mubr.bf16.gmra.mxu0 %v4910_v4 }
 0x25f   : > { %3474 = vmatprep.mubr.msk.bf16.mxu0 %vm227_vm0, %v4911_v29 }
 0x266   : > { %936 = vmatmul.mubr.bf16.gmra.mxu0 %v4913_v49 }
 0x267   : > { %3475 = vmatprep.mubr.msk.bf16.mxu0 %vm227_vm0, %v4914_v8 }
 0x26e   : > { %944 = vmatmul.mubr.bf16.gmra.mxu0 %v4916_v44 }
 0x26f   : > { %3476 = vmatprep.mubr.msk.bf16.mxu0 %vm227_vm0, %v4917_v46 }
 0x276   : > { %952 = vmatmul.mubr.bf16.gmra.mxu0 %v4919_v12 }
 0x277   : > { %3477 = vmatprep.mubr.msk.bf16.mxu0 %vm227_vm0, %v4920_v43 }
 0x27e   : > { %960 = vmatmul.mubr.bf16.gmra.mxu0 %v4922_v40 }
 0x27f   : > { %3478 = vmatprep.mubr.msk.bf16.mxu0 %vm227_vm0, %v4926_v7 }
 0x286   : > { %968 = vmatmul.mubr.bf16.gmra.mxu0 %v4928_v42 }
 0x30e   : > { %v913_v38 = vpop.f32.mrf.mxu0  ;;  %v977_v16 = vpop.f32.mrf.mxu1 }
 0x310   : > { %v915_v52 = vpop.f32.mrf.mxu0  ;;  %v979_v53 = vpop.f32.mrf.mxu1 }
 0x312   : > { %v916_v18 = vpop.f32.mrf.mxu0  ;;  %v980_v55 = vpop.f32.mrf.mxu1 }
 0x313   : > { %v992_v57 = vpack.c.bf16 %v916_v18, %v913_v38 }
 0x314   : > { %v918_v13 = vpop.f32.mrf.mxu0  ;;  %v982_v58 = vpop.f32.mrf.mxu1 }
 0x315   : > { %3794 = vmatprep.mubr.msk.bf16.mxu1 %vm399_vm1, %v992_v57 }
 0x316   : > { %v921_v60 = vpop.f32.mrf.mxu0  ;;  %v985_v3 = vpop.f32.mrf.mxu1 }
 0x318   : > { %v923_v35 = vpop.f32.mrf.mxu0  ;;  %v987_v37 = vpop.f32.mrf.mxu1 }
 0x31a   : > { %v924_v62 = vpop.f32.mrf.mxu0  ;;  %v988_v5 = vpop.f32.mrf.mxu1 }
 0x31b   : > { %v993_v0 = vpack.c.bf16 %v924_v62, %v921_v60 }
 0x31c   : > { %v926_v2 = vpop.f32.mrf.mxu0  ;;  %v990_v50 = vpop.f32.mrf.mxu1 }
 0x31d   : > { %3795 = vmatmul.mubr.msk.bf16.vlgmr.msra.gmra.mxu1 %vm399_vm1, %v993_v0  ;;  %v1000_v50 = vpack.c.bf16 %v980_v55, %v977_v16 }
 0x31e   : > { %v929_v54 = vpop.f32.mrf.mxu0 }
 0x320   : > { %v931_v48 = vpop.f32.mrf.mxu0 }
 0x321   : > { %v1001_v48 = vpack.c.bf16 %v988_v5, %v985_v3 }
 0x322   : > { %v932_v4 = vpop.f32.mrf.mxu0 }
 0x323   : > { %v994_v29 = vpack.c.bf16 %v932_v4, %v929_v54 }
 0x324   : > { %v934_v49 = vpop.f32.mrf.mxu0 }
 0x325   : > { %3798 = vmatprep.mubr.msk.bf16.mxu1 %vm399_vm1, %v994_v29 }
 0x326   : > { %v937_v8 = vpop.f32.mrf.mxu0 }
 0x328   : > { %v939_v44 = vpop.f32.mrf.mxu0 }
 0x32a   : > { %v940_v46 = vpop.f32.mrf.mxu0 }
 0x32b   : > { %v995_v12 = vpack.c.bf16 %v940_v46, %v937_v8 }
 0x32c   : > { %v942_v43 = vpop.f32.mrf.mxu0 }
 0x32d   : > { %3799 = vmatmul.mubr.msk.bf16.gmra.mxu1 %vm399_vm1, %v995_v12 }
 0x32e   : > { %v945_v40 = vpop.f32.mrf.mxu0 }
 0x330   : > { %v947_v7 = vpop.f32.mrf.mxu0 }
 0x332   : > { %v948_v42 = vpop.f32.mrf.mxu0 }
 0x333   : > { %v996_v39 = vpack.c.bf16 %v948_v42, %v945_v40 }
 0x334   : > { %v950_v9 = vpop.f32.mrf.mxu0 }
 0x335   : > { %3802 = vmatprep.mubr.msk.bf16.mxu1 %vm399_vm1, %v996_v39 }
 0x336   : > { %v953_v41 = vpop.f32.mrf.mxu0 }
 0x338   : > { %v955_v38 = vpop.f32.mrf.mxu0 }
 0x33a   : > { %v956_v52 = vpop.f32.mrf.mxu0 }
 0x33b   : > { %v997_v53 = vpack.c.bf16 %v956_v52, %v953_v41 }
 0x33c   : > { %v958_v18 = vpop.f32.mrf.mxu0 }
 0x33d   : > { %3803 = vmatmul.mubr.msk.bf16.gmra.mxu1 %vm399_vm1, %v997_v53 }
 0x33e   : > { %v961_v57 = vpop.f32.mrf.mxu0 }
 0x340   : > { %v963_v13 = vpop.f32.mrf.mxu0 }
 0x342   : > { %v964_v58 = vpop.f32.mrf.mxu0 }
 0x343   : > { %v998_v60 = vpack.c.bf16 %v964_v58, %v961_v57 }
 0x344   : > { %v966_v35 = vpop.f32.mrf.mxu0 }
 0x345   : > { %3806 = vmatprep.mubr.msk.bf16.mxu1 %vm399_vm1, %v998_v60  ;;  %v6883_v35 = vld [vmem:[%s8189_s7] ss:$0 sm:$0xff] (%p6812_p1)  }
 0x346   : > { %v969_v37 = vpop.f32.mrf.mxu0 }
 0x348   : > { %v971_v62 = vpop.f32.mrf.mxu0 }
 0x34a   : > { %v972_v0 = vpop.f32.mrf.mxu0 }
 0x34b   : > { %v999_v2 = vpack.c.bf16 %v972_v0, %v969_v37 }
 0x34c   : > { %v974_v54 = vpop.f32.mrf.mxu0 }
 0x34d   : > { %3807 = vmatmul.mubr.msk.bf16.gmra.mxu1 %vm399_vm1, %v999_v2 }
 0x34e   : > { %3810 = vmatprep.mubr.msk.bf16.mxu1 %vm399_vm1, %v1000_v50 }
 0x355   : > { %3811 = vmatmul.mubr.msk.bf16.gmra.mxu1 %vm399_vm1, %v1001_v48 }
 0x3dd   : > { %v3796_v4 = vpop.f32.mrf.mxu1 }
 0x3de   : > { %v6752_v14 = vadd.f32 %v5724_v14, %v3796_v4  }
 0x3df   : > { %v1085_v49 = vpop.f32.mrf.mxu1 }
 0x3e0   : > { %v8275_v29 = vmov %v6752_v14  ;;  %v6755_v51 = vadd.f32 %v5732_v51, %v1085_v49  }
 0x3e1   : > { %v3797_v44 = vpop.f32.mrf.mxu1  ;;  %v1206_v0 = vmin.f32 (%p6812_p1), %v8275_v29, 0.0  ;;  %vm1186_vm9 = vcmp.gt.f32.partialorder (%p6812_p1), %v8275_v29, 0.0 }
 0x3e2   : > { %v8276_v8 = vmov %v6755_v51  ;;  %v6758_v32 = vadd.f32 %v5720_v32, %v3797_v44  }
 0x3e3   : > { %v1088_v55 = vpop.f32.mrf.mxu1  ;;  %v1204_v37 = vmin.f32 (%p6812_p1), %v8276_v8, 0.0  ;;  %v1228_v61 = vmul.f32 (%p6812_p1), 1.442695, %v1206_v0  ;;  %vm1184_vm1 = vcmp.gt.f32.partialorder (%p6812_p1), %v8276_v8, 0.0 }
 0x3e4   : > { %v8277_v16 = vmov %v6758_v32  ;;  %v6761_v33 = vadd.f32 %v5728_v33, %v1088_v55  }
 0x3e5   :  { %v1207_v2 = vmin.f32 (%p6812_p1), %v8277_v16, 0.0  ;;  %v1224_v4 = vmul.f32 (%p6812_p1), 1.442695, %v1204_v37  ;;  %vm1187_vm10 = vcmp.gt.f32.partialorder (%p6812_p1), %v8277_v16, 0.0 }
 0x3e6   : > { %v8278_v46 = vmov %v6761_v33 }
 0x3e7   :  { %v1205_v62 = vmin.f32 (%p6812_p1), %v8278_v46, 0.0  ;;  %v1230_v21 = vmul.f32 (%p6812_p1), 1.442695, %v1207_v2  ;;  %4935 = vpow2.f32 (%p6812_p1), %v1224_v4  ;;  %vm1185_vm8 = vcmp.gt.f32.partialorder (%p6812_p1), %v8278_v46, 0.0 }
 0x3e9   :  { %v1226_v15 = vmul.f32 (%p6812_p1), 1.442695, %v1205_v62 }
 0x3eb   :  { %4937 = vpow2.f32 (%p6812_p1), %v1226_v15 }
 0x3ec   :  { %4939 = vpow2.f32 (%p6812_p1), %v1228_v61 }
 0x3ed   : > { %v3800_v12 = vpop.f32.mrf.mxu1  ;;  %4941 = vpow2.f32 (%p6812_p1), %v1230_v21 }
 0x3ee   : > { %v6764_v28 = vadd.f32 %v5708_v28, %v3800_v12  }
 0x3ef   : > { %v1101_v5 = vpop.f32.mrf.mxu1 }
 0x3f0   : > { %v8279_v3 = vmov %v6764_v28  ;;  %v6767_v31 = vadd.f32 %v5716_v31, %v1101_v5  }
 0x3f1   : > { %v3801_v14 = vpop.f32.mrf.mxu1  ;;  %v1210_v48 = vmin.f32 (%p6812_p1), %v8279_v3, 0.0  ;;  %vm1190_vm13 = vcmp.gt.f32.partialorder (%p6812_p1), %v8279_v3, 0.0 }
 0x3f2   : > { %v8280_v43 = vmov %v6767_v31  ;;  %v6770_v27 = vadd.f32 %v5704_v27, %v3801_v14   ;;  %v8313_v14 = vmov %v8275_v29 }
 0x3f3   : > { %v1104_v51 = vpop.f32.mrf.mxu1  ;;  %v1208_v50 = vmin.f32 (%p6812_p1), %v8280_v43, 0.0  ;;  %v1236_v6 = vmul.f32 (%p6812_p1), 1.442695, %v1210_v48  ;;  %vm1188_vm11 = vcmp.gt.f32.partialorder (%p6812_p1), %v8280_v43, 0.0 }
 0x3f4   : > { %v8281_v40 = vmov %v6770_v27  ;;  %v6773_v30 = vadd.f32 %v5712_v30, %v1104_v51   ;;  %v8315_v51 = vmov %v8276_v8 }
 0x3f5   :  { %v1211_v34 = vmin.f32 (%p6812_p1), %v8281_v40, 0.0  ;;  %v1232_v45 = vmul.f32 (%p6812_p1), 1.442695, %v1208_v50  ;;  %vm1191_vm14 = vcmp.gt.f32.partialorder (%p6812_p1), %v8281_v40, 0.0 }
 0x3f6   : > { %v8282_v7 = vmov %v6773_v30 }
 0x3f7   :  { %v1209_v54 = vmin.f32 (%p6812_p1), %v8282_v7, 0.0  ;;  %4943 = vpow2.f32 (%p6812_p1), %v1232_v45  ;;  %vm1189_vm12 = vcmp.gt.f32.partialorder (%p6812_p1), %v8282_v7, 0.0 }
 0x3f9   :  { %v1234_v56 = vmul.f32 (%p6812_p1), 1.442695, %v1209_v54 }
 0x3fb   :  { %4945 = vpow2.f32 (%p6812_p1), %v1234_v56 }
 0x3fc   :  { %4947 = vpow2.f32 (%p6812_p1), %v1236_v6 }
 0x3fd   : > { %v3804_v32 = vpop.f32.mrf.mxu1 }
 0x3fe   : > { %v6776_v20 = vadd.f32 %v5692_v20, %v3804_v32   ;;  %v8312_v32 = vmov %v8277_v16 }
 0x3ff   : > { %v1117_v33 = vpop.f32.mrf.mxu1 }
 0x400   : > { %v8283_v42 = vmov %v6776_v20  ;;  %v6779_v1 = vadd.f32 %v5700_v1, %v1117_v33   ;;  %v8314_v33 = vmov %v8278_v46 }
 0x401   : > { %v3805_v28 = vpop.f32.mrf.mxu1  ;;  %v1214_v59 = vmin.f32 (%p6812_p1), %v8283_v42, 0.0  ;;  %vm1194_vm3 = vcmp.gt.f32.partialorder (%p6812_p1), %v8283_v42, 0.0 }
 0x402   : > { %v8284_v39 = vmov %v6779_v1  ;;  %v6782_v63 = vadd.f32 %v5688_v63, %v3805_v28   ;;  %v8309_v28 = vmov %v8279_v3 }
 0x403   : > { %v1120_v31 = vpop.f32.mrf.mxu1  ;;  %v1212_v47 = vmin.f32 (%p6812_p1), %v8284_v39, 0.0  ;;  %v1244_v44 = vmul.f32 (%p6812_p1), 1.442695, %v1214_v59  ;;  %vm1192_vm15 = vcmp.gt.f32.partialorder (%p6812_p1), %v8284_v39, 0.0 }
 0x404   : > { %v8285_v9 = vmov %v6782_v63  ;;  %v6785_v24 = vadd.f32 %v5696_v24, %v1120_v31   ;;  %v8311_v31 = vmov %v8280_v43 }
 0x405   :  { %vm1195_vm4 = vcmp.gt.f32.partialorder (%p6812_p1), %v8285_v9, 0.0 }
 0x406   : > { %v8286_v41 = vmov %v6785_v24 }
 0x407   :  { %v1213_v36 = vmin.f32 (%p6812_p1), %v8286_v41, 0.0  ;;  %vm1193_vm2 = vcmp.gt.f32.partialorder (%p6812_p1), %v8286_v41, 0.0 }
 0x40d   : > { %v3808_v27 = vpop.f32.mrf.mxu1 }
 0x40e   : > { %v6788_v25 = vadd.f32 %v5676_v25, %v3808_v27   ;;  %v8308_v27 = vmov %v8281_v40 }
 0x40f   : > { %v1133_v30 = vpop.f32.mrf.mxu1 }
 0x410   : > { %v8287_v38 = vmov %v6788_v25  ;;  %v6791_v19 = vadd.f32 %v5684_v19, %v1133_v30   ;;  %v8310_v30 = vmov %v8282_v7 }
 0x411   : > { %v3809_v20 = vpop.f32.mrf.mxu1  ;;  %v1218_v49 = vmin.f32 (%p6812_p1), %v8287_v38, 0.0  ;;  %vm1198_vm7 = vcmp.gt.f32.partialorder (%p6812_p1), %v8287_v38, 0.0 }
 0x412   : > { %v8288_v52 = vmov %v6791_v19  ;;  %v6794_v22 = vadd.f32 %v5672_v22, %v3809_v20   ;;  %v8305_v20 = vmov %v8283_v42 }
 0x413   : > { %v1136_v1 = vpop.f32.mrf.mxu1  ;;  %v1252_v28 = vmul.f32 (%p6812_p1), 1.442695, %v1218_v49  ;;  %v4936_v20 = vpop.eup (%p6812_p1), %4935  ;;  %vm1196_vm5 = vcmp.gt.f32.partialorder (%p6812_p1), %v8288_v52, 0.0 }
 0x414   : > { %v8289_v53 = vmov %v6794_v22  ;;  %v6797_v11 = vadd.f32 %v5680_v11, %v1136_v1   ;;  %v8307_v1 = vmov %v8284_v39 }
 0x415   : > { %v3812_v63 = vpop.f32.mrf.mxu1  ;;  %v8300_v22 = vmov %v8289_v53  ;;  %v1219_v55 = vmin.f32 (%p6812_p1), %v8289_v53, 0.0 }
 0x416   : > { %v8290_v18 = vmov %v6797_v11  ;;  %v6800_v10 = vadd.f32 %v5660_v10, %v3812_v63   ;;  %v8304_v63 = vmov %v8285_v9 }
 0x417   : > { %v1149_v24 = vpop.f32.mrf.mxu1  ;;  %v8302_v11 = vmov %v8290_v18  ;;  %v1217_v22 = vmin.f32 (%p6812_p1), %v8290_v18, 0.0  ;;  %v1254_v27 = vmul.f32 (%p6812_p1), 1.442695, %v1219_v55  ;;  %v4938_v63 = vpop.eup (%p6812_p1), %4937  ;;  %vm1197_vm6 = vcmp.gt.f32.partialorder (%p6812_p1), %v8290_v18, 0.0 }
 0x418   : > { %v8291_v57 = vmov %v6800_v10  ;;  %v6803_v26 = vadd.f32 %v5668_v26, %v1149_v24   ;;  %v8306_v24 = vmov %v8286_v41  ;;  %v1242_v11 = vmul.f32 (%p6812_p1), 1.442695, %v1213_v36 }
 0x419   : > { %v3813_v25 = vpop.f32.mrf.mxu1  ;;  %v8297_v10 = vmov %v8291_v57  ;;  %v1250_v32 = vmul.f32 (%p6812_p1), 1.442695, %v1217_v22  ;;  %v1222_v33 = vmin.f32 (%p6812_p1), %v8291_v57, 0.0  ;;  %v3495_v62 = vadd.f32 (%p6812_p1), -1.0, %v4938_v63 }
 0x41a   : > { %v8292_v13 = vmov %v6803_v26  ;;  %v6806_v17 = vadd.f32 %v5656_v17, %v3813_v25   ;;  %v8301_v25 = vmov %v8287_v38  ;;  %v1238_v10 = vmul.f32 (%p6812_p1), 1.442695, %v1211_v34 }
 0x41b   : > { %v1152_v19 = vpop.f32.mrf.mxu1  ;;  %v8299_v26 = vmov %v8292_v13  ;;  %704 = sbr.rel (!%p6812_p1) target bundleno = 549 (0x225), region = 124  ;;  %v1220_v5 = vmin.f32 (%p6812_p1), %v8292_v13, 0.0  ;;  %v1260_v24 = vmul.f32 (%p6812_p1), 1.442695, %v1222_v33  ;;  %v3494_v25 = vadd.f32 (%p6812_p1), -1.0, %v4936_v20 }
 0x41c   : > { %v8293_v58 = vmov %v6806_v17  ;;  %v6809_v23 = vadd.f32 %v5664_v23, %v1152_v19   ;;  %v8303_v19 = vmov %v8288_v52  ;;  %v1240_v26 = vmul.f32 (%p6812_p1), 1.442695, %v1212_v47 }
 0x41d   : > { %v8296_v17 = vmov %v8293_v58  ;;  %4949 = vpow2.f32 (%p6812_p1), %v1238_v10  ;;  %v1223_v31 = vmin.f32 (%p6812_p1), %v8293_v58, 0.0  ;;  %v1256_v30 = vmul.f32 (%p6812_p1), 1.442695, %v1220_v5  ;;  %v4940_v19 = vpop.eup (%p6812_p1), %4939 }
 0x41e   : > { %v8294_v60 = vmov %v6809_v23  ;;  %v1215_v17 = vmin.f32 (%p6812_p1), %v8285_v9, 0.0  ;;  %4951 = vpow2.f32 (%p6812_p1), %v1240_v26  ;;  %v4942_v0 = vpop.eup (%p6812_p1), %4941  ;;  %v3496_v2 = vadd.f32 (%p6812_p1), -1.0, %v4940_v19 }
 0x41f   : > { %v8298_v23 = vmov %v8294_v60  ;;  %v1221_v51 = vmin.f32 (%p6812_p1), %v8294_v60, 0.0  ;;  %4953 = vpow2.f32 (%p6812_p1), %v1242_v11  ;;  %v1262_v37 = vmul.f32 (%p6812_p1), 1.442695, %v1223_v31  ;;  %v4944_v54 = vpop.eup (%p6812_p1), %4943 }
 0x420   :  { %v1216_v23 = vmin.f32 %v8288_v52, 0.0  ;;  %v1246_v12 = vmul.f32 1.442695, %v1215_v17  ;;  %4955 = vpow2.f32 %v1244_v44  ;;  %v1284_v50 = vsel %vm1184_vm1, %v8276_v8, %v3494_v25  ;;  %v4946_v15 = vpop.eup %4945 }
 0x421   :  { %v1258_v1 = vmul.f32 1.442695, %v1221_v51  ;;  %v3497_v48 = vadd.f32 -1.0, %v4942_v0  ;;  %v1285_v4 = vsel %vm1185_vm8, %v8278_v46, %v3495_v62  ;;  %v3498_v61 = vadd.f32 -1.0, %v4944_v54  ;;  %v4948_v47 = vpop.eup %4947 }
 0x422   :  { %v1248_v14 = vmul.f32 1.442695, %v1216_v23  ;;  %4957 = vpow2.f32 %v1246_v12  ;;  %v1286_v34 = vsel %vm1186_vm9, %v8275_v29, %v3496_v2  ;;  %v6920_v21 = vpack.c.bf16 %v1285_v4, %v1284_v50 }
 0x423   :  { %v3499_v8 = vadd.f32 -1.0, %v4946_v15  ;;  %v1287_v45 = vsel %vm1187_vm10, %v8277_v16, %v3497_v48  ;;  %v3500_v46 = vadd.f32 -1.0, %v4948_v47  ;;  %v1288_v56 = vsel %vm1188_vm11, %v8280_v43, %v3498_v61 }
 0x424   :  { %4959 = vpow2.f32 %v1248_v14  ;;  %v6930_v29 = vpack.c.bf16 %v1287_v45, %v1286_v34  ;;  %vm1199_vm1 = vcmp.gt.f32.partialorder %v8289_v53, 0.0  ;;  %vm1200_vm8 = vcmp.gt.f32.partialorder %v8292_v13, 0.0 }
 0x425   :  { %4961 = vpow2.f32 %v1250_v32  ;;  %v1289_v17 = vsel %vm1189_vm12, %v8282_v7, %v3499_v8  ;;  %v1290_v23 = vsel %vm1190_vm13, %v8279_v3, %v3500_v46  ;;  %vm1201_vm9 = vcmp.gt.f32.partialorder %v8294_v60, 0.0 }
 0x426   :  { %4963 = vpow2.f32 %v1252_v28  ;;  %v6940_v26 = vpack.c.bf16 %v1289_v17, %v1288_v56  ;;  %vm1202_vm10 = vcmp.gt.f32.partialorder %v8291_v57, 0.0  ;;  %vm1203_vm11 = vcmp.gt.f32.partialorder %v8293_v58, 0.0 }
 0x427   :  { %4965 = vpow2.f32 %v1254_v27  ;;  %v8317_v61 = vmov %v6883_v35  ;;  %v8322_v34 = vmov %v6883_v35  ;;  %v8323_v47 = vmov %v6883_v35 }
 0x428   :  { %4967 = vpow2.f32 %v1256_v30  ;;  %v8324_v8 = vmov %v6883_v35  ;;  %v8325_v45 = vmov %v6883_v35  ;;  %v8327_v46 = vmov %v6883_v35 }
 0x429   :  { %4969 = vpow2.f32 %v1258_v1  ;;  %v8328_v56 = vmov %v6883_v35  ;;  %v8331_v17 = vmov %v6883_v35 }
 0x42a   :  { %4971 = vpow2.f32 %v1260_v24  ;;  %v4950_v36 = vpop.eup %4949 }
 0x42b   :  { %4973 = vpow2.f32 %v1262_v37  ;;  %v4952_v59 = vpop.eup %4951  ;;  %v3501_v6 = vadd.f32 -1.0, %v4950_v36  ;;  %v8326_v36 = vmov %v6883_v35 }
 0x42c   :  { %v4954_v10 = vpop.eup %4953  ;;  %v3502_v16 = vadd.f32 -1.0, %v4952_v59  ;;  %v8329_v59 = vmov %v6883_v35 }
 0x42d   :  { %v4956_v43 = vpop.eup %4955  ;;  %v3503_v22 = vadd.f32 -1.0, %v4954_v10  ;;  %v1291_v11 = vsel %vm1191_vm14, %v8281_v40, %v3501_v6  ;;  %v8330_v6 = vmov %v6883_v35  ;;  %v8332_v10 = vmov %v6883_v35 }
 0x42e   :  { %v3504_v7 = vadd.f32 -1.0, %v4956_v43  ;;  %v1292_v44 = vsel %vm1192_vm15, %v8284_v39, %v3502_v16  ;;  %v6948_v55 = vpack.c.bf16 %v1291_v11, %v1290_v23  ;;  %v8333_v16 = vmov %v6883_v35 }
 0x42f   :  { %v4958_v49 = vpop.eup %4957  ;;  %v1293_v5 = vsel %vm1193_vm2, %v8286_v41, %v3503_v22  ;;  %v8334_v23 = vmov %v6883_v35 }
 0x430   :  { %v3505_v3 = vadd.f32 -1.0, %v4958_v49  ;;  %v1294_v51 = vsel %vm1194_vm3, %v8283_v42, %v3504_v7  ;;  %v6956_v32 = vpack.c.bf16 %v1293_v5, %v1292_v44 }
 0x431   :  { %v4960_v12 = vpop.eup %4959 }
 0x432   :  { %v4962_v14 = vpop.eup %4961  ;;  %v3506_v40 = vadd.f32 -1.0, %v4960_v12  ;;  %v1295_v28 = vsel %vm1195_vm4, %v8285_v9, %v3505_v3 }
 0x433   :  { %v4964_v33 = vpop.eup %4963  ;;  %v3507_v39 = vadd.f32 -1.0, %v4962_v14  ;;  %v6964_v30 = vpack.c.bf16 %v1295_v28, %v1294_v51 }
 0x434   :  { %v4966_v31 = vpop.eup %4965  ;;  %v3508_v41 = vadd.f32 -1.0, %v4964_v33  ;;  %v1296_v27 = vsel %vm1196_vm5, %v8288_v52, %v3506_v40 }
 0x435   :  { %v4968_v20 = vpop.eup %4967  ;;  %v3509_v42 = vadd.f32 -1.0, %v4966_v31  ;;  %v1297_v1 = vsel %vm1197_vm6, %v8290_v18, %v3507_v39 }
 0x436   :  { %v4970_v63 = vpop.eup %4969  ;;  %v3510_v9 = vadd.f32 -1.0, %v4968_v20  ;;  %v1298_v24 = vsel %vm1198_vm7, %v8287_v38, %v3508_v41  ;;  %v6972_v25 = vpack.c.bf16 %v1297_v1, %v1296_v27 }
 0x437   :  { %v4972_v19 = vpop.eup %4971  ;;  %v3511_v52 = vadd.f32 -1.0, %v4970_v63  ;;  %v1299_v37 = vsel %vm1199_vm1, %v8289_v53, %v3509_v42  ;;  %v8316_v53 = vmov %v6883_v35 }
 0x438   :  { %v4974_v62 = vpop.eup %4973  ;;  %v3512_v18 = vadd.f32 -1.0, %v4972_v19  ;;  %v1300_v0 = vsel %vm1200_vm8, %v8292_v13, %v3510_v9  ;;  %v6980_v2 = vpack.c.bf16 %v1299_v37, %v1298_v24  ;;  %v8318_v13 = vmov %v6883_v35 }
 0x439   :  { %v3513_v50 = vadd.f32 -1.0, %v4974_v62  ;;  %v1301_v38 = vsel %vm1201_vm9, %v8294_v60, %v3511_v52  ;;  %v8319_v60 = vmov %v6883_v35 }
 0x43a   :  { %v1302_v54 = vsel %vm1202_vm10, %v8291_v57, %v3512_v18  ;;  %v6984_v48 = vpack.c.bf16 %v1301_v38, %v1300_v0  ;;  %v8320_v57 = vmov %v6883_v35 }
 0x43b   :  { %v1303_v4 = vsel %vm1203_vm11, %v8293_v58, %v3513_v50  ;;  %v8321_v58 = vmov %v6883_v35 }
 0x43c   :  { %v6987_v15 = vpack.c.bf16 %v1303_v4, %v1302_v54 }
 0x43d LB: > { %v5992_v43 = vmov 0   ;;  %s3695_s7 = smul.u32 160, %s5820_s4  ;;  %s3696_s30 = sshll.u32 %s5820_s4, 4  ;;  %s5820_s4 = sphi %s7049_s4, %s1326_s4   ;;  %v5816_v35 = vphi %v6883_v35, %v8375_v35   ;;  %v5812_v23 = vphi %v8334_v23, %v8374_v23   ;;  %v5808_v16 = vphi %v8333_v16, %v8373_v16   ;;  %v5804_v10 = vphi %v8332_v10, %v8372_v10   ;;  %v5800_v17 = vphi %v8331_v17, %v8371_v17   ;;  %v5796_v6 = vphi %v8330_v6, %v8370_v6   ;;  %v5792_v59 = vphi %v8329_v59, %v8369_v59   ;;  %v5788_v56 = vphi %v8328_v56, %v8368_v56   ;;  %v5784_v46 = vphi %v8327_v46, %v8367_v46   ;;  %v5780_v36 = vphi %v8326_v36, %v8366_v36   ;;  %v5776_v45 = vphi %v8325_v45, %v8365_v45   ;;  %v5772_v8 = vphi %v8324_v8, %v8364_v8   ;;  %v5768_v47 = vphi %v8323_v47, %v8363_v47   ;;  %v5764_v34 = vphi %v8322_v34, %v8362_v34   ;;  %v5760_v58 = vphi %v8321_v58, %v8361_v58   ;;  %v5756_v57 = vphi %v8320_v57, %v8360_v57   ;;  %v5752_v60 = vphi %v8319_v60, %v8359_v60   ;;  %v5748_v13 = vphi %v8318_v13, %v8358_v13   ;;  %v5744_v61 = vphi %v8317_v61, %v8357_v61   ;;  %v5740_v53 = vphi %v8316_v53, %v8356_v53  }
 0x43e   : > { %1498 = vmatprep.subr.bf16.mxu0 %v5992_v43  ;;  %3924 = vmatprep.subr.bf16.mxu1 %v5992_v43  ;;  %s1372_s15 = scalar_lea.vmem %s8188_s6, %s3696_s30  ;;  %s1326_s4 = sadd.s32 1, %s5820_s4  }
 0x43f   : > { %1499 = vmatpush1.bf16.msra.mxu0 %v6980_v2  ;;  %3934 = vmatpush1.bf16.msra.mxu1 %v6980_v2  ;;  %s7120_s29 = scalar_lea.vmem %s8184_s1, %s3695_s7  ;;  %v5005_v63 = vld [vmem:[%s1372_s15 + $0x8] sm:$0xff]   ;;  %v5006_v9 = vld [vmem:[%s1372_s15] sm:$0xff]   ;;  %p7245_p2 = scmp.ge.s32.totalorder %s1326_s4, 41  }
 0x440   : > { %1500 = vmatprep.subr.bf16.mxu0 %v5992_v43  ;;  %3925 = vmatprep.subr.bf16.mxu1 %v5992_v43  ;;  %v4977_v22 = vld [vmem:[%s7120_s29 + $0x4] ss:$8 sps:$4 sm:$0xff]   ;;  %v4975_v49 = vld [vmem:[%s7120_s29] ss:$8 sps:$4 sm:$0xff]   ;;  %v4978_v44 = vld [vmem:[%s7120_s29 + $0x14] ss:$8 sps:$4 sm:$0xff]  }
 0x441   : > { %3538 = vmatprep.mubr.msk.bf16.mxu0 %vm227_vm0, %v4977_v22  ;;  %v4998_v11 = vld [vmem:[%s7120_s29 + $0x84] ss:$8 sps:$4 sm:$0xff]   ;;  %v4996_v7 = vld [vmem:[%s7120_s29 + $0x80] ss:$8 sps:$4 sm:$0xff]   ;;  %v5002_v12 = vld [vmem:[%s7120_s29 + $0x94] ss:$8 sps:$4 sm:$0xff]  }
 0x442   : > { %3546 = vmatprep.mubr.msk.bf16.mxu1 %vm227_vm0, %v4998_v11  ;;  %v4980_v3 = vld [vmem:[%s7120_s29 + $0x10] ss:$8 sps:$4 sm:$0xff]   ;;  %v4981_v14 = vld [vmem:[%s7120_s29 + $0x24] ss:$8 sps:$4 sm:$0xff]   ;;  %v4983_v40 = vld [vmem:[%s7120_s29 + $0x20] ss:$8 sps:$4 sm:$0xff]  }
 0x443   : > { %1501 = vmatpush1.bf16.msra.mxu0 %v6972_v25  ;;  %3935 = vmatpush1.bf16.msra.mxu1 %v6972_v25  ;;  %v5004_v5 = vld [vmem:[%s7120_s29 + $0x90] ss:$8 sps:$4 sm:$0xff]   ;;  %v4984_v51 = vld [vmem:[%s7120_s29 + $0x34] ss:$8 sps:$4 sm:$0xff]   ;;  %v4987_v39 = vld [vmem:[%s7120_s29 + $0x44] ss:$8 sps:$4 sm:$0xff]  }
 0x444   : > { %1502 = vmatprep.subr.bf16.mxu0 %v5992_v43  ;;  %3926 = vmatprep.subr.bf16.mxu1 %v5992_v43  ;;  %v4986_v33 = vld [vmem:[%s7120_s29 + $0x30] ss:$8 sps:$4 sm:$0xff]   ;;  %v4989_v28 = vld [vmem:[%s7120_s29 + $0x40] ss:$8 sps:$4 sm:$0xff]   ;;  %v4990_v31 = vld [vmem:[%s7120_s29 + $0x54] ss:$8 sps:$4 sm:$0xff]  }
 0x445   : > { %v4992_v41 = vld [vmem:[%s7120_s29 + $0x50] ss:$8 sps:$4 sm:$0xff]   ;;  %v4993_v27 = vld [vmem:[%s7120_s29 + $0x64] ss:$8 sps:$4 sm:$0xff]   ;;  %v4995_v20 = vld [vmem:[%s7120_s29 + $0x60] ss:$8 sps:$4 sm:$0xff]  }
 0x446   : > { %v4999_v42 = vld [vmem:[%s7120_s29 + $0x74] ss:$8 sps:$4 sm:$0xff]   ;;  %v5001_v1 = vld [vmem:[%s7120_s29 + $0x70] ss:$8 sps:$4 sm:$0xff]   ;;  %s7482_s6 = smov (%p7245_p2), 0  }
 0x447   : > { %1503 = vmatpush1.bf16.msra.mxu0 %v6964_v30  ;;  %3936 = vmatpush1.bf16.msra.mxu1 %v6964_v30 }
 0x448   : > { %1504 = vmatprep.subr.bf16.mxu0 %v5992_v43  ;;  %3927 = vmatprep.subr.bf16.mxu1 %v5992_v43 }
 0x44b   : > { %1505 = vmatpush1.bf16.msra.mxu0 %v6956_v32  ;;  %3937 = vmatpush1.bf16.msra.mxu1 %v6956_v32 }
 0x44c   : > { %1506 = vmatprep.subr.bf16.mxu0 %v5992_v43  ;;  %3928 = vmatprep.subr.bf16.mxu1 %v5992_v43 }
 0x44f   : > { %1507 = vmatpush1.bf16.msra.mxu0 %v6948_v55  ;;  %3938 = vmatpush1.bf16.msra.mxu1 %v6948_v55 }
 0x450   : > { %1508 = vmatprep.subr.bf16.mxu0 %v5992_v43  ;;  %3929 = vmatprep.subr.bf16.mxu1 %v5992_v43 }
 0x453   : > { %1509 = vmatpush1.bf16.msra.mxu0 %v6940_v26  ;;  %3939 = vmatpush1.bf16.msra.mxu1 %v6940_v26 }
 0x454   : > { %1510 = vmatprep.subr.bf16.mxu0 %v5992_v43  ;;  %3930 = vmatprep.subr.bf16.mxu1 %v5992_v43 }
 0x457   : > { %1511 = vmatpush1.bf16.msra.mxu0 %v6930_v29  ;;  %3940 = vmatpush1.bf16.msra.mxu1 %v6930_v29 }
 0x458   : > { %1512 = vmatprep.subr.bf16.mxu0 %v5992_v43  ;;  %3931 = vmatprep.subr.bf16.mxu1 %v5992_v43 }
 0x45b   : > { %1513 = vmatpush1.bf16.msra.mxu0 %v6920_v21  ;;  %3941 = vmatpush1.bf16.msra.mxu1 %v6920_v21 }
 0x45c   : > { %1526 = vmatprep.subr.bf16.mxu0 %v5992_v43  ;;  %3932 = vmatprep.subr.bf16.mxu1 %v5992_v43 }
 0x45f   : > { %1527 = vmatpush2.bf16.msra.mxu0 %v6987_v15  ;;  %3942 = vmatpush2.bf16.msra.mxu1 %v6987_v15 }
 0x460   : > { %1528 = vmatprep.subr.bf16.mxu0 %v5992_v43  ;;  %3933 = vmatprep.subr.bf16.mxu1 %v5992_v43 }
 0x463   : > { %1529 = vmatpush2.bf16.msra.mxu0 %v6984_v48  ;;  %3943 = vmatpush2.bf16.msra.mxu1 %v6984_v48 }
 0x464   : > { %3814 = vmatprep.subr.bf16.mxu1 %v5005_v63 }
 0x466   : > { %1531 = vmatmul.mubr.bf16.vlgmr.msra.gmra.mxu0 %v4975_v49  ;;  %1595 = vmatmul.mubr.bf16.vlgmr.msra.gmra.mxu1 %v4996_v7 }
 0x467   : > { %3539 = vmatprep.mubr.msk.bf16.mxu0 %vm227_vm0, %v4978_v44  ;;  %3547 = vmatprep.mubr.msk.bf16.mxu1 %vm227_vm0, %v5002_v12 }
 0x468   : > { %3815 = vmatpush3.bf16.msra.mxu1 %v5005_v63 }
 0x469   : > { %3816 = vmatprep.subr.bf16.mxu1 %v5006_v9 }
 0x46c   : > { %3817 = vmatpush3.bf16.msra.mxu1 %v5006_v9 }
 0x46e   : > { %1539 = vmatmul.mubr.bf16.gmra.mxu0 %v4980_v3  ;;  %1603 = vmatmul.mubr.bf16.gmra.mxu1 %v5004_v5 }
 0x46f   : > { %3540 = vmatprep.mubr.msk.bf16.mxu0 %vm227_vm0, %v4981_v14 }
 0x476   : > { %1547 = vmatmul.mubr.bf16.gmra.mxu0 %v4983_v40 }
 0x477   : > { %3541 = vmatprep.mubr.msk.bf16.mxu0 %vm227_vm0, %v4984_v51 }
 0x47e   : > { %1555 = vmatmul.mubr.bf16.gmra.mxu0 %v4986_v33 }
 0x47f   : > { %3542 = vmatprep.mubr.msk.bf16.mxu0 %vm227_vm0, %v4987_v39 }
 0x486   : > { %1563 = vmatmul.mubr.bf16.gmra.mxu0 %v4989_v28 }
 0x487   : > { %3543 = vmatprep.mubr.msk.bf16.mxu0 %vm227_vm0, %v4990_v31 }
 0x48e   : > { %1571 = vmatmul.mubr.bf16.gmra.mxu0 %v4992_v41 }
 0x48f   : > { %3544 = vmatprep.mubr.msk.bf16.mxu0 %vm227_vm0, %v4993_v27 }
 0x496   : > { %1579 = vmatmul.mubr.bf16.gmra.mxu0 %v4995_v20 }
 0x497   : > { %3545 = vmatprep.mubr.msk.bf16.mxu0 %vm227_vm0, %v4999_v42 }
 0x49e   : > { %1587 = vmatmul.mubr.bf16.gmra.mxu0 %v5001_v1 }
 0x526   : > { %v1532_v24 = vpop.f32.mrf.mxu0  ;;  %v1596_v19 = vpop.f32.mrf.mxu1 }
 0x528   : > { %v1534_v52 = vpop.f32.mrf.mxu0  ;;  %v1598_v37 = vpop.f32.mrf.mxu1 }
 0x52a   : > { %v1535_v62 = vpop.f32.mrf.mxu0  ;;  %v1599_v18 = vpop.f32.mrf.mxu1 }
 0x52b   : > { %v1611_v0 = vpack.c.bf16 %v1535_v62, %v1532_v24 }
 0x52c   : > { %v1537_v50 = vpop.f32.mrf.mxu0  ;;  %v1601_v38 = vpop.f32.mrf.mxu1 }
 0x52d   : > { %3818 = vmatprep.mubr.msk.bf16.mxu1 %vm227_vm0, %v1611_v0 }
 0x52e   : > { %v1540_v54 = vpop.f32.mrf.mxu0  ;;  %v1604_v4 = vpop.f32.mrf.mxu1 }
 0x530   : > { %v1542_v43 = vpop.f32.mrf.mxu0  ;;  %v1606_v22 = vpop.f32.mrf.mxu1 }
 0x532   : > { %v1543_v11 = vpop.f32.mrf.mxu0  ;;  %v1607_v49 = vpop.f32.mrf.mxu1 }
 0x533   : > { %v1612_v7 = vpack.c.bf16 %v1543_v11, %v1540_v54 }
 0x534   : > { %v1545_v44 = vpop.f32.mrf.mxu0  ;;  %v1609_v12 = vpop.f32.mrf.mxu1 }
 0x535   : > { %3819 = vmatmul.mubr.msk.bf16.vlgmr.msra.gmra.mxu1 %vm227_vm0, %v1612_v7  ;;  %v1619_v12 = vpack.c.bf16 %v1599_v18, %v1596_v19 }
 0x536   : > { %v1548_v3 = vpop.f32.mrf.mxu0 }
 0x538   : > { %v1550_v5 = vpop.f32.mrf.mxu0 }
 0x539   : > { %v1620_v5 = vpack.c.bf16 %v1607_v49, %v1604_v4 }
 0x53a   : > { %v1551_v14 = vpop.f32.mrf.mxu0 }
 0x53b   : > { %v1613_v40 = vpack.c.bf16 %v1551_v14, %v1548_v3 }
 0x53c   : > { %v1553_v51 = vpop.f32.mrf.mxu0 }
 0x53d   : > { %3822 = vmatprep.mubr.msk.bf16.mxu1 %vm227_vm0, %v1613_v40 }
 0x53e   : > { %v1556_v33 = vpop.f32.mrf.mxu0 }
 0x540   : > { %v1558_v39 = vpop.f32.mrf.mxu0 }
 0x542   : > { %v1559_v28 = vpop.f32.mrf.mxu0 }
 0x543   : > { %v1614_v31 = vpack.c.bf16 %v1559_v28, %v1556_v33 }
 0x544   : > { %v1561_v41 = vpop.f32.mrf.mxu0 }
 0x545   : > { %3823 = vmatmul.mubr.msk.bf16.gmra.mxu1 %vm227_vm0, %v1614_v31 }
 0x546   : > { %v1564_v27 = vpop.f32.mrf.mxu0 }
 0x548   : > { %v1566_v20 = vpop.f32.mrf.mxu0 }
 0x54a   : > { %v1567_v42 = vpop.f32.mrf.mxu0 }
 0x54b   : > { %v1615_v1 = vpack.c.bf16 %v1567_v42, %v1564_v27 }
 0x54c   : > { %v1569_v63 = vpop.f32.mrf.mxu0 }
 0x54d   : > { %3826 = vmatprep.mubr.msk.bf16.mxu1 %vm227_vm0, %v1615_v1 }
 0x54e   : > { %v1572_v9 = vpop.f32.mrf.mxu0 }
 0x550   : > { %v1574_v24 = vpop.f32.mrf.mxu0 }
 0x552   : > { %v1575_v52 = vpop.f32.mrf.mxu0 }
 0x553   : > { %v1616_v37 = vpack.c.bf16 %v1575_v52, %v1572_v9 }
 0x554   : > { %v1577_v62 = vpop.f32.mrf.mxu0 }
 0x555   : > { %3827 = vmatmul.mubr.msk.bf16.gmra.mxu1 %vm227_vm0, %v1616_v37 }
 0x556   : > { %v1580_v0 = vpop.f32.mrf.mxu0 }
 0x558   : > { %v1582_v50 = vpop.f32.mrf.mxu0 }
 0x55a   : > { %v1583_v38 = vpop.f32.mrf.mxu0 }
 0x55b   : > { %v1617_v54 = vpack.c.bf16 %v1583_v38, %v1580_v0 }
 0x55c   : > { %v1585_v43 = vpop.f32.mrf.mxu0 }
 0x55d   : > { %3830 = vmatprep.mubr.msk.bf16.mxu1 %vm227_vm0, %v1617_v54  ;;  %v7316_v43 = vld [vmem:[%s8191_s9] ss:$0 sm:$0xff] (%p7245_p2)  }
 0x55e   : > { %v1588_v22 = vpop.f32.mrf.mxu0 }
 0x560   : > { %v1590_v11 = vpop.f32.mrf.mxu0 }
 0x562   : > { %v1591_v7 = vpop.f32.mrf.mxu0 }
 0x563   : > { %v1618_v44 = vpack.c.bf16 %v1591_v7, %v1588_v22 }
 0x564   : > { %v1593_v3 = vpop.f32.mrf.mxu0 }
 0x565   : > { %3831 = vmatmul.mubr.msk.bf16.gmra.mxu1 %vm227_vm0, %v1618_v44 }
 0x566   : > { %3834 = vmatprep.mubr.msk.bf16.mxu1 %vm227_vm0, %v1619_v12 }
 0x56d   : > { %3835 = vmatmul.mubr.msk.bf16.gmra.mxu1 %vm227_vm0, %v1620_v5 }
 0x5f5   : > { %v3820_v14 = vpop.f32.mrf.mxu1 }
 0x5f6   : > { %v7185_v16 = vadd.f32 %v5808_v16, %v3820_v14  }
 0x5f7   : > { %v1697_v51 = vpop.f32.mrf.mxu1 }
 0x5f8   : > { %v8335_v40 = vmov %v7185_v16  ;;  %v7188_v35 = vadd.f32 %v5816_v35, %v1697_v51  }
 0x5f9   : > { %v3821_v39 = vpop.f32.mrf.mxu1  ;;  %v1818_v7 = vmin.f32 (%p7245_p2), %v8335_v40, 0.0  ;;  %vm1798_vm14 = vcmp.gt.f32.partialorder (%p7245_p2), %v8335_v40, 0.0 }
 0x5fa   : > { %v8336_v33 = vmov %v7188_v35  ;;  %v7191_v10 = vadd.f32 %v5804_v10, %v3821_v39  }
 0x5fb   : > { %v1700_v18 = vpop.f32.mrf.mxu1  ;;  %v1816_v22 = vmin.f32 (%p7245_p2), %v8336_v33, 0.0  ;;  %v1840_v29 = vmul.f32 (%p7245_p2), 1.442695, %v1818_v7  ;;  %vm1796_vm12 = vcmp.gt.f32.partialorder (%p7245_p2), %v8336_v33, 0.0 }
 0x5fc   : > { %v8337_v19 = vmov %v7191_v10  ;;  %v7194_v23 = vadd.f32 %v5812_v23, %v1700_v18  }
 0x5fd   :  { %v1819_v44 = vmin.f32 (%p7245_p2), %v8337_v19, 0.0  ;;  %v1836_v14 = vmul.f32 (%p7245_p2), 1.442695, %v1816_v22  ;;  %vm1799_vm15 = vcmp.gt.f32.partialorder (%p7245_p2), %v8337_v19, 0.0 }
 0x5fe   : > { %v8338_v28 = vmov %v7194_v23 }
 0x5ff   :  { %v1817_v11 = vmin.f32 (%p7245_p2), %v8338_v28, 0.0  ;;  %v1842_v55 = vmul.f32 (%p7245_p2), 1.442695, %v1819_v44  ;;  %5007 = vpow2.f32 (%p7245_p2), %v1836_v14  ;;  %vm1797_vm13 = vcmp.gt.f32.partialorder (%p7245_p2), %v8338_v28, 0.0 }
 0x601   :  { %v1838_v21 = vmul.f32 (%p7245_p2), 1.442695, %v1817_v11 }
 0x603   :  { %5009 = vpow2.f32 (%p7245_p2), %v1838_v21 }
 0x604   :  { %5011 = vpow2.f32 (%p7245_p2), %v1840_v29 }
 0x605   : > { %v3824_v31 = vpop.f32.mrf.mxu1  ;;  %5013 = vpow2.f32 (%p7245_p2), %v1842_v55 }
 0x606   : > { %v7197_v59 = vadd.f32 %v5792_v59, %v3824_v31  }
 0x607   : > { %v1713_v49 = vpop.f32.mrf.mxu1 }
 0x608   : > { %v8339_v4 = vmov %v7197_v59  ;;  %v7200_v17 = vadd.f32 %v5800_v17, %v1713_v49  }
 0x609   : > { %v3825_v16 = vpop.f32.mrf.mxu1  ;;  %v1822_v5 = vmin.f32 (%p7245_p2), %v8339_v4, 0.0  ;;  %vm1802_vm4 = vcmp.gt.f32.partialorder (%p7245_p2), %v8339_v4, 0.0 }
 0x60a   : > { %v8340_v41 = vmov %v7200_v17  ;;  %v7203_v56 = vadd.f32 %v5788_v56, %v3825_v16   ;;  %v8373_v16 = vmov %v8335_v40 }
 0x60b   : > { %v1716_v35 = vpop.f32.mrf.mxu1  ;;  %v1820_v12 = vmin.f32 (%p7245_p2), %v8340_v41, 0.0  ;;  %v1848_v15 = vmul.f32 (%p7245_p2), 1.442695, %v1822_v5  ;;  %vm1800_vm2 = vcmp.gt.f32.partialorder (%p7245_p2), %v8340_v41, 0.0 }
 0x60c   : > { %v8341_v27 = vmov %v7203_v56  ;;  %v7206_v6 = vadd.f32 %v5796_v6, %v1716_v35   ;;  %v8375_v35 = vmov %v8336_v33 }
 0x60d   :  { %v1823_v26 = vmin.f32 (%p7245_p2), %v8341_v27, 0.0  ;;  %v1844_v30 = vmul.f32 (%p7245_p2), 1.442695, %v1820_v12  ;;  %vm1803_vm5 = vcmp.gt.f32.partialorder (%p7245_p2), %v8341_v27, 0.0 }
 0x60e   : > { %v8342_v20 = vmov %v7206_v6 }
 0x60f   :  { %v1821_v3 = vmin.f32 (%p7245_p2), %v8342_v20, 0.0  ;;  %5015 = vpow2.f32 (%p7245_p2), %v1844_v30  ;;  %vm1801_vm3 = vcmp.gt.f32.partialorder (%p7245_p2), %v8342_v20, 0.0 }
 0x611   :  { %v1846_v2 = vmul.f32 (%p7245_p2), 1.442695, %v1821_v3 }
 0x613   :  { %5017 = vpow2.f32 (%p7245_p2), %v1846_v2 }
 0x614   :  { %5019 = vpow2.f32 (%p7245_p2), %v1848_v15 }
 0x615   : > { %v3828_v10 = vpop.f32.mrf.mxu1 }
 0x616   : > { %v7209_v45 = vadd.f32 %v5776_v45, %v3828_v10   ;;  %v8372_v10 = vmov %v8337_v19 }
 0x617   : > { %v1729_v23 = vpop.f32.mrf.mxu1 }
 0x618   : > { %v8343_v42 = vmov %v7209_v45  ;;  %v7212_v46 = vadd.f32 %v5784_v46, %v1729_v23   ;;  %v8374_v23 = vmov %v8338_v28 }
 0x619   : > { %v3829_v59 = vpop.f32.mrf.mxu1  ;;  %v1826_v48 = vmin.f32 (%p7245_p2), %v8343_v42, 0.0  ;;  %vm1806_vm1 = vcmp.gt.f32.partialorder (%p7245_p2), %v8343_v42, 0.0 }
 0x61a   : > { %v8344_v1 = vmov %v7212_v46  ;;  %v7215_v8 = vadd.f32 %v5772_v8, %v3829_v59   ;;  %v8369_v59 = vmov %v8339_v4 }
 0x61b   : > { %v1732_v17 = vpop.f32.mrf.mxu1  ;;  %v1824_v32 = vmin.f32 (%p7245_p2), %v8344_v1, 0.0  ;;  %v1856_v39 = vmul.f32 (%p7245_p2), 1.442695, %v1826_v48  ;;  %vm1804_vm6 = vcmp.gt.f32.partialorder (%p7245_p2), %v8344_v1, 0.0 }
 0x61c   : > { %v8345_v63 = vmov %v7215_v8  ;;  %v7218_v36 = vadd.f32 %v5780_v36, %v1732_v17   ;;  %v8371_v17 = vmov %v8340_v41 }
 0x61d   :  { %vm1807_vm8 = vcmp.gt.f32.partialorder (%p7245_p2), %v8345_v63, 0.0 }
 0x61e   : > { %v8346_v9 = vmov %v7218_v36 }
 0x61f   :  { %v1825_v25 = vmin.f32 (%p7245_p2), %v8346_v9, 0.0  ;;  %vm1805_vm7 = vcmp.gt.f32.partialorder (%p7245_p2), %v8346_v9, 0.0 }
 0x625   : > { %v3832_v56 = vpop.f32.mrf.mxu1 }
 0x626   : > { %v7221_v58 = vadd.f32 %v5760_v58, %v3832_v56   ;;  %v8368_v56 = vmov %v8341_v27 }
 0x627   : > { %v1745_v6 = vpop.f32.mrf.mxu1 }
 0x628   : > { %v8347_v24 = vmov %v7221_v58  ;;  %v7224_v47 = vadd.f32 %v5768_v47, %v1745_v6   ;;  %v8370_v6 = vmov %v8342_v20 }
 0x629   : > { %v3833_v45 = vpop.f32.mrf.mxu1  ;;  %v1830_v51 = vmin.f32 (%p7245_p2), %v8347_v24, 0.0  ;;  %vm1810_vm11 = vcmp.gt.f32.partialorder (%p7245_p2), %v8347_v24, 0.0 }
 0x62a   : > { %v8348_v52 = vmov %v7224_v47  ;;  %v7227_v57 = vadd.f32 %v5756_v57, %v3833_v45   ;;  %v8365_v45 = vmov %v8343_v42 }
 0x62b   : > { %v1748_v46 = vpop.f32.mrf.mxu1  ;;  %v1864_v59 = vmul.f32 (%p7245_p2), 1.442695, %v1830_v51  ;;  %v5008_v45 = vpop.eup (%p7245_p2), %5007  ;;  %vm1808_vm9 = vcmp.gt.f32.partialorder (%p7245_p2), %v8348_v52, 0.0 }
 0x62c   : > { %v8349_v37 = vmov %v7227_v57  ;;  %v7230_v34 = vadd.f32 %v5764_v34, %v1748_v46   ;;  %v8367_v46 = vmov %v8344_v1 }
 0x62d   : > { %v3836_v8 = vpop.f32.mrf.mxu1  ;;  %v8360_v57 = vmov %v8349_v37  ;;  %v1831_v18 = vmin.f32 (%p7245_p2), %v8349_v37, 0.0 }
 0x62e   : > { %v8350_v62 = vmov %v7230_v34  ;;  %v7233_v61 = vadd.f32 %v5744_v61, %v3836_v8   ;;  %v8364_v8 = vmov %v8345_v63 }
 0x62f   : > { %v1761_v36 = vpop.f32.mrf.mxu1  ;;  %v8362_v34 = vmov %v8350_v62  ;;  %v1829_v57 = vmin.f32 (%p7245_p2), %v8350_v62, 0.0  ;;  %v1866_v56 = vmul.f32 (%p7245_p2), 1.442695, %v1831_v18  ;;  %v5010_v8 = vpop.eup (%p7245_p2), %5009  ;;  %vm1809_vm10 = vcmp.gt.f32.partialorder (%p7245_p2), %v8350_v62, 0.0 }
 0x630   : > { %v8351_v0 = vmov %v7233_v61  ;;  %v7236_v60 = vadd.f32 %v5752_v60, %v1761_v36   ;;  %v8366_v36 = vmov %v8346_v9  ;;  %v1854_v34 = vmul.f32 (%p7245_p2), 1.442695, %v1825_v25 }
 0x631   : > { %v3837_v58 = vpop.f32.mrf.mxu1  ;;  %v8357_v61 = vmov %v8351_v0  ;;  %v1862_v10 = vmul.f32 (%p7245_p2), 1.442695, %v1829_v57  ;;  %v1834_v23 = vmin.f32 (%p7245_p2), %v8351_v0, 0.0  ;;  %v3561_v11 = vadd.f32 (%p7245_p2), -1.0, %v5010_v8 }
 0x632   : > { %v8352_v50 = vmov %v7236_v60  ;;  %v7239_v53 = vadd.f32 %v5740_v53, %v3837_v58   ;;  %v8361_v58 = vmov %v8347_v24  ;;  %v1850_v61 = vmul.f32 (%p7245_p2), 1.442695, %v1823_v26 }
 0x633   : > { %v1764_v47 = vpop.f32.mrf.mxu1  ;;  %v8359_v60 = vmov %v8352_v50  ;;  %1325 = sbr.rel (!%p7245_p2) target bundleno = 1085 (0x43d), region = 135  ;;  %v1832_v49 = vmin.f32 (%p7245_p2), %v8352_v50, 0.0  ;;  %v1872_v36 = vmul.f32 (%p7245_p2), 1.442695, %v1834_v23  ;;  %v3560_v58 = vadd.f32 (%p7245_p2), -1.0, %v5008_v45 }
 0x634   : > { %v8353_v38 = vmov %v7239_v53  ;;  %v7242_v13 = vadd.f32 %v5748_v13, %v1764_v47   ;;  %v8363_v47 = vmov %v8348_v52  ;;  %v1852_v60 = vmul.f32 (%p7245_p2), 1.442695, %v1824_v32 }
 0x635   : > { %v8356_v53 = vmov %v8353_v38  ;;  %5021 = vpow2.f32 (%p7245_p2), %v1850_v61  ;;  %v1835_v17 = vmin.f32 (%p7245_p2), %v8353_v38, 0.0  ;;  %v1868_v6 = vmul.f32 (%p7245_p2), 1.442695, %v1832_v49  ;;  %v5012_v47 = vpop.eup (%p7245_p2), %5011 }
 0x636   : > { %v8354_v54 = vmov %v7242_v13  ;;  %v1827_v53 = vmin.f32 (%p7245_p2), %v8345_v63, 0.0  ;;  %5023 = vpow2.f32 (%p7245_p2), %v1852_v60  ;;  %v5014_v7 = vpop.eup (%p7245_p2), %5013  ;;  %v3562_v44 = vadd.f32 (%p7245_p2), -1.0, %v5012_v47 }
 0x637   : > { %v8358_v13 = vmov %v8354_v54  ;;  %v1833_v35 = vmin.f32 (%p7245_p2), %v8354_v54, 0.0  ;;  %5025 = vpow2.f32 (%p7245_p2), %v1854_v34  ;;  %v1874_v22 = vmul.f32 (%p7245_p2), 1.442695, %v1835_v17  ;;  %v5016_v3 = vpop.eup (%p7245_p2), %5015 }
 0x638   :  { %v1828_v13 = vmin.f32 %v8348_v52, 0.0  ;;  %v1858_v31 = vmul.f32 1.442695, %v1827_v53  ;;  %5027 = vpow2.f32 %v1856_v39  ;;  %v1896_v12 = vsel %vm1796_vm12, %v8336_v33, %v3560_v58  ;;  %v5018_v21 = vpop.eup %5017 }
 0x639   :  { %v1870_v46 = vmul.f32 1.442695, %v1833_v35  ;;  %v3563_v5 = vadd.f32 -1.0, %v5014_v7  ;;  %v1897_v14 = vsel %vm1797_vm13, %v8338_v28, %v3561_v11  ;;  %v3564_v29 = vadd.f32 -1.0, %v5016_v3  ;;  %v5020_v32 = vpop.eup %5019 }
 0x63a   :  { %v1860_v16 = vmul.f32 1.442695, %v1828_v13  ;;  %5029 = vpow2.f32 %v1858_v31  ;;  %v1898_v26 = vsel %vm1798_vm14, %v8335_v40, %v3562_v44  ;;  %v7353_v55 = vpack.c.bf16 %v1897_v14, %v1896_v12 }
 0x63b   :  { %v3565_v33 = vadd.f32 -1.0, %v5018_v21  ;;  %v1899_v30 = vsel %vm1799_vm15, %v8337_v19, %v3563_v5  ;;  %v3566_v28 = vadd.f32 -1.0, %v5020_v32  ;;  %v1900_v2 = vsel %vm1800_vm2, %v8340_v41, %v3564_v29 }
 0x63c   :  { %5031 = vpow2.f32 %v1860_v16  ;;  %v7363_v40 = vpack.c.bf16 %v1899_v30, %v1898_v26  ;;  %vm1811_vm12 = vcmp.gt.f32.partialorder %v8349_v37, 0.0  ;;  %vm1812_vm13 = vcmp.gt.f32.partialorder %v8352_v50, 0.0 }
 0x63d   :  { %5033 = vpow2.f32 %v1862_v10  ;;  %v1901_v53 = vsel %vm1801_vm3, %v8342_v20, %v3565_v33  ;;  %v1902_v13 = vsel %vm1802_vm4, %v8339_v4, %v3566_v28  ;;  %vm1813_vm14 = vcmp.gt.f32.partialorder %v8354_v54, 0.0 }
 0x63e   :  { %5035 = vpow2.f32 %v1864_v59  ;;  %v7373_v60 = vpack.c.bf16 %v1901_v53, %v1900_v2  ;;  %vm1814_vm15 = vcmp.gt.f32.partialorder %v8351_v0, 0.0  ;;  %vm1815_vm2 = vcmp.gt.f32.partialorder %v8353_v38, 0.0 }
 0x63f   :  { %5037 = vpow2.f32 %v1866_v56  ;;  %v8377_v29 = vmov %v7316_v43  ;;  %v8382_v26 = vmov %v7316_v43  ;;  %v8383_v32 = vmov %v7316_v43 }
 0x640   :  { %5039 = vpow2.f32 %v1868_v6  ;;  %v8384_v33 = vmov %v7316_v43  ;;  %v8385_v30 = vmov %v7316_v43  ;;  %v8387_v28 = vmov %v7316_v43 }
 0x641   :  { %5041 = vpow2.f32 %v1870_v46  ;;  %v8388_v2 = vmov %v7316_v43  ;;  %v8391_v53 = vmov %v7316_v43 }
 0x642   :  { %5043 = vpow2.f32 %v1872_v36  ;;  %v5022_v25 = vpop.eup %5021 }
 0x643   :  { %5045 = vpow2.f32 %v1874_v22  ;;  %v5024_v48 = vpop.eup %5023  ;;  %v3567_v15 = vadd.f32 -1.0, %v5022_v25  ;;  %v8386_v25 = vmov %v7316_v43 }
 0x644   :  { %v5026_v61 = vpop.eup %5025  ;;  %v3568_v19 = vadd.f32 -1.0, %v5024_v48  ;;  %v8389_v48 = vmov %v7316_v43 }
 0x645   :  { %v5028_v41 = vpop.eup %5027  ;;  %v3569_v57 = vadd.f32 -1.0, %v5026_v61  ;;  %v1903_v34 = vsel %vm1803_vm5, %v8341_v27, %v3567_v15  ;;  %v8390_v15 = vmov %v7316_v43  ;;  %v8392_v61 = vmov %v7316_v43 }
 0x646   :  { %v3570_v20 = vadd.f32 -1.0, %v5028_v41  ;;  %v1904_v39 = vsel %vm1804_vm6, %v8344_v1, %v3568_v19  ;;  %v7381_v18 = vpack.c.bf16 %v1903_v34, %v1902_v13  ;;  %v8393_v19 = vmov %v7316_v43 }
 0x647   :  { %v5030_v51 = vpop.eup %5029  ;;  %v1905_v49 = vsel %vm1805_vm7, %v8346_v9, %v3569_v57  ;;  %v8394_v13 = vmov %v7316_v43 }
 0x648   :  { %v3571_v4 = vadd.f32 -1.0, %v5030_v51  ;;  %v1906_v35 = vsel %vm1806_vm1, %v8343_v42, %v3570_v20  ;;  %v7389_v10 = vpack.c.bf16 %v1905_v49, %v1904_v39 }
 0x649   :  { %v5032_v31 = vpop.eup %5031 }
 0x64a   :  { %v5034_v16 = vpop.eup %5033  ;;  %v3572_v27 = vadd.f32 -1.0, %v5032_v31  ;;  %v1907_v59 = vsel %vm1807_vm8, %v8345_v63, %v3571_v4 }
 0x64b   :  { %v5036_v23 = vpop.eup %5035  ;;  %v3573_v1 = vadd.f32 -1.0, %v5034_v16  ;;  %v7397_v6 = vpack.c.bf16 %v1907_v59, %v1906_v35 }
 0x64c   :  { %v5038_v17 = vpop.eup %5037  ;;  %v3574_v9 = vadd.f32 -1.0, %v5036_v23  ;;  %v1908_v56 = vsel %vm1808_vm9, %v8348_v52, %v3572_v27 }
 0x64d   :  { %v5040_v45 = vpop.eup %5039  ;;  %v3575_v42 = vadd.f32 -1.0, %v5038_v17  ;;  %v1909_v46 = vsel %vm1809_vm10, %v8350_v62, %v3573_v1 }
 0x64e   :  { %v5042_v8 = vpop.eup %5041  ;;  %v3576_v63 = vadd.f32 -1.0, %v5040_v45  ;;  %v1910_v36 = vsel %vm1810_vm11, %v8347_v24, %v3574_v9  ;;  %v7405_v58 = vpack.c.bf16 %v1909_v46, %v1908_v56 }
 0x64f   :  { %v5044_v47 = vpop.eup %5043  ;;  %v3577_v52 = vadd.f32 -1.0, %v5042_v8  ;;  %v1911_v22 = vsel %vm1811_vm12, %v8349_v37, %v3575_v42  ;;  %v8376_v37 = vmov %v7316_v43 }
 0x650   :  { %v5046_v11 = vpop.eup %5045  ;;  %v3578_v62 = vadd.f32 -1.0, %v5044_v47  ;;  %v1912_v7 = vsel %vm1812_vm13, %v8352_v50, %v3576_v63  ;;  %v7413_v44 = vpack.c.bf16 %v1911_v22, %v1910_v36  ;;  %v8378_v50 = vmov %v7316_v43 }
 0x651   :  { %v3579_v12 = vadd.f32 -1.0, %v5046_v11  ;;  %v1913_v24 = vsel %vm1813_vm14, %v8354_v54, %v3577_v52  ;;  %v8379_v54 = vmov %v7316_v43 }
 0x652   :  { %v1914_v3 = vsel %vm1814_vm15, %v8351_v0, %v3578_v62  ;;  %v7417_v5 = vpack.c.bf16 %v1913_v24, %v1912_v7  ;;  %v8380_v0 = vmov %v7316_v43 }
 0x653   :  { %v1915_v14 = vsel %vm1815_vm2, %v8353_v38, %v3579_v12  ;;  %v8381_v38 = vmov %v7316_v43 }
 0x654   :  { %v7420_v21 = vpack.c.bf16 %v1915_v14, %v1914_v3 }
 0x655 LB: > { %v5993_v41 = vmov 0   ;;  %s3697_s9 = smul.u32 160, %s5904_s6  ;;  %s3698_s20 = sshll.u32 %s5904_s6, 4  ;;  %s5904_s6 = sphi %s7482_s6, %s1938_s6   ;;  %v5900_v43 = vphi %v7316_v43, %v8435_v43   ;;  %v5896_v13 = vphi %v8394_v13, %v8434_v13   ;;  %v5892_v19 = vphi %v8393_v19, %v8433_v19   ;;  %v5888_v61 = vphi %v8392_v61, %v8432_v61   ;;  %v5884_v53 = vphi %v8391_v53, %v8431_v53   ;;  %v5880_v15 = vphi %v8390_v15, %v8430_v15   ;;  %v5876_v48 = vphi %v8389_v48, %v8429_v48   ;;  %v5872_v2 = vphi %v8388_v2, %v8428_v2   ;;  %v5868_v28 = vphi %v8387_v28, %v8427_v28   ;;  %v5864_v25 = vphi %v8386_v25, %v8426_v25   ;;  %v5860_v30 = vphi %v8385_v30, %v8425_v30   ;;  %v5856_v33 = vphi %v8384_v33, %v8424_v33   ;;  %v5852_v32 = vphi %v8383_v32, %v8423_v32   ;;  %v5848_v26 = vphi %v8382_v26, %v8422_v26   ;;  %v5844_v38 = vphi %v8381_v38, %v8421_v38   ;;  %v5840_v0 = vphi %v8380_v0, %v8420_v0   ;;  %v5836_v54 = vphi %v8379_v54, %v8419_v54   ;;  %v5832_v50 = vphi %v8378_v50, %v8418_v50   ;;  %v5828_v29 = vphi %v8377_v29, %v8417_v29   ;;  %v5824_v37 = vphi %v8376_v37, %v8416_v37  }
 0x656   : > { %2110 = vmatprep.subr.bf16.mxu0 %v5993_v41  ;;  %3944 = vmatprep.subr.bf16.mxu1 %v5993_v41  ;;  %s1984_s23 = scalar_lea.vmem %s8190_s8, %s3698_s20  ;;  %s1938_s6 = sadd.s32 1, %s5904_s6  }
 0x657   : > { %2111 = vmatpush1.bf16.msra.mxu0 %v7413_v44  ;;  %3954 = vmatpush1.bf16.msra.mxu1 %v7413_v44  ;;  %s7553_s19 = scalar_lea.vmem %s8184_s1, %s3697_s9  ;;  %v5077_v8 = vld [vmem:[%s1984_s23 + $0x8] sm:$0xff]   ;;  %v5078_v63 = vld [vmem:[%s1984_s23] sm:$0xff]   ;;  %p7678_p3 = scmp.ge.s32.totalorder %s1938_s6, 41  }
 0x658   : > { %2112 = vmatprep.subr.bf16.mxu0 %v5993_v41  ;;  %3945 = vmatprep.subr.bf16.mxu1 %v5993_v41  ;;  %v5049_v57 = vld [vmem:[%s7553_s19 + $0x4] ss:$8 sps:$4 sm:$0xff]   ;;  %v5047_v51 = vld [vmem:[%s7553_s19] ss:$8 sps:$4 sm:$0xff]   ;;  %v5050_v39 = vld [vmem:[%s7553_s19 + $0x14] ss:$8 sps:$4 sm:$0xff]  }
 0x659   : > { %3604 = vmatprep.mubr.msk.bf16.mxu0 %vm227_vm0, %v5049_v57  ;;  %v5070_v34 = vld [vmem:[%s7553_s19 + $0x84] ss:$8 sps:$4 sm:$0xff]   ;;  %v5068_v20 = vld [vmem:[%s7553_s19 + $0x80] ss:$8 sps:$4 sm:$0xff]   ;;  %v5074_v31 = vld [vmem:[%s7553_s19 + $0x94] ss:$8 sps:$4 sm:$0xff]  }
 0x65a   : > { %3612 = vmatprep.mubr.msk.bf16.mxu1 %vm227_vm0, %v5070_v34  ;;  %v5052_v4 = vld [vmem:[%s7553_s19 + $0x10] ss:$8 sps:$4 sm:$0xff]   ;;  %v5053_v16 = vld [vmem:[%s7553_s19 + $0x24] ss:$8 sps:$4 sm:$0xff]   ;;  %v5055_v27 = vld [vmem:[%s7553_s19 + $0x20] ss:$8 sps:$4 sm:$0xff]  }
 0x65b   : > { %2113 = vmatpush1.bf16.msra.mxu0 %v7405_v58  ;;  %3955 = vmatpush1.bf16.msra.mxu1 %v7405_v58  ;;  %v5076_v49 = vld [vmem:[%s7553_s19 + $0x90] ss:$8 sps:$4 sm:$0xff]   ;;  %v5056_v35 = vld [vmem:[%s7553_s19 + $0x34] ss:$8 sps:$4 sm:$0xff]   ;;  %v5059_v1 = vld [vmem:[%s7553_s19 + $0x44] ss:$8 sps:$4 sm:$0xff]  }
 0x65c   : > { %2114 = vmatprep.subr.bf16.mxu0 %v5993_v41  ;;  %3946 = vmatprep.subr.bf16.mxu1 %v5993_v41  ;;  %v5058_v23 = vld [vmem:[%s7553_s19 + $0x30] ss:$8 sps:$4 sm:$0xff]   ;;  %v5061_v59 = vld [vmem:[%s7553_s19 + $0x40] ss:$8 sps:$4 sm:$0xff]   ;;  %v5062_v17 = vld [vmem:[%s7553_s19 + $0x54] ss:$8 sps:$4 sm:$0xff]  }
 0x65d   : > { %v5064_v9 = vld [vmem:[%s7553_s19 + $0x50] ss:$8 sps:$4 sm:$0xff]   ;;  %v5065_v56 = vld [vmem:[%s7553_s19 + $0x64] ss:$8 sps:$4 sm:$0xff]   ;;  %v5067_v45 = vld [vmem:[%s7553_s19 + $0x60] ss:$8 sps:$4 sm:$0xff]  }
 0x65e   : > { %v5071_v42 = vld [vmem:[%s7553_s19 + $0x74] ss:$8 sps:$4 sm:$0xff]   ;;  %v5073_v46 = vld [vmem:[%s7553_s19 + $0x70] ss:$8 sps:$4 sm:$0xff]   ;;  %s7915_s8 = smov (%p7678_p3), 0  }
 0x65f   : > { %2115 = vmatpush1.bf16.msra.mxu0 %v7397_v6  ;;  %3956 = vmatpush1.bf16.msra.mxu1 %v7397_v6 }
 0x660   : > { %2116 = vmatprep.subr.bf16.mxu0 %v5993_v41  ;;  %3947 = vmatprep.subr.bf16.mxu1 %v5993_v41 }
 0x663   : > { %2117 = vmatpush1.bf16.msra.mxu0 %v7389_v10  ;;  %3957 = vmatpush1.bf16.msra.mxu1 %v7389_v10 }
 0x664   : > { %2118 = vmatprep.subr.bf16.mxu0 %v5993_v41  ;;  %3948 = vmatprep.subr.bf16.mxu1 %v5993_v41 }
 0x667   : > { %2119 = vmatpush1.bf16.msra.mxu0 %v7381_v18  ;;  %3958 = vmatpush1.bf16.msra.mxu1 %v7381_v18 }
 0x668   : > { %2120 = vmatprep.subr.bf16.mxu0 %v5993_v41  ;;  %3949 = vmatprep.subr.bf16.mxu1 %v5993_v41 }
 0x66b   : > { %2121 = vmatpush1.bf16.msra.mxu0 %v7373_v60  ;;  %3959 = vmatpush1.bf16.msra.mxu1 %v7373_v60 }
 0x66c   : > { %2122 = vmatprep.subr.bf16.mxu0 %v5993_v41  ;;  %3950 = vmatprep.subr.bf16.mxu1 %v5993_v41 }
 0x66f   : > { %2123 = vmatpush1.bf16.msra.mxu0 %v7363_v40  ;;  %3960 = vmatpush1.bf16.msra.mxu1 %v7363_v40 }
 0x670   : > { %2124 = vmatprep.subr.bf16.mxu0 %v5993_v41  ;;  %3951 = vmatprep.subr.bf16.mxu1 %v5993_v41 }
 0x673   : > { %2125 = vmatpush1.bf16.msra.mxu0 %v7353_v55  ;;  %3961 = vmatpush1.bf16.msra.mxu1 %v7353_v55 }
 0x674   : > { %2138 = vmatprep.subr.bf16.mxu0 %v5993_v41  ;;  %3952 = vmatprep.subr.bf16.mxu1 %v5993_v41 }
 0x677   : > { %2139 = vmatpush2.bf16.msra.mxu0 %v7420_v21  ;;  %3962 = vmatpush2.bf16.msra.mxu1 %v7420_v21 }
 0x678   : > { %2140 = vmatprep.subr.bf16.mxu0 %v5993_v41  ;;  %3953 = vmatprep.subr.bf16.mxu1 %v5993_v41 }
 0x67b   : > { %2141 = vmatpush2.bf16.msra.mxu0 %v7417_v5  ;;  %3963 = vmatpush2.bf16.msra.mxu1 %v7417_v5 }
 0x67c   : > { %3838 = vmatprep.subr.bf16.mxu1 %v5077_v8 }
 0x67e   : > { %2143 = vmatmul.mubr.bf16.vlgmr.msra.gmra.mxu0 %v5047_v51  ;;  %2207 = vmatmul.mubr.bf16.vlgmr.msra.gmra.mxu1 %v5068_v20 }
 0x67f   : > { %3605 = vmatprep.mubr.msk.bf16.mxu0 %vm227_vm0, %v5050_v39  ;;  %3613 = vmatprep.mubr.msk.bf16.mxu1 %vm227_vm0, %v5074_v31 }
 0x680   : > { %3839 = vmatpush3.bf16.msra.mxu1 %v5077_v8 }
 0x681   : > { %3840 = vmatprep.subr.bf16.mxu1 %v5078_v63 }
 0x684   : > { %3841 = vmatpush3.bf16.msra.mxu1 %v5078_v63 }
 0x686   : > { %2151 = vmatmul.mubr.bf16.gmra.mxu0 %v5052_v4  ;;  %2215 = vmatmul.mubr.bf16.gmra.mxu1 %v5076_v49 }
 0x687   : > { %3606 = vmatprep.mubr.msk.bf16.mxu0 %vm227_vm0, %v5053_v16 }
 0x68e   : > { %2159 = vmatmul.mubr.bf16.gmra.mxu0 %v5055_v27 }
 0x68f   : > { %3607 = vmatprep.mubr.msk.bf16.mxu0 %vm227_vm0, %v5056_v35 }
 0x696   : > { %2167 = vmatmul.mubr.bf16.gmra.mxu0 %v5058_v23 }
 0x697   : > { %3608 = vmatprep.mubr.msk.bf16.mxu0 %vm227_vm0, %v5059_v1 }
 0x69e   : > { %2175 = vmatmul.mubr.bf16.gmra.mxu0 %v5061_v59 }
 0x69f   : > { %3609 = vmatprep.mubr.msk.bf16.mxu0 %vm227_vm0, %v5062_v17 }
 0x6a6   : > { %2183 = vmatmul.mubr.bf16.gmra.mxu0 %v5064_v9 }
 0x6a7   : > { %3610 = vmatprep.mubr.msk.bf16.mxu0 %vm227_vm0, %v5065_v56 }
 0x6ae   : > { %2191 = vmatmul.mubr.bf16.gmra.mxu0 %v5067_v45 }
 0x6af   : > { %3611 = vmatprep.mubr.msk.bf16.mxu0 %vm227_vm0, %v5071_v42 }
 0x6b6   : > { %2199 = vmatmul.mubr.bf16.gmra.mxu0 %v5073_v46 }
 0x73e   : > { %v2144_v36 = vpop.f32.mrf.mxu0  ;;  %v2208_v47 = vpop.f32.mrf.mxu1 }
 0x740   : > { %v2146_v52 = vpop.f32.mrf.mxu0  ;;  %v2210_v22 = vpop.f32.mrf.mxu1 }
 0x742   : > { %v2147_v11 = vpop.f32.mrf.mxu0  ;;  %v2211_v62 = vpop.f32.mrf.mxu1 }
 0x743   : > { %v2223_v7 = vpack.c.bf16 %v2147_v11, %v2144_v36 }
 0x744   : > { %v2149_v12 = vpop.f32.mrf.mxu0  ;;  %v2213_v24 = vpop.f32.mrf.mxu1 }
 0x745   : > { %3842 = vmatprep.mubr.msk.bf16.mxu1 %vm227_vm0, %v2223_v7 }
 0x746   : > { %v2152_v3 = vpop.f32.mrf.mxu0  ;;  %v2216_v14 = vpop.f32.mrf.mxu1 }
 0x748   : > { %v2154_v41 = vpop.f32.mrf.mxu0  ;;  %v2218_v57 = vpop.f32.mrf.mxu1 }
 0x74a   : > { %v2155_v34 = vpop.f32.mrf.mxu0  ;;  %v2219_v51 = vpop.f32.mrf.mxu1 }
 0x74b   : > { %v2224_v20 = vpack.c.bf16 %v2155_v34, %v2152_v3 }
 0x74c   : > { %v2157_v39 = vpop.f32.mrf.mxu0  ;;  %v2221_v31 = vpop.f32.mrf.mxu1 }
 0x74d   : > { %3843 = vmatmul.mubr.msk.bf16.vlgmr.msra.gmra.mxu1 %vm227_vm0, %v2224_v20  ;;  %v2231_v31 = vpack.c.bf16 %v2211_v62, %v2208_v47 }
 0x74e   : > { %v2160_v4 = vpop.f32.mrf.mxu0 }
 0x750   : > { %v2162_v49 = vpop.f32.mrf.mxu0 }
 0x751   : > { %v2232_v49 = vpack.c.bf16 %v2219_v51, %v2216_v14 }
 0x752   : > { %v2163_v16 = vpop.f32.mrf.mxu0 }
 0x753   : > { %v2225_v27 = vpack.c.bf16 %v2163_v16, %v2160_v4 }
 0x754   : > { %v2165_v35 = vpop.f32.mrf.mxu0 }
 0x755   : > { %3846 = vmatprep.mubr.msk.bf16.mxu1 %vm227_vm0, %v2225_v27 }
 0x756   : > { %v2168_v23 = vpop.f32.mrf.mxu0 }
 0x758   : > { %v2170_v1 = vpop.f32.mrf.mxu0 }
 0x75a   : > { %v2171_v59 = vpop.f32.mrf.mxu0 }
 0x75b   : > { %v2226_v17 = vpack.c.bf16 %v2171_v59, %v2168_v23 }
 0x75c   : > { %v2173_v9 = vpop.f32.mrf.mxu0 }
 0x75d   : > { %3847 = vmatmul.mubr.msk.bf16.gmra.mxu1 %vm227_vm0, %v2226_v17 }
 0x75e   : > { %v2176_v56 = vpop.f32.mrf.mxu0 }
 0x760   : > { %v2178_v45 = vpop.f32.mrf.mxu0 }
 0x762   : > { %v2179_v42 = vpop.f32.mrf.mxu0 }
 0x763   : > { %v2227_v46 = vpack.c.bf16 %v2179_v42, %v2176_v56 }
 0x764   : > { %v2181_v8 = vpop.f32.mrf.mxu0 }
 0x765   : > { %3850 = vmatprep.mubr.msk.bf16.mxu1 %vm227_vm0, %v2227_v46 }
 0x766   : > { %v2184_v63 = vpop.f32.mrf.mxu0 }
 0x768   : > { %v2186_v36 = vpop.f32.mrf.mxu0 }
 0x76a   : > { %v2187_v52 = vpop.f32.mrf.mxu0 }
 0x76b   : > { %v2228_v22 = vpack.c.bf16 %v2187_v52, %v2184_v63 }
 0x76c   : > { %v2189_v11 = vpop.f32.mrf.mxu0 }
 0x76d   : > { %3851 = vmatmul.mubr.msk.bf16.gmra.mxu1 %vm227_vm0, %v2228_v22 }
 0x76e   : > { %v2192_v7 = vpop.f32.mrf.mxu0 }
 0x770   : > { %v2194_v12 = vpop.f32.mrf.mxu0 }
 0x772   : > { %v2195_v24 = vpop.f32.mrf.mxu0 }
 0x773   : > { %v2229_v3 = vpack.c.bf16 %v2195_v24, %v2192_v7 }
 0x774   : > { %v2197_v41 = vpop.f32.mrf.mxu0 }
 0x775   : > { %3854 = vmatprep.mubr.msk.bf16.mxu1 %vm227_vm0, %v2229_v3  ;;  %v7749_v41 = vld [vmem:[%s8193_s11] ss:$0 sm:$0xff] (%p7678_p3)  }
 0x776   : > { %v2200_v57 = vpop.f32.mrf.mxu0 }
 0x778   : > { %v2202_v34 = vpop.f32.mrf.mxu0 }
 0x77a   : > { %v2203_v20 = vpop.f32.mrf.mxu0 }
 0x77b   : > { %v2230_v39 = vpack.c.bf16 %v2203_v20, %v2200_v57 }
 0x77c   : > { %v2205_v4 = vpop.f32.mrf.mxu0 }
 0x77d   : > { %3855 = vmatmul.mubr.msk.bf16.gmra.mxu1 %vm227_vm0, %v2230_v39 }
 0x77e   : > { %3858 = vmatprep.mubr.msk.bf16.mxu1 %vm227_vm0, %v2231_v31 }
 0x785   : > { %3859 = vmatmul.mubr.msk.bf16.gmra.mxu1 %vm227_vm0, %v2232_v49 }
 0x80d   : > { %v3844_v16 = vpop.f32.mrf.mxu1 }
 0x80e   : > { %v7618_v19 = vadd.f32 %v5892_v19, %v3844_v16  }
 0x80f   : > { %v2309_v35 = vpop.f32.mrf.mxu1 }
 0x810   : > { %v8395_v27 = vmov %v7618_v19  ;;  %v7621_v43 = vadd.f32 %v5900_v43, %v2309_v35  }
 0x811   : > { %v3845_v1 = vpop.f32.mrf.mxu1  ;;  %v2430_v20 = vmin.f32 (%p7678_p3), %v8395_v27, 0.0  ;;  %vm2410_vm5 = vcmp.gt.f32.partialorder (%p7678_p3), %v8395_v27, 0.0 }
 0x812   : > { %v8396_v23 = vmov %v7621_v43  ;;  %v7624_v61 = vadd.f32 %v5888_v61, %v3845_v1  }
 0x813   : > { %v2312_v62 = vpop.f32.mrf.mxu1  ;;  %v2428_v57 = vmin.f32 (%p7678_p3), %v8396_v23, 0.0  ;;  %v2452_v40 = vmul.f32 (%p7678_p3), 1.442695, %v2430_v20  ;;  %vm2408_vm3 = vcmp.gt.f32.partialorder (%p7678_p3), %v8396_v23, 0.0 }
 0x814   : > { %v8397_v47 = vmov %v7624_v61  ;;  %v7627_v13 = vadd.f32 %v5896_v13, %v2312_v62  }
 0x815   :  { %v2431_v39 = vmin.f32 (%p7678_p3), %v8397_v47, 0.0  ;;  %v2448_v16 = vmul.f32 (%p7678_p3), 1.442695, %v2428_v57  ;;  %vm2411_vm6 = vcmp.gt.f32.partialorder (%p7678_p3), %v8397_v47, 0.0 }
 0x816   : > { %v8398_v59 = vmov %v7627_v13 }
 0x817   :  { %v2429_v34 = vmin.f32 (%p7678_p3), %v8398_v59, 0.0  ;;  %v2454_v18 = vmul.f32 (%p7678_p3), 1.442695, %v2431_v39  ;;  %5079 = vpow2.f32 (%p7678_p3), %v2448_v16  ;;  %vm2409_vm4 = vcmp.gt.f32.partialorder (%p7678_p3), %v8398_v59, 0.0 }
 0x819   :  { %v2450_v55 = vmul.f32 (%p7678_p3), 1.442695, %v2429_v34 }
 0x81b   :  { %5081 = vpow2.f32 (%p7678_p3), %v2450_v55 }
 0x81c   :  { %5083 = vpow2.f32 (%p7678_p3), %v2452_v40 }
 0x81d   : > { %v3848_v17 = vpop.f32.mrf.mxu1  ;;  %5085 = vpow2.f32 (%p7678_p3), %v2454_v18 }
 0x81e   : > { %v7630_v48 = vadd.f32 %v5876_v48, %v3848_v17  }
 0x81f   : > { %v2325_v51 = vpop.f32.mrf.mxu1 }
 0x820   : > { %v8399_v14 = vmov %v7630_v48  ;;  %v7633_v53 = vadd.f32 %v5884_v53, %v2325_v51  }
 0x821   : > { %v3849_v19 = vpop.f32.mrf.mxu1  ;;  %v2434_v49 = vmin.f32 (%p7678_p3), %v8399_v14, 0.0  ;;  %vm2414_vm8 = vcmp.gt.f32.partialorder (%p7678_p3), %v8399_v14, 0.0 }
 0x822   : > { %v8400_v9 = vmov %v7633_v53  ;;  %v7636_v2 = vadd.f32 %v5872_v2, %v3849_v19   ;;  %v8433_v19 = vmov %v8395_v27 }
 0x823   : > { %v2328_v43 = vpop.f32.mrf.mxu1  ;;  %v2432_v31 = vmin.f32 (%p7678_p3), %v8400_v9, 0.0  ;;  %v2460_v21 = vmul.f32 (%p7678_p3), 1.442695, %v2434_v49  ;;  %vm2412_vm7 = vcmp.gt.f32.partialorder (%p7678_p3), %v8400_v9, 0.0 }
 0x824   : > { %v8401_v56 = vmov %v7636_v2  ;;  %v7639_v15 = vadd.f32 %v5880_v15, %v2328_v43   ;;  %v8435_v43 = vmov %v8396_v23 }
 0x825   :  { %v2435_v60 = vmin.f32 (%p7678_p3), %v8401_v56, 0.0  ;;  %v2456_v6 = vmul.f32 (%p7678_p3), 1.442695, %v2432_v31  ;;  %vm2415_vm9 = vcmp.gt.f32.partialorder (%p7678_p3), %v8401_v56, 0.0 }
 0x826   : > { %v8402_v45 = vmov %v7639_v15 }
 0x827   :  { %v2433_v4 = vmin.f32 (%p7678_p3), %v8402_v45, 0.0  ;;  %5087 = vpow2.f32 (%p7678_p3), %v2456_v6  ;;  %vm2413_vm1 = vcmp.gt.f32.partialorder (%p7678_p3), %v8402_v45, 0.0 }
 0x829   :  { %v2458_v44 = vmul.f32 (%p7678_p3), 1.442695, %v2433_v4 }
 0x82b   :  { %5089 = vpow2.f32 (%p7678_p3), %v2458_v44 }
 0x82c   :  { %5091 = vpow2.f32 (%p7678_p3), %v2460_v21 }
 0x82d   : > { %v3852_v61 = vpop.f32.mrf.mxu1 }
 0x82e   : > { %v7642_v30 = vadd.f32 %v5860_v30, %v3852_v61   ;;  %v8432_v61 = vmov %v8397_v47 }
 0x82f   : > { %v2341_v13 = vpop.f32.mrf.mxu1 }
 0x830   : > { %v8403_v42 = vmov %v7642_v30  ;;  %v7645_v28 = vadd.f32 %v5868_v28, %v2341_v13   ;;  %v8434_v13 = vmov %v8398_v59 }
 0x831   : > { %v3853_v48 = vpop.f32.mrf.mxu1  ;;  %v2438_v5 = vmin.f32 (%p7678_p3), %v8403_v42, 0.0  ;;  %vm2418_vm12 = vcmp.gt.f32.partialorder (%p7678_p3), %v8403_v42, 0.0 }
 0x832   : > { %v8404_v46 = vmov %v7645_v28  ;;  %v7648_v33 = vadd.f32 %v5856_v33, %v3853_v48   ;;  %v8429_v48 = vmov %v8399_v14 }
 0x833   : > { %v2344_v53 = vpop.f32.mrf.mxu1  ;;  %v2436_v10 = vmin.f32 (%p7678_p3), %v8404_v46, 0.0  ;;  %v2468_v1 = vmul.f32 (%p7678_p3), 1.442695, %v2438_v5  ;;  %vm2416_vm10 = vcmp.gt.f32.partialorder (%p7678_p3), %v8404_v46, 0.0 }
 0x834   : > { %v8405_v8 = vmov %v7648_v33  ;;  %v7651_v25 = vadd.f32 %v5864_v25, %v2344_v53   ;;  %v8431_v53 = vmov %v8400_v9 }
 0x835   :  { %vm2419_vm13 = vcmp.gt.f32.partialorder (%p7678_p3), %v8405_v8, 0.0 }
 0x836   : > { %v8406_v63 = vmov %v7651_v25 }
 0x837   :  { %v2437_v58 = vmin.f32 (%p7678_p3), %v8406_v63, 0.0  ;;  %vm2417_vm11 = vcmp.gt.f32.partialorder (%p7678_p3), %v8406_v63, 0.0 }
 0x83d   : > { %v3856_v2 = vpop.f32.mrf.mxu1 }
 0x83e   : > { %v7654_v38 = vadd.f32 %v5844_v38, %v3856_v2   ;;  %v8428_v2 = vmov %v8401_v56 }
 0x83f   : > { %v2357_v15 = vpop.f32.mrf.mxu1 }
 0x840   : > { %v8407_v36 = vmov %v7654_v38  ;;  %v7657_v32 = vadd.f32 %v5852_v32, %v2357_v15   ;;  %v8430_v15 = vmov %v8402_v45 }
 0x841   : > { %v3857_v30 = vpop.f32.mrf.mxu1  ;;  %v2442_v35 = vmin.f32 (%p7678_p3), %v8407_v36, 0.0  ;;  %vm2422_vm2 = vcmp.gt.f32.partialorder (%p7678_p3), %v8407_v36, 0.0 }
 0x842   : > { %v8408_v52 = vmov %v7657_v32  ;;  %v7660_v0 = vadd.f32 %v5840_v0, %v3857_v30   ;;  %v8425_v30 = vmov %v8403_v42 }
 0x843   : > { %v2360_v28 = vpop.f32.mrf.mxu1  ;;  %v2476_v48 = vmul.f32 (%p7678_p3), 1.442695, %v2442_v35  ;;  %v5080_v30 = vpop.eup (%p7678_p3), %5079  ;;  %vm2420_vm14 = vcmp.gt.f32.partialorder (%p7678_p3), %v8408_v52, 0.0 }
 0x844   : > { %v8409_v22 = vmov %v7660_v0  ;;  %v7663_v26 = vadd.f32 %v5848_v26, %v2360_v28   ;;  %v8427_v28 = vmov %v8404_v46 }
 0x845   : > { %v3860_v33 = vpop.f32.mrf.mxu1  ;;  %v8420_v0 = vmov %v8409_v22  ;;  %v2443_v62 = vmin.f32 (%p7678_p3), %v8409_v22, 0.0 }
 0x846   : > { %v8410_v11 = vmov %v7663_v26  ;;  %v7666_v29 = vadd.f32 %v5828_v29, %v3860_v33   ;;  %v8424_v33 = vmov %v8405_v8 }
 0x847   : > { %v2373_v25 = vpop.f32.mrf.mxu1  ;;  %v8422_v26 = vmov %v8410_v11  ;;  %v2441_v0 = vmin.f32 (%p7678_p3), %v8410_v11, 0.0  ;;  %v2478_v2 = vmul.f32 (%p7678_p3), 1.442695, %v2443_v62  ;;  %v5082_v33 = vpop.eup (%p7678_p3), %5081  ;;  %vm2421_vm15 = vcmp.gt.f32.partialorder (%p7678_p3), %v8410_v11, 0.0 }
 0x848   : > { %v8411_v7 = vmov %v7666_v29  ;;  %v7669_v54 = vadd.f32 %v5836_v54, %v2373_v25   ;;  %v8426_v25 = vmov %v8406_v63  ;;  %v2466_v26 = vmul.f32 (%p7678_p3), 1.442695, %v2437_v58 }
 0x849   : > { %v3861_v38 = vpop.f32.mrf.mxu1  ;;  %v8417_v29 = vmov %v8411_v7  ;;  %v2474_v61 = vmul.f32 (%p7678_p3), 1.442695, %v2441_v0  ;;  %v2446_v13 = vmin.f32 (%p7678_p3), %v8411_v7, 0.0  ;;  %v3627_v34 = vadd.f32 (%p7678_p3), -1.0, %v5082_v33 }
 0x84a   : > { %v8412_v12 = vmov %v7669_v54  ;;  %v7672_v37 = vadd.f32 %v5824_v37, %v3861_v38   ;;  %v8421_v38 = vmov %v8407_v36  ;;  %v2462_v29 = vmul.f32 (%p7678_p3), 1.442695, %v2435_v60 }
 0x84b   : > { %v2376_v32 = vpop.f32.mrf.mxu1  ;;  %v8419_v54 = vmov %v8412_v12  ;;  %1937 = sbr.rel (!%p7678_p3) target bundleno = 1621 (0x655), region = 146  ;;  %v2444_v51 = vmin.f32 (%p7678_p3), %v8412_v12, 0.0  ;;  %v2484_v25 = vmul.f32 (%p7678_p3), 1.442695, %v2446_v13  ;;  %v3626_v38 = vadd.f32 (%p7678_p3), -1.0, %v5080_v30 }
 0x84c   : > { %v8413_v24 = vmov %v7672_v37  ;;  %v7675_v50 = vadd.f32 %v5832_v50, %v2376_v32   ;;  %v8423_v32 = vmov %v8408_v52  ;;  %v2464_v54 = vmul.f32 (%p7678_p3), 1.442695, %v2436_v10 }
 0x84d   : > { %v8416_v37 = vmov %v8413_v24  ;;  %5093 = vpow2.f32 (%p7678_p3), %v2462_v29  ;;  %v2447_v53 = vmin.f32 (%p7678_p3), %v8413_v24, 0.0  ;;  %v2480_v15 = vmul.f32 (%p7678_p3), 1.442695, %v2444_v51  ;;  %v5084_v32 = vpop.eup (%p7678_p3), %5083 }
 0x84e   : > { %v8414_v3 = vmov %v7675_v50  ;;  %v2439_v37 = vmin.f32 (%p7678_p3), %v8405_v8, 0.0  ;;  %5095 = vpow2.f32 (%p7678_p3), %v2464_v54  ;;  %v5086_v20 = vpop.eup (%p7678_p3), %5085  ;;  %v3628_v39 = vadd.f32 (%p7678_p3), -1.0, %v5084_v32 }
 0x84f   : > { %v8418_v50 = vmov %v8414_v3  ;;  %v2445_v43 = vmin.f32 (%p7678_p3), %v8414_v3, 0.0  ;;  %5097 = vpow2.f32 (%p7678_p3), %v2466_v26  ;;  %v2486_v57 = vmul.f32 (%p7678_p3), 1.442695, %v2447_v53  ;;  %v5088_v4 = vpop.eup (%p7678_p3), %5087 }
 0x850   :  { %v2440_v50 = vmin.f32 %v8408_v52, 0.0  ;;  %v2470_v17 = vmul.f32 1.442695, %v2439_v37  ;;  %5099 = vpow2.f32 %v2468_v1  ;;  %v2508_v31 = vsel %vm2408_vm3, %v8396_v23, %v3626_v38  ;;  %v5090_v55 = vpop.eup %5089 }
 0x851   :  { %v2482_v28 = vmul.f32 1.442695, %v2445_v43  ;;  %v3629_v49 = vadd.f32 -1.0, %v5086_v20  ;;  %v2509_v16 = vsel %vm2409_vm4, %v8398_v59, %v3627_v34  ;;  %v3630_v40 = vadd.f32 -1.0, %v5088_v4  ;;  %v5092_v10 = vpop.eup %5091 }
 0x852   :  { %v2472_v19 = vmul.f32 1.442695, %v2440_v50  ;;  %5101 = vpow2.f32 %v2470_v17  ;;  %v2510_v60 = vsel %vm2410_vm5, %v8395_v27, %v3628_v39  ;;  %v7786_v18 = vpack.c.bf16 %v2509_v16, %v2508_v31 }
 0x853   :  { %v3631_v23 = vadd.f32 -1.0, %v5090_v55  ;;  %v2511_v6 = vsel %vm2411_vm6, %v8397_v47, %v3629_v49  ;;  %v3632_v59 = vadd.f32 -1.0, %v5092_v10  ;;  %v2512_v44 = vsel %vm2412_vm7, %v8400_v9, %v3630_v40 }
 0x854   :  { %5103 = vpow2.f32 %v2472_v19  ;;  %v7796_v27 = vpack.c.bf16 %v2511_v6, %v2510_v60  ;;  %vm2423_vm3 = vcmp.gt.f32.partialorder %v8409_v22, 0.0  ;;  %vm2424_vm4 = vcmp.gt.f32.partialorder %v8412_v12, 0.0 }
 0x855   :  { %5105 = vpow2.f32 %v2474_v61  ;;  %v2513_v37 = vsel %vm2413_vm1, %v8402_v45, %v3631_v23  ;;  %v2514_v50 = vsel %vm2414_vm8, %v8399_v14, %v3632_v59  ;;  %vm2425_vm5 = vcmp.gt.f32.partialorder %v8414_v3, 0.0 }
 0x856   :  { %5107 = vpow2.f32 %v2476_v48  ;;  %v7806_v54 = vpack.c.bf16 %v2513_v37, %v2512_v44  ;;  %vm2426_vm6 = vcmp.gt.f32.partialorder %v8411_v7, 0.0  ;;  %vm2427_vm7 = vcmp.gt.f32.partialorder %v8413_v24, 0.0 }
 0x857   :  { %5109 = vpow2.f32 %v2478_v2  ;;  %v8437_v40 = vmov %v7749_v41  ;;  %v8442_v60 = vmov %v7749_v41  ;;  %v8443_v10 = vmov %v7749_v41 }
 0x858   :  { %5111 = vpow2.f32 %v2480_v15  ;;  %v8444_v23 = vmov %v7749_v41  ;;  %v8445_v6 = vmov %v7749_v41  ;;  %v8447_v59 = vmov %v7749_v41 }
 0x859   :  { %5113 = vpow2.f32 %v2482_v28  ;;  %v8448_v44 = vmov %v7749_v41  ;;  %v8451_v37 = vmov %v7749_v41 }
 0x85a   :  { %5115 = vpow2.f32 %v2484_v25  ;;  %v5094_v58 = vpop.eup %5093 }
 0x85b   :  { %5117 = vpow2.f32 %v2486_v57  ;;  %v5096_v5 = vpop.eup %5095  ;;  %v3633_v21 = vadd.f32 -1.0, %v5094_v58  ;;  %v8446_v58 = vmov %v7749_v41 }
 0x85c   :  { %v5098_v29 = vpop.eup %5097  ;;  %v3634_v47 = vadd.f32 -1.0, %v5096_v5  ;;  %v8449_v5 = vmov %v7749_v41 }
 0x85d   :  { %v5100_v9 = vpop.eup %5099  ;;  %v3635_v0 = vadd.f32 -1.0, %v5098_v29  ;;  %v2515_v26 = vsel %vm2415_vm9, %v8401_v56, %v3633_v21  ;;  %v8450_v21 = vmov %v7749_v41  ;;  %v8452_v29 = vmov %v7749_v41 }
 0x85e   :  { %v3636_v45 = vadd.f32 -1.0, %v5100_v9  ;;  %v2516_v1 = vsel %vm2416_vm10, %v8404_v46, %v3634_v47  ;;  %v7814_v62 = vpack.c.bf16 %v2515_v26, %v2514_v50  ;;  %v8453_v47 = vmov %v7749_v41 }
 0x85f   :  { %v5102_v35 = vpop.eup %5101  ;;  %v2517_v51 = vsel %vm2417_vm11, %v8406_v63, %v3635_v0  ;;  %v8454_v50 = vmov %v7749_v41 }
 0x860   :  { %v3637_v14 = vadd.f32 -1.0, %v5102_v35  ;;  %v2518_v43 = vsel %vm2418_vm12, %v8403_v42, %v3636_v45  ;;  %v7822_v61 = vpack.c.bf16 %v2517_v51, %v2516_v1 }
 0x861   :  { %v5104_v17 = vpop.eup %5103 }
 0x862   :  { %v5106_v19 = vpop.eup %5105  ;;  %v3638_v56 = vadd.f32 -1.0, %v5104_v17  ;;  %v2519_v48 = vsel %vm2419_vm13, %v8405_v8, %v3637_v14 }
 0x863   :  { %v5108_v13 = vpop.eup %5107  ;;  %v3639_v46 = vadd.f32 -1.0, %v5106_v19  ;;  %v7830_v15 = vpack.c.bf16 %v2519_v48, %v2518_v43 }
 0x864   :  { %v5110_v53 = vpop.eup %5109  ;;  %v3640_v63 = vadd.f32 -1.0, %v5108_v13  ;;  %v2520_v2 = vsel %vm2420_vm14, %v8408_v52, %v3638_v56 }
 0x865   :  { %v5112_v30 = vpop.eup %5111  ;;  %v3641_v42 = vadd.f32 -1.0, %v5110_v53  ;;  %v2521_v28 = vsel %vm2421_vm15, %v8410_v11, %v3639_v46 }
 0x866   :  { %v5114_v33 = vpop.eup %5113  ;;  %v3642_v8 = vadd.f32 -1.0, %v5112_v30  ;;  %v2522_v25 = vsel %vm2422_vm2, %v8407_v36, %v3640_v63  ;;  %v7838_v38 = vpack.c.bf16 %v2521_v28, %v2520_v2 }
 0x867   :  { %v5116_v32 = vpop.eup %5115  ;;  %v3643_v52 = vadd.f32 -1.0, %v5114_v33  ;;  %v2523_v57 = vsel %vm2423_vm3, %v8409_v22, %v3641_v42  ;;  %v8436_v22 = vmov %v7749_v41 }
 0x868   :  { %v5118_v34 = vpop.eup %5117  ;;  %v3644_v11 = vadd.f32 -1.0, %v5116_v32  ;;  %v2524_v20 = vsel %vm2424_vm4, %v8412_v12, %v3642_v8  ;;  %v7846_v39 = vpack.c.bf16 %v2523_v57, %v2522_v25  ;;  %v8438_v12 = vmov %v7749_v41 }
 0x869   :  { %v3645_v31 = vadd.f32 -1.0, %v5118_v34  ;;  %v2525_v36 = vsel %vm2425_vm5, %v8414_v3, %v3643_v52  ;;  %v8439_v3 = vmov %v7749_v41 }
 0x86a   :  { %v2526_v4 = vsel %vm2426_vm6, %v8411_v7, %v3644_v11  ;;  %v7850_v49 = vpack.c.bf16 %v2525_v36, %v2524_v20  ;;  %v8440_v7 = vmov %v7749_v41 }
 0x86b   :  { %v2527_v16 = vsel %vm2427_vm7, %v8413_v24, %v3645_v31  ;;  %v8441_v24 = vmov %v7749_v41 }
 0x86c   :  { %v7853_v55 = vpack.c.bf16 %v2527_v16, %v2526_v4 }
 0x86d LB: > { %v5994_v9 = vmov 0   ;;  %s3699_s11 = smul.u32 160, %s5988_s8  ;;  %s3700_s7 = sshll.u32 %s5988_s8, 3  ;;  %vm2849_vm1 = vcmask 130048   ;;  %s5988_s8 = sphi %s7915_s8, %s2550_s8   ;;  %v5984_v41 = vphi %v7749_v41, %v8476_v41   ;;  %v5980_v50 = vphi %v8454_v50, %v8475_v50   ;;  %v5976_v47 = vphi %v8453_v47, %v8474_v47   ;;  %v5972_v29 = vphi %v8452_v29, %v8473_v29   ;;  %v5968_v37 = vphi %v8451_v37, %v8472_v37   ;;  %v5964_v21 = vphi %v8450_v21, %v8471_v21   ;;  %v5960_v5 = vphi %v8449_v5, %v8470_v5   ;;  %v5956_v44 = vphi %v8448_v44, %v8469_v44   ;;  %v5952_v59 = vphi %v8447_v59, %v8468_v59   ;;  %v5948_v58 = vphi %v8446_v58, %v8467_v58   ;;  %v5944_v6 = vphi %v8445_v6, %v8466_v6   ;;  %v5940_v23 = vphi %v8444_v23, %v8465_v23   ;;  %v5936_v10 = vphi %v8443_v10, %v8464_v10   ;;  %v5932_v60 = vphi %v8442_v60, %v8463_v60   ;;  %v5928_v24 = vphi %v8441_v24, %v8462_v24   ;;  %v5924_v7 = vphi %v8440_v7, %v8461_v7   ;;  %v5920_v3 = vphi %v8439_v3, %v8460_v3   ;;  %v5916_v12 = vphi %v8438_v12, %v8459_v12   ;;  %v5912_v40 = vphi %v8437_v40, %v8458_v40   ;;  %v5908_v22 = vphi %v8436_v22, %v8457_v22  }
 0x86e   : > { %2720 = vmatprep.subr.bf16.mxu0 %v5994_v9  ;;  %3964 = vmatprep.subr.bf16.mxu1 %v5994_v9  ;;  %s2596_s29 = scalar_lea.vmem %s8192_s10, %s3700_s7  ;;  %s2550_s8 = sadd.s32 1, %s5988_s8  }
 0x86f   : > { %2721 = vmatpush1.bf16.msra.mxu0 %v7846_v39  ;;  %3974 = vmatpush1.bf16.msra.mxu1 %v7846_v39  ;;  %s7986_s4 = scalar_lea.vmem %s8184_s1, %s3699_s11  ;;  %v5149_v33 = vld [vmem:[%s2596_s29] sm:$0xff]   ;;  %p8073_p4 = scmp.ge.s32.totalorder %s2550_s8, 41  }
 0x870   : > { %2722 = vmatprep.subr.bf16.mxu0 %v5994_v9  ;;  %3965 = vmatprep.subr.bf16.mxu1 %v5994_v9  ;;  %v5121_v0 = vld [vmem:[%s7986_s4 + $0x4] ss:$8 sps:$4 sm:$0xff]   ;;  %v5119_v35 = vld [vmem:[%s7986_s4] ss:$8 sps:$4 sm:$0xff]   ;;  %v5122_v1 = vld [vmem:[%s7986_s4 + $0x14] ss:$8 sps:$4 sm:$0xff]  }
 0x871   : > { %3670 = vmatprep.mubr.msk.bf16.mxu0 %vm227_vm0, %v5121_v0  ;;  %v5142_v26 = vld [vmem:[%s7986_s4 + $0x84] ss:$8 sps:$4 sm:$0xff]   ;;  %v5140_v45 = vld [vmem:[%s7986_s4 + $0x80] ss:$8 sps:$4 sm:$0xff]   ;;  %v5146_v17 = vld [vmem:[%s7986_s4 + $0x94] ss:$8 sps:$4 sm:$0xff]  }
 0x872   : > { %3678 = vmatprep.mubr.msk.bf16.mxu1 %vm227_vm0, %v5142_v26  ;;  %v5124_v14 = vld [vmem:[%s7986_s4 + $0x10] ss:$8 sps:$4 sm:$0xff]   ;;  %v5125_v19 = vld [vmem:[%s7986_s4 + $0x24] ss:$8 sps:$4 sm:$0xff]   ;;  %v5127_v56 = vld [vmem:[%s7986_s4 + $0x20] ss:$8 sps:$4 sm:$0xff]  }
 0x873   : > { %2723 = vmatpush1.bf16.msra.mxu0 %v7838_v38  ;;  %3975 = vmatpush1.bf16.msra.mxu1 %v7838_v38  ;;  %v5148_v51 = vld [vmem:[%s7986_s4 + $0x90] ss:$8 sps:$4 sm:$0xff]   ;;  %v5128_v43 = vld [vmem:[%s7986_s4 + $0x34] ss:$8 sps:$4 sm:$0xff]   ;;  %v5131_v46 = vld [vmem:[%s7986_s4 + $0x44] ss:$8 sps:$4 sm:$0xff]  }
 0x874   : > { %2724 = vmatprep.subr.bf16.mxu0 %v5994_v9  ;;  %3966 = vmatprep.subr.bf16.mxu1 %v5994_v9  ;;  %v5130_v13 = vld [vmem:[%s7986_s4 + $0x30] ss:$8 sps:$4 sm:$0xff]   ;;  %v5133_v48 = vld [vmem:[%s7986_s4 + $0x40] ss:$8 sps:$4 sm:$0xff]   ;;  %v5134_v53 = vld [vmem:[%s7986_s4 + $0x54] ss:$8 sps:$4 sm:$0xff]  }
 0x875   : > { %v5136_v63 = vld [vmem:[%s7986_s4 + $0x50] ss:$8 sps:$4 sm:$0xff]   ;;  %v5137_v2 = vld [vmem:[%s7986_s4 + $0x64] ss:$8 sps:$4 sm:$0xff]   ;;  %v5139_v30 = vld [vmem:[%s7986_s4 + $0x60] ss:$8 sps:$4 sm:$0xff]  }
 0x876   : > { %v5143_v42 = vld [vmem:[%s7986_s4 + $0x74] ss:$8 sps:$4 sm:$0xff]   ;;  %v5145_v28 = vld [vmem:[%s7986_s4 + $0x70] ss:$8 sps:$4 sm:$0xff]  }
 0x877   : > { %2725 = vmatpush1.bf16.msra.mxu0 %v7830_v15  ;;  %3976 = vmatpush1.bf16.msra.mxu1 %v7830_v15 }
 0x878   : > { %2726 = vmatprep.subr.bf16.mxu0 %v5994_v9  ;;  %3967 = vmatprep.subr.bf16.mxu1 %v5994_v9 }
 0x87b   : > { %2727 = vmatpush1.bf16.msra.mxu0 %v7822_v61  ;;  %3977 = vmatpush1.bf16.msra.mxu1 %v7822_v61 }
 0x87c   : > { %2728 = vmatprep.subr.bf16.mxu0 %v5994_v9  ;;  %3968 = vmatprep.subr.bf16.mxu1 %v5994_v9 }
 0x87f   : > { %2729 = vmatpush1.bf16.msra.mxu0 %v7814_v62  ;;  %3978 = vmatpush1.bf16.msra.mxu1 %v7814_v62 }
 0x880   : > { %2730 = vmatprep.subr.bf16.mxu0 %v5994_v9  ;;  %3969 = vmatprep.subr.bf16.mxu1 %v5994_v9 }
 0x883   : > { %2731 = vmatpush1.bf16.msra.mxu0 %v7806_v54  ;;  %3979 = vmatpush1.bf16.msra.mxu1 %v7806_v54 }
 0x884   : > { %2732 = vmatprep.subr.bf16.mxu0 %v5994_v9  ;;  %3970 = vmatprep.subr.bf16.mxu1 %v5994_v9 }
 0x887   : > { %2733 = vmatpush1.bf16.msra.mxu0 %v7796_v27  ;;  %3980 = vmatpush1.bf16.msra.mxu1 %v7796_v27 }
 0x888   : > { %2734 = vmatprep.subr.bf16.mxu0 %v5994_v9  ;;  %3971 = vmatprep.subr.bf16.mxu1 %v5994_v9 }
 0x88b   : > { %2735 = vmatpush1.bf16.msra.mxu0 %v7786_v18  ;;  %3981 = vmatpush1.bf16.msra.mxu1 %v7786_v18 }
 0x88c   : > { %2748 = vmatprep.subr.bf16.mxu0 %v5994_v9  ;;  %3972 = vmatprep.subr.bf16.mxu1 %v5994_v9 }
 0x88f   : > { %2749 = vmatpush2.bf16.msra.mxu0 %v7853_v55  ;;  %3982 = vmatpush2.bf16.msra.mxu1 %v7853_v55 }
 0x890   : > { %2750 = vmatprep.subr.bf16.mxu0 %v5994_v9  ;;  %3973 = vmatprep.subr.bf16.mxu1 %v5994_v9 }
 0x893   : > { %2751 = vmatpush2.bf16.msra.mxu0 %v7850_v49  ;;  %3983 = vmatpush2.bf16.msra.mxu1 %v7850_v49 }
 0x894   : > { %3862 = vmatprep.subr.bf16.mxu1 %v5149_v33 }
 0x896   : > { %2753 = vmatmul.mubr.bf16.vlgmr.msra.gmra.mxu0 %v5119_v35  ;;  %2817 = vmatmul.mubr.bf16.vlgmr.msra.gmra.mxu1 %v5140_v45 }
 0x897   : > { %3671 = vmatprep.mubr.msk.bf16.mxu0 %vm227_vm0, %v5122_v1  ;;  %3679 = vmatprep.mubr.msk.bf16.mxu1 %vm227_vm0, %v5146_v17 }
 0x898   : > { %3863 = vmatpush3.bf16.msra.mxu1 %v5149_v33 }
 0x89e   : > { %2761 = vmatmul.mubr.bf16.gmra.mxu0 %v5124_v14  ;;  %2825 = vmatmul.mubr.bf16.gmra.mxu1 %v5148_v51 }
 0x89f   : > { %3672 = vmatprep.mubr.msk.bf16.mxu0 %vm227_vm0, %v5125_v19 }
 0x8a6   : > { %2769 = vmatmul.mubr.bf16.gmra.mxu0 %v5127_v56 }
 0x8a7   : > { %3673 = vmatprep.mubr.msk.bf16.mxu0 %vm227_vm0, %v5128_v43 }
 0x8ae   : > { %2777 = vmatmul.mubr.bf16.gmra.mxu0 %v5130_v13 }
 0x8af   : > { %3674 = vmatprep.mubr.msk.bf16.mxu0 %vm227_vm0, %v5131_v46 }
 0x8b6   : > { %2785 = vmatmul.mubr.bf16.gmra.mxu0 %v5133_v48 }
 0x8b7   : > { %3675 = vmatprep.mubr.msk.bf16.mxu0 %vm227_vm0, %v5134_v53 }
 0x8be   : > { %2793 = vmatmul.mubr.bf16.gmra.mxu0 %v5136_v63 }
 0x8bf   : > { %3676 = vmatprep.mubr.msk.bf16.mxu0 %vm227_vm0, %v5137_v2 }
 0x8c6   : > { %2801 = vmatmul.mubr.bf16.gmra.mxu0 %v5139_v30 }
 0x8c7   : > { %3677 = vmatprep.mubr.msk.bf16.mxu0 %vm227_vm0, %v5143_v42 }
 0x8ce   : > { %2809 = vmatmul.mubr.bf16.gmra.mxu0 %v5145_v28 }
 0x956   : > { %v2754_v8 = vpop.f32.mrf.mxu0  ;;  %v2818_v25 = vpop.f32.mrf.mxu1 }
 0x958   : > { %v2756_v32 = vpop.f32.mrf.mxu0  ;;  %v2820_v52 = vpop.f32.mrf.mxu1 }
 0x95a   : > { %v2757_v57 = vpop.f32.mrf.mxu0  ;;  %v2821_v34 = vpop.f32.mrf.mxu1 }
 0x95b   : > { %v2833_v11 = vpack.c.bf16 %v2757_v57, %v2754_v8 }
 0x95c   : > { %v2759_v20 = vpop.f32.mrf.mxu0  ;;  %v2823_v31 = vpop.f32.mrf.mxu1 }
 0x95d   : > { %3864 = vmatprep.mubr.msk.bf16.mxu1 %vm2849_vm1, %v2833_v11 }
 0x95e   : > { %v2762_v36 = vpop.f32.mrf.mxu0  ;;  %v2826_v4 = vpop.f32.mrf.mxu1 }
 0x960   : > { %v2764_v16 = vpop.f32.mrf.mxu0  ;;  %v2828_v9 = vpop.f32.mrf.mxu1 }
 0x962   : > { %v2765_v0 = vpop.f32.mrf.mxu0  ;;  %v2829_v26 = vpop.f32.mrf.mxu1 }
 0x963   : > { %v2834_v35 = vpack.c.bf16 %v2765_v0, %v2762_v36 }
 0x964   : > { %v2767_v45 = vpop.f32.mrf.mxu0  ;;  %v2831_v1 = vpop.f32.mrf.mxu1 }
 0x965   : > { %3865 = vmatmul.mubr.msk.bf16.vlgmr.msra.gmra.mxu1 %vm2849_vm1, %v2834_v35  ;;  %v2841_v1 = vpack.c.bf16 %v2821_v34, %v2818_v25 }
 0x966   : > { %v2770_v17 = vpop.f32.mrf.mxu0 }
 0x968   : > { %v2772_v14 = vpop.f32.mrf.mxu0 }
 0x969   : > { %v2842_v14 = vpack.c.bf16 %v2829_v26, %v2826_v4 }
 0x96a   : > { %v2773_v51 = vpop.f32.mrf.mxu0 }
 0x96b   : > { %v2835_v19 = vpack.c.bf16 %v2773_v51, %v2770_v17 }
 0x96c   : > { %v2775_v56 = vpop.f32.mrf.mxu0 }
 0x96d   : > { %3868 = vmatprep.mubr.msk.bf16.mxu1 %vm2849_vm1, %v2835_v19 }
 0x96e   : > { %v2778_v43 = vpop.f32.mrf.mxu0 }
 0x970   : > { %v2780_v13 = vpop.f32.mrf.mxu0 }
 0x972   : > { %v2781_v46 = vpop.f32.mrf.mxu0 }
 0x973   : > { %v2836_v48 = vpack.c.bf16 %v2781_v46, %v2778_v43 }
 0x974   : > { %v2783_v53 = vpop.f32.mrf.mxu0 }
 0x975   : > { %3869 = vmatmul.mubr.msk.bf16.gmra.mxu1 %vm2849_vm1, %v2836_v48 }
 0x976   : > { %v2786_v63 = vpop.f32.mrf.mxu0 }
 0x978   : > { %v2788_v2 = vpop.f32.mrf.mxu0 }
 0x97a   : > { %v2789_v30 = vpop.f32.mrf.mxu0 }
 0x97b   : > { %v2837_v42 = vpack.c.bf16 %v2789_v30, %v2786_v63 }
 0x97c   : > { %v2791_v28 = vpop.f32.mrf.mxu0 }
 0x97d   : > { %3872 = vmatprep.mubr.msk.bf16.mxu1 %vm2849_vm1, %v2837_v42 }
 0x97e   : > { %v2794_v33 = vpop.f32.mrf.mxu0 }
 0x980   : > { %v2796_v8 = vpop.f32.mrf.mxu0 }
 0x982   : > { %v2797_v32 = vpop.f32.mrf.mxu0 }
 0x983   : > { %v2838_v52 = vpack.c.bf16 %v2797_v32, %v2794_v33 }
 0x984   : > { %v2799_v57 = vpop.f32.mrf.mxu0 }
 0x985   : > { %3873 = vmatmul.mubr.msk.bf16.gmra.mxu1 %vm2849_vm1, %v2838_v52 }
 0x986   : > { %v2802_v11 = vpop.f32.mrf.mxu0 }
 0x988   : > { %v2804_v20 = vpop.f32.mrf.mxu0 }
 0x98a   : > { %v2805_v31 = vpop.f32.mrf.mxu0 }
 0x98b   : > { %v2839_v36 = vpack.c.bf16 %v2805_v31, %v2802_v11 }
 0x98c   : > { %v2807_v16 = vpop.f32.mrf.mxu0 }
 0x98d   : > { %3876 = vmatprep.mubr.msk.bf16.mxu1 %vm2849_vm1, %v2839_v36 }
 0x98e   : > { %v2810_v9 = vpop.f32.mrf.mxu0 }
 0x990   : > { %v2812_v0 = vpop.f32.mrf.mxu0 }
 0x992   : > { %v2813_v35 = vpop.f32.mrf.mxu0 }
 0x993   : > { %v2840_v45 = vpack.c.bf16 %v2813_v35, %v2810_v9 }
 0x994   : > { %v2815_v17 = vpop.f32.mrf.mxu0 }
 0x995   : > { %3877 = vmatmul.mubr.msk.bf16.gmra.mxu1 %vm2849_vm1, %v2840_v45 }
 0x996   : > { %3880 = vmatprep.mubr.msk.bf16.mxu1 %vm2849_vm1, %v2841_v1 }
 0x99d   : > { %3881 = vmatmul.mubr.msk.bf16.gmra.mxu1 %vm2849_vm1, %v2842_v14 }
 0xa25   : > { %v3866_v51 = vpop.f32.mrf.mxu1 }
 0xa26   : > { %v8051_v47 = vadd.f32 %v5976_v47, %v3866_v51  }
 0xa27   : > { %v2914_v56 = vpop.f32.mrf.mxu1 }
 0xa28   : > { %v8455_v19 = vmov %v8051_v47  ;;  %v2993_v43 = vadd.f32 %v5984_v41, %v2914_v56  }
 0xa29   : > { %v3867_v13 = vpop.f32.mrf.mxu1  ;;  %3015 = vst [vmem:[%s8194_s12 + $0x10] sm:$0xff] (%p8073_p4), %v8455_v19 }
 0xa2a   : > { %v2996_v46 = vadd.f32 %v5972_v29, %v3867_v13   ;;  %3013 = vst [vmem:[%s8194_s12] sm:$0xff] (%p8073_p4), %v2993_v43 }
 0xa2b   : > { %v2917_v48 = vpop.f32.mrf.mxu1 }
 0xa2c   : > { %v2994_v25 = vadd.f32 %v5980_v50, %v2917_v48   ;;  %3016 = vst [vmem:[%s8194_s12 + $0x18] sm:$0xff] (%p8073_p4), %v2996_v46 }
 0xa2e   :  { %3014 = vst [vmem:[%s8194_s12 + $0x8] sm:$0xff] (%p8073_p4), %v2994_v25 }
 0xa35   : > { %v3870_v34 = vpop.f32.mrf.mxu1 }
 0xa36   : > { %v2999_v53 = vadd.f32 %v5960_v5, %v3870_v34  }
 0xa37   : > { %v2930_v63 = vpop.f32.mrf.mxu1 }
 0xa38   : > { %v2997_v4 = vadd.f32 %v5968_v37, %v2930_v63   ;;  %3019 = vst [vmem:[%s8194_s12 + $0x30] sm:$0xff] (%p8073_p4), %v2999_v53 }
 0xa39   : > { %v3871_v26 = vpop.f32.mrf.mxu1 }
 0xa3a   : > { %v3000_v2 = vadd.f32 %v5956_v44, %v3871_v26   ;;  %3017 = vst [vmem:[%s8194_s12 + $0x20] sm:$0xff] (%p8073_p4), %v2997_v4 }
 0xa3b   : > { %v2933_v30 = vpop.f32.mrf.mxu1 }
 0xa3c   : > { %v2998_v42 = vadd.f32 %v5964_v21, %v2933_v30   ;;  %3020 = vst [vmem:[%s8194_s12 + $0x38] sm:$0xff] (%p8073_p4), %v3000_v2 }
 0xa3e   :  { %3018 = vst [vmem:[%s8194_s12 + $0x28] sm:$0xff] (%p8073_p4), %v2998_v42 }
 0xa45   : > { %v3874_v47 = vpop.f32.mrf.mxu1 }
 0xa46   : > { %v3003_v28 = vadd.f32 %v5944_v6, %v3874_v47   ;;  %v8474_v47 = vmov %v8455_v19 }
 0xa47   : > { %v2946_v41 = vpop.f32.mrf.mxu1 }
 0xa48   : > { %v3001_v33 = vadd.f32 %v5952_v59, %v2946_v41   ;;  %v8476_v41 = vmov %v2993_v43  ;;  %3023 = vst [vmem:[%s8194_s12 + $0x50] sm:$0xff] (%p8073_p4), %v3003_v28 }
 0xa49   : > { %v3875_v29 = vpop.f32.mrf.mxu1 }
 0xa4a   : > { %v3004_v8 = vadd.f32 %v5940_v23, %v3875_v29   ;;  %v8473_v29 = vmov %v2996_v46  ;;  %3021 = vst [vmem:[%s8194_s12 + $0x40] sm:$0xff] (%p8073_p4), %v3001_v33 }
 0xa4b   : > { %v2949_v50 = vpop.f32.mrf.mxu1 }
 0xa4c   : > { %v3002_v32 = vadd.f32 %v5948_v58, %v2949_v50   ;;  %v8475_v50 = vmov %v2994_v25  ;;  %3024 = vst [vmem:[%s8194_s12 + $0x58] sm:$0xff] (%p8073_p4), %v3004_v8 }
 0xa4e   :  { %3022 = vst [vmem:[%s8194_s12 + $0x48] sm:$0xff] (%p8073_p4), %v3002_v32 }
 0xa55   : > { %v3878_v5 = vpop.f32.mrf.mxu1 }
 0xa56   : > { %v3007_v52 = vadd.f32 %v5928_v24, %v3878_v5   ;;  %v8470_v5 = vmov %v2999_v53 }
 0xa57   : > { %v2962_v37 = vpop.f32.mrf.mxu1 }
 0xa58   : > { %v3005_v57 = vadd.f32 %v5936_v10, %v2962_v37   ;;  %v8462_v24 = vmov %v3007_v52  ;;  %v8472_v37 = vmov %v2997_v4  ;;  %3027 = vst [vmem:[%s8194_s12 + $0x70] sm:$0xff] (%p8073_p4), %v3007_v52 }
 0xa59   : > { %v3879_v44 = vpop.f32.mrf.mxu1 }
 0xa5a   : > { %v3008_v11 = vadd.f32 %v5924_v7, %v3879_v44   ;;  %v8464_v10 = vmov %v3005_v57  ;;  %v8469_v44 = vmov %v3000_v2  ;;  %3025 = vst [vmem:[%s8194_s12 + $0x60] sm:$0xff] (%p8073_p4), %v3005_v57 }
 0xa5b   : > { %v2965_v21 = vpop.f32.mrf.mxu1 }
 0xa5c   : > { %v3006_v20 = vadd.f32 %v5932_v60, %v2965_v21   ;;  %v8461_v7 = vmov %v3008_v11  ;;  %v8471_v21 = vmov %v2998_v42  ;;  %3028 = vst [vmem:[%s8194_s12 + $0x78] sm:$0xff] (%p8073_p4), %v3008_v11 }
 0xa5d   : > { %v3882_v6 = vpop.f32.mrf.mxu1 }
 0xa5e   : > { %v3011_v31 = vadd.f32 %v5912_v40, %v3882_v6   ;;  %v8463_v60 = vmov %v3006_v20  ;;  %v8466_v6 = vmov %v3003_v28  ;;  %3026 = vst [vmem:[%s8194_s12 + $0x68] sm:$0xff] (%p8073_p4), %v3006_v20 }
 0xa5f   : > { %v2978_v59 = vpop.f32.mrf.mxu1 }
 0xa60   : > { %v3009_v36 = vadd.f32 %v5920_v3, %v2978_v59   ;;  %v8458_v40 = vmov %v3011_v31  ;;  %v8468_v59 = vmov %v3001_v33  ;;  %3031 = vst [vmem:[%s8194_s12 + $0x90] sm:$0xff] (%p8073_p4), %v3011_v31 }
 0xa61   : > { %v3883_v23 = vpop.f32.mrf.mxu1 }
 0xa62   : > { %v3012_v16 = vadd.f32 %v5908_v22, %v3883_v23   ;;  %v8460_v3 = vmov %v3009_v36  ;;  %v8465_v23 = vmov %v3004_v8  ;;  %2549 = sbr.rel (!%p8073_p4) target bundleno = 2157 (0x86d), region = 157  ;;  %3029 = vst [vmem:[%s8194_s12 + $0x80] sm:$0xff] (%p8073_p4), %v3009_v36 }
 0xa63   : > { %v2981_v58 = vpop.f32.mrf.mxu1 }
 0xa64   : > { %v3010_v9 = vadd.f32 %v5916_v12, %v2981_v58   ;;  %v8457_v22 = vmov %v3012_v16  ;;  %v8467_v58 = vmov %v3002_v32  ;;  %3032 = vst [vmem:[%s8194_s12 + $0x98] sm:$0xff] (%p8073_p4), %v3012_v16 }
 0xa66   : > { %v8459_v12 = vmov %v3010_v9  ;;  %3030 = vst [vmem:[%s8194_s12 + $0x88] sm:$0xff] (%p8073_p4), %v3010_v9 }

</bundles_post_ra>
